<compile_context>
chip_gen: v6e
topology: v6e:2x2x1
jax: 0.10.0
libtpu: 0.0.40
codegen_flags: <defaults>
</compile_context>

<pallas_src>
import functools

import jax
import jax.numpy as jnp
from jax.experimental import pallas as pl
from jax.experimental.pallas import tpu as pltpu

EPS = 1e-5
_LANE = 128
_VMEM_LIMIT = 32 * 1024 * 1024   # <= 48 MiB recommended on v7x (64 MiB phys)


def _round_up(x, m):
    return ((x + m - 1) // m) * m


# ------------------------------ kernel helpers -------------------------------


def _bn_scale_shift(s_ref, g_ref, b_ref, m_total):
    """Training-mode BN folded to y = z*scale + shift (per channel, f32)."""
    inv_m = 1.0 / m_total
    mean = s_ref[0:1, :] * inv_m
    var = jnp.maximum(s_ref[1:2, :] * inv_m - mean * mean, 0.0)
    rstd = jax.lax.rsqrt(var + EPS)
    scale = g_ref[...] * rstd
    shift = b_ref[...] - mean * scale
    return scale, shift                      # each (1, Cp) f32


def _zero_halo(pad_ref):
    """Zero only the 1-pixel spatial halo of the padded scratch.

    The interior is fully overwritten every grid step, so a full-buffer zero
    per step (or persistence assumptions across steps / cores) is not needed.
    """
    hp, wp, cc = pad_ref.shape
    zr = jnp.zeros((1, wp, cc), pad_ref.dtype)
    zc = jnp.zeros((hp, 1, cc), pad_ref.dtype)
    pad_ref[0:1, :, :] = zr
    pad_ref[hp - 1:hp, :, :] = zr
    pad_ref[:, 0:1, :] = zc
    pad_ref[:, wp - 1:wp, :] = zc


def _conv3x3_tiles(pad_ref, w_ref, b_row, z_ref, *, stride, th):
    """3x3 conv (pad already applied) via M-tiled im2col matmuls.

    Writes z_ref (stored in z_ref.dtype, e.g. bf16) and returns the per-image
    f32 (sum, sumsq) rows needed for the following BatchNorm.
    """
    _, Ho, Wo, Cp = z_ref.shape
    cin_p = pad_ref.shape[-1]
    w = w_ref[...]                                        # (9*cin_p, Cp) bf16
    s_sum = jnp.zeros((1, Cp), jnp.float32)
    s_sq = jnp.zeros((1, Cp), jnp.float32)
    for r0 in range(0, Ho, th):                           # static M-tiling
        rows = min(th, Ho - r0)
        mt = rows * Wo
        row_lo = r0 * stride
        span = (rows - 1) * stride + 3
        xt = pad_ref[row_lo:row_lo + span, :, :]          # (span, Wp, cin_p)
        parts = []
        for dy in range(3):
            for dx in range(3):
                if stride == 1:
                    part = xt[dy:dy + rows, dx:dx + Wo, :]
                else:
                    part = xt[dy:dy + (rows - 1) * stride + 1:stride,
                              dx:dx + (Wo - 1) * stride + 1:stride, :]
                parts.append(part.reshape(mt, cin_p))
        # Lane-aligned im2col (each piece is a multiple of 128 lanes, already
        # in compute dtype) -> one wide-K MXU matmul per tile.
        patch = jnp.concatenate(parts, axis=-1)           # (mt, 9*cin_p)
        z = jnp.dot(patch, w, preferred_element_type=jnp.float32)
        z = z + b_row                                     # f32 (mt, Cp)
        z_ref[:, r0:r0 + rows, :, :] = (
            z.reshape(1, rows, Wo, Cp).astype(z_ref.dtype))
        s_sum = s_sum + jnp.sum(z, axis=0, keepdims=True)
        s_sq = s_sq + jnp.sum(z * z, axis=0, keepdims=True)
    return s_sum, s_sq


# ----------------------------- Pallas kernels ---------------------------------


def _conv_stats_kernel(x_ref, w_ref, b_ref, z_ref, s_ref, pad_ref, *, stride, th):
    """Pass 1: 3x3 conv (stride s, pad 1) + bias; per-image BN1 sum/sumsq."""
    _, H, W, _ = x_ref.shape
    _zero_halo(pad_ref)
    # x is already channel-padded and in compute dtype -> plain copy.
    pad_ref[1:H + 1, 1:W + 1, :] = x_ref[0]
    s_sum, s_sq = _conv3x3_tiles(pad_ref, w_ref, b_ref[...], z_ref,
                                 stride=stride, th=th)
    s_ref[...] = jnp.concatenate([s_sum, s_sq], axis=0).reshape(s_ref.shape)


def _bn_relu_conv_stats_kernel(z1_ref, s1_ref, g1_ref, bt1_ref, w2_ref, b2_ref,
                               z2_ref, s2_ref, pad_ref, *, m_total, th):
    """Pass 2: BN1(train) + ReLU + 3x3 conv (stride 1, pad 1) + bias; BN2 stats."""
    _, Ho, Wo, Cp = z1_ref.shape
    scale1, shift1 = _bn_scale_shift(s1_ref, g1_ref, bt1_ref, m_total)
    scale1 = scale1.reshape(1, 1, Cp)
    shift1 = shift1.reshape(1, 1, Cp)

    _zero_halo(pad_ref)
    for r0 in range(0, Ho, th):                           # tiled BN+ReLU write
        rows = min(th, Ho - r0)
        z1 = z1_ref[0, r0:r0 + rows, :, :].astype(jnp.float32)
        y1 = jnp.maximum(z1 * scale1 + shift1, 0.0)
        pad_ref[1 + r0:1 + r0 + rows, 1:Wo + 1, :] = y1.astype(pad_ref.dtype)

    s_sum, s_sq = _conv3x3_tiles(pad_ref, w2_ref, b2_ref[...], z2_ref,
                                 stride=1, th=th)
    s2_ref[...] = jnp.concatenate([s_sum, s_sq], axis=0).reshape(s2_ref.shape)


def _bn_proj_add_relu_kernel(z2_ref, s2_ref, g2_ref, bt2_ref, x_ref,
                             w3_ref, b3_ref, out_ref, *, m_total, th):
    """Pass 3 (projection skip): BN2 + 1x1-conv(x_strided) + add + ReLU."""
    _, Ho, Wo, Cp = z2_ref.shape
    cin_p = x_ref.shape[3]
    scale2, shift2 = _bn_scale_shift(s2_ref, g2_ref, bt2_ref, m_total)
    w3 = w3_ref[...]
    b3 = b3_ref[...]
    for r0 in range(0, Ho, th):
        rows = min(th, Ho - r0)
        mt = rows * Wo
        z2 = z2_ref[0, r0:r0 + rows, :, :].astype(jnp.float32).reshape(mt, Cp)
        y = z2 * scale2 + shift2
        xm = x_ref[0, r0:r0 + rows, :, :].reshape(mt, cin_p)        # bf16
        skip = jnp.dot(xm, w3, preferred_element_type=jnp.float32) + b3
        out_ref[:, r0:r0 + rows, :, :] = (
            jnp.maximum(y + skip, 0.0).reshape(1, rows, Wo, Cp))


def _bn_identity_add_relu_kernel(z2_ref, s2_ref, g2_ref, bt2_ref, x_ref,
                                 out_ref, *, m_total, th):
    """Pass 3 (identity skip): BN2 + x + ReLU (stride==1, Cin==Cout), exact f32 add."""
    _, Ho, Wo, Cp = z2_ref.shape
    cin = x_ref.shape[3]
    scale2, shift2 = _bn_scale_shift(s2_ref, g2_ref, bt2_ref, m_total)
    scale2 = scale2.reshape(1, 1, Cp)
    shift2 = shift2.reshape(1, 1, Cp)
    for r0 in range(0, Ho, th):
        rows = min(th, Ho - r0)
        z2 = z2_ref[0, r0:r0 + rows, :, :].astype(jnp.float32)
        y = z2 * scale2 + shift2
        xr = x_ref[0, r0:r0 + rows, :, :]                           # f32
        if cin == Cp:
            skip = xr
        else:
            skip = jnp.concatenate(
                [xr, jnp.zeros((rows, Wo, Cp - cin), xr.dtype)], axis=-1)
        out_ref[:, r0:r0 + rows, :, :] = (
            jnp.maximum(y + skip, 0.0).reshape(1, rows, Wo, Cp))


# ------------------------------ Module wrapper --------------------------------


class ResidualPallas:
    def __init__(self, input_channels, output_channels, use_1_1=False,
                 stride=1, key=None, compute_dtype=jnp.bfloat16):
        if not use_1_1:
            assert stride == 1 and input_channels == output_channels, \
                "identity skip requires stride == 1 and Cin == Cout"
        self.cin = input_channels
        self.cout = output_channels
        self.use_1_1 = use_1_1
        self.stride = stride
        self.compute_dtype = compute_dtype

        key = jax.random.PRNGKey(0) if key is None else key
        ks = jax.random.split(key, 6)
        f32 = jnp.float32
        # Master parameters (f32, "natural" shapes) -- also used by the reference.
        self.w1 = jax.random.normal(ks[0], (3, 3, input_channels, output_channels), f32) * 0.1
        self.b1 = jax.random.normal(ks[1], (output_channels,), f32) * 0.1
        self.w2 = jax.random.normal(ks[2], (3, 3, output_channels, output_channels), f32) * 0.1
        self.b2 = jax.random.normal(ks[3], (output_channels,), f32) * 0.1
        self.g1 = jnp.ones((output_channels,), f32)
        self.beta1 = jnp.zeros((output_channels,), f32)
        self.g2 = jnp.ones((output_channels,), f32)
        self.beta2 = jnp.zeros((output_channels,), f32)
        if use_1_1:
            self.w3 = jax.random.normal(ks[4], (input_channels, output_channels), f32) * 0.1
            self.b3 = jax.random.normal(ks[5], (output_channels,), f32) * 0.1
        else:
            self.w3 = None
            self.b3 = None

        # --- kernel-side layouts: lane-dense (channels padded to 128) ---------
        self.cp = _round_up(output_channels, _LANE)   # padded Cout
        self.cip = _round_up(input_channels, _LANE)   # padded Cin
        cp, cip, cd = self.cp, self.cip, compute_dtype

        def pad_row(v):  # (C,) -> (1, Cp) f32
            return jnp.pad(v, (0, cp - v.shape[0])).reshape(1, cp)

        self.b1_k = pad_row(self.b1)
        self.b2_k = pad_row(self.b2)
        self.g1_k = pad_row(self.g1)
        self.bt1_k = pad_row(self.beta1)
        self.g2_k = pad_row(self.g2)
        self.bt2_k = pad_row(self.beta2)

        # HWIO -> (9*Cin_p, Cp) matching the tap-major / channel-minor im2col.
        self.w1_k = jnp.pad(
            self.w1, ((0, 0), (0, 0), (0, cip - input_channels),
                      (0, cp - output_channels))).reshape(9 * cip, cp).astype(cd)
        self.w2_k = jnp.pad(
            self.w2, ((0, 0), (0, 0), (0, cp - output_channels),
                      (0, cp - output_channels))).reshape(9 * cp, cp).astype(cd)
        if use_1_1:
            # 1x1 projection weight padded to a lane-dense (Cin_p, Cp) operand.
            self.w3_k = jnp.pad(
                self.w3, ((0, cip - input_channels),
                          (0, cp - output_channels))).astype(cd)
            self.b3_k = pad_row(self.b3)

    def __call__(self, x_nchw):
        s = self.stride
        cp, cip, cd = self.cp, self.cip, self.compute_dtype
        x_nhwc = jnp.transpose(x_nchw, (0, 2, 3, 1))                 # NCHW -> NHWC
        N, H, W, Cin = x_nhwc.shape
        assert Cin == self.cin
        Ho = (H + 2 - 3) // s + 1
        Wo = (W + 2 - 3) // s + 1
        m_total = float(N * Ho * Wo)
        # M-tile so each im2col patch is ~512 output pixels (>= 1 row).
        th = max(1, min(Ho, max(1, 512 // Wo)))

        # Conv-pass input: bf16, channel-padded to a lane-dense multiple of 128.
        x_cd = jnp.pad(x_nhwc.astype(cd),
                       ((0, 0), (0, 0), (0, 0), (0, cip - Cin)))

        params = pltpu.CompilerParams(
            dimension_semantics=("parallel",), vmem_limit_bytes=_VMEM_LIMIT)

        vec_spec = pl.BlockSpec((1, cp), lambda i: (0, 0))
        stat_full_spec = pl.BlockSpec((2, cp), lambda i: (0, 0))
        stat_part_spec = pl.BlockSpec((1, 2, cp), lambda i: (i, 0, 0))
        zspec = pl.BlockSpec((1, Ho, Wo, cp), lambda i: (i, 0, 0, 0))
        xspec = pl.BlockSpec((1, H, W, cip), lambda i: (i, 0, 0, 0))

        # ---- pass 1: conv1 (+bias), per-image BN1 statistics ------------------
        z1, s1p = pl.pallas_call(
            functools.partial(_conv_stats_kernel, stride=s, th=th),
            out_shape=(jax.ShapeDtypeStruct((N, Ho, Wo, cp), cd),
                       jax.ShapeDtypeStruct((N, 2, cp), jnp.float32)),
            grid_spec=pltpu.PrefetchScalarGridSpec(
                num_scalar_prefetch=0, grid=(N,),
                in_specs=[xspec,
                          pl.BlockSpec((9 * cip, cp), lambda i: (0, 0)),
                          vec_spec],
                out_specs=(zspec, stat_part_spec),
                scratch_shapes=[pltpu.VMEM((H + 2, W + 2, cip), cd)]),
            compiler_params=params,
        )(x_cd, self.w1_k, self.b1_k)
        s1 = jnp.sum(s1p, axis=0)                         # (2, cp) batch stats

        # ---- pass 2: BN1 + ReLU + conv2 (+bias), per-image BN2 statistics -----
        z2, s2p = pl.pallas_call(
            functools.partial(_bn_relu_conv_stats_kernel, m_total=m_total, th=th),
            out_shape=(jax.ShapeDtypeStruct((N, Ho, Wo, cp), cd),
                       jax.ShapeDtypeStruct((N, 2, cp), jnp.float32)),
            grid_spec=pltpu.PrefetchScalarGridSpec(
                num_scalar_prefetch=0, grid=(N,),
                in_specs=[zspec, stat_full_spec, vec_spec, vec_spec,
                          pl.BlockSpec((9 * cp, cp), lambda i: (0, 0)),
                          vec_spec],
                out_specs=(zspec, stat_part_spec),
                scratch_shapes=[pltpu.VMEM((Ho + 2, Wo + 2, cp), cd)]),
            compiler_params=params,
        )(z1, s1, self.g1_k, self.bt1_k, self.w2_k, self.b2_k)
        s2 = jnp.sum(s2p, axis=0)                         # (2, cp) batch stats

        # ---- pass 3: BN2 + skip (1x1 conv or identity) + add + ReLU -----------
        if self.use_1_1:
            # Strided skip input is materialized once in the wrapper so the
            # kernel DMAs only the needed (Ho, Wo) samples (no in-kernel slice).
            x_skip = x_cd if s == 1 else x_cd[:, ::s, ::s, :]
            xskip_spec = pl.BlockSpec((1, Ho, Wo, cip), lambda i: (i, 0, 0, 0))
            kern = functools.partial(_bn_proj_add_relu_kernel,
                                     m_total=m_total, th=th)
            in_specs = [zspec, stat_full_spec, vec_spec, vec_spec, xskip_spec,
                        pl.BlockSpec((cip, cp), lambda i: (0, 0)), vec_spec]
            args = (z2, s2, self.g2_k, self.bt2_k, x_skip, self.w3_k, self.b3_k)
        else:
            x_f32 = x_nhwc.astype(jnp.float32)            # exact identity add
            xid_spec = pl.BlockSpec((1, H, W, Cin), lambda i: (i, 0, 0, 0))
            kern = functools.partial(_bn_identity_add_relu_kernel,
                                     m_total=m_total, th=th)
            in_specs = [zspec, stat_full_spec, vec_spec, vec_spec, xid_spec]
            args = (z2, s2, self.g2_k, self.bt2_k, x_f32)

        out = pl.pallas_call(
            kern,
            out_shape=jax.ShapeDtypeStruct((N, Ho, Wo, cp), jnp.float32),
            grid_spec=pltpu.PrefetchScalarGridSpec(
                num_scalar_prefetch=0, grid=(N,),
                in_specs=in_specs, out_specs=zspec,
                scratch_shapes=[]),
            compiler_params=params,
        )(*args)

        out = out[..., :self.cout]                        # drop lane padding
        return jnp.transpose(out, (0, 3, 1, 2))           # back to NCHW


# ------------------------------ pure-JAX reference -----------------------------


def _reference(mod: ResidualPallas, x_nchw):
    """Reference forward: conv operands in the kernels' compute dtype (bf16) with
    f32 accumulation; BN / elementwise math and intermediates in f32."""
    x = jnp.transpose(x_nchw, (0, 2, 3, 1)).astype(jnp.float32)
    cd = mod.compute_dtype

    def conv(inp, w, b, stride, pad):
        y = jax.lax.conv_general_dilated(
            inp.astype(cd), w.astype(cd), window_strides=(stride, stride),
            padding=((pad, pad), (pad, pad)),
            dimension_numbers=("NHWC", "HWIO", "NHWC"),
            preferred_element_type=jnp.float32)
        return y + b

    def bn(z, g, beta):
        mean = z.mean(axis=(0, 1, 2), keepdims=True)
        var = ((z - mean) ** 2).mean(axis=(0, 1, 2), keepdims=True)
        return g * (z - mean) * jax.lax.rsqrt(var + EPS) + beta

    y = jax.nn.relu(bn(conv(x, mod.w1, mod.b1, mod.stride, 1), mod.g1, mod.beta1))
    y = bn(conv(y, mod.w2, mod.b2, 1, 1), mod.g2, mod.beta2)
    if mod.use_1_1:
        skip = conv(x, mod.w3.reshape(1, 1, mod.cin, mod.cout), mod.b3,
                    mod.stride, 0)
    else:
        skip = x
    out = jax.nn.relu(y + skip)
    return jnp.transpose(out, (0, 3, 1, 2))


# ----------------------------------- main ---------------------------------------


if __name__ == "__main__":
    key = jax.random.PRNGKey(0)
    k1, k2, k3 = jax.random.split(key, 3)

    # Config 1: projection (1x1-conv) skip, stride 1.
    N, Cin, H, W, Cout = 2, 4, 16, 16, 8
    x = jax.random.normal(k1, (N, Cin, H, W), jnp.float32)
    block = ResidualPallas(Cin, Cout, use_1_1=True, stride=1, key=k2)
    out = jax.block_until_ready(block(x))
    ref = jax.block_until_ready(_reference(block, x))
    assert out.shape == (N, Cout, H, W), out.shape
    err = jnp.abs(out - ref)
    err_max, err_mean = float(jnp.max(err)), float(jnp.mean(err))
    # bf16 z1/z2 barriers -> bf16-level tolerance vs the f32-intermediate ref.
    assert err_max < 5e-2 and err_mean < 1e-2, (err_max, err_mean)

    # Config 2: identity skip (stride 1, Cin == Cout), exact f32 residual add.
    x2 = jax.random.normal(k3, (N, Cout, H, W), jnp.float32)
    block2 = ResidualPallas(Cout, Cout, use_1_1=False, stride=1, key=k2)
    out2 = jax.block_until_ready(block2(x2))
    ref2 = jax.block_until_ready(_reference(block2, x2))
    assert out2.shape == (N, Cout, H, W), out2.shape
    err2 = jnp.abs(out2 - ref2)
    err2_max, err2_mean = float(jnp.max(err2)), float(jnp.mean(err2))
    assert err2_max < 5e-2 and err2_mean < 1e-2, (err2_max, err2_mean)

    print("KERNEL_OK")
</pallas_src>

<mosaic_0001>
module attributes {stable_mosaic.version = 11 : i64} {
  func.func @_conv_stats_kernel(%arg0: i32, %arg1: memref<1x16x16x128xbf16, #tpu.memory_space<vmem>>, %arg2: memref<1152x128xbf16, #tpu.memory_space<vmem>>, %arg3: memref<1x128xf32, #tpu.memory_space<vmem>>, %arg4: memref<1x16x16x128xbf16, #tpu.memory_space<vmem>>, %arg5: memref<1x2x128xf32, #tpu.memory_space<vmem>>, %arg6: memref<18x18x128xbf16, #tpu.memory_space<vmem>>) attributes {dimension_semantics = [#tpu.dimension_semantics<parallel>], iteration_bounds = array<i64: 2>, scalar_prefetch = 0 : i64, scratch_operands = 1 : i64, tpu.core_type = #tpu.core_type<tc>, window_params = [{transform_indices = @transform_0, window_bounds = array<i64: 1, 16, 16, 128>}, {pipeline_mode = #tpu.pipeline_mode<synchronous>, transform_indices = @transform_1, window_bounds = array<i64: 1152, 128>}, {pipeline_mode = #tpu.pipeline_mode<synchronous>, transform_indices = @transform_2, window_bounds = array<i64: 1, 128>}, {transform_indices = @transform_3, window_bounds = array<i64: 1, 16, 16, 128>}, {transform_indices = @transform_4, window_bounds = array<i64: 1, 2, 128>}]} {
    %cst = arith.constant 0.000000e+00 : bf16
    %0 = vector.broadcast %cst : bf16 to vector<1x18x128xbf16>
    %cst_0 = arith.constant 0.000000e+00 : bf16
    %1 = vector.broadcast %cst_0 : bf16 to vector<18x1x128xbf16>
    %c0 = arith.constant 0 : index
    %c0_1 = arith.constant 0 : index
    %c0_2 = arith.constant 0 : index
    %2 = vector.load %arg6[%c0, %c0_1, %c0_2] : memref<18x18x128xbf16, #tpu.memory_space<vmem>>, vector<1x18x128xbf16>
    tpu.vector_store %arg6[%c0, %c0_1, %c0_2], %0 {strides = array<i32>} : memref<18x18x128xbf16, #tpu.memory_space<vmem>>, vector<1x18x128xbf16>,
    %c17 = arith.constant 17 : index
    %c0_3 = arith.constant 0 : index
    %c0_4 = arith.constant 0 : index
    %3 = vector.load %arg6[%c17, %c0_3, %c0_4] : memref<18x18x128xbf16, #tpu.memory_space<vmem>>, vector<1x18x128xbf16>
    tpu.vector_store %arg6[%c17, %c0_3, %c0_4], %0 {strides = array<i32>} : memref<18x18x128xbf16, #tpu.memory_space<vmem>>, vector<1x18x128xbf16>,
    %c0_5 = arith.constant 0 : index
    %c0_6 = arith.constant 0 : index
    %c0_7 = arith.constant 0 : index
    %4 = vector.load %arg6[%c0_5, %c0_6, %c0_7] : memref<18x18x128xbf16, #tpu.memory_space<vmem>>, vector<18x1x128xbf16>
    tpu.vector_store %arg6[%c0_5, %c0_6, %c0_7], %1 {strides = array<i32>} : memref<18x18x128xbf16, #tpu.memory_space<vmem>>, vector<18x1x128xbf16>,
    %c0_8 = arith.constant 0 : index
    %c17_9 = arith.constant 17 : index
    %c0_10 = arith.constant 0 : index
    %5 = vector.load %arg6[%c0_8, %c17_9, %c0_10] : memref<18x18x128xbf16, #tpu.memory_space<vmem>>, vector<18x1x128xbf16>
    tpu.vector_store %arg6[%c0_8, %c17_9, %c0_10], %1 {strides = array<i32>} : memref<18x18x128xbf16, #tpu.memory_space<vmem>>, vector<18x1x128xbf16>,
    %c0_11 = arith.constant 0 : index
    %c0_12 = arith.constant 0 : index
    %c0_13 = arith.constant 0 : index
    %c0_14 = arith.constant 0 : index
    %6 = vector.load %arg1[%c0_11, %c0_12, %c0_13, %c0_14] : memref<1x16x16x128xbf16, #tpu.memory_space<vmem>>, vector<1x16x16x128xbf16>
    %7 = vector.shape_cast %6 : vector<1x16x16x128xbf16> to vector<16x16x128xbf16>
    %c1 = arith.constant 1 : index
    %c1_15 = arith.constant 1 : index
    %c0_16 = arith.constant 0 : index
    %8 = vector.load %arg6[%c1, %c1_15, %c0_16] : memref<18x18x128xbf16, #tpu.memory_space<vmem>>, vector<16x16x128xbf16>
    tpu.vector_store %arg6[%c1, %c1_15, %c0_16], %7 {strides = array<i32>} : memref<18x18x128xbf16, #tpu.memory_space<vmem>>, vector<16x16x128xbf16>,
    %c0_17 = arith.constant 0 : index
    %c0_18 = arith.constant 0 : index
    %9 = vector.load %arg3[%c0_17, %c0_18] : memref<1x128xf32, #tpu.memory_space<vmem>>, vector<1x128xf32>
    %c0_19 = arith.constant 0 : index
    %c0_20 = arith.constant 0 : index
    %10 = vector.load %arg2[%c0_19, %c0_20] : memref<1152x128xbf16, #tpu.memory_space<vmem>>, vector<1152x128xbf16>
    %cst_21 = arith.constant 0.000000e+00 : f32
    %11 = vector.broadcast %cst_21 : f32 to vector<1x128xf32>
    %cst_22 = arith.constant 0.000000e+00 : f32
    %12 = vector.broadcast %cst_22 : f32 to vector<1x128xf32>
    %c0_23 = arith.constant 0 : index
    %c0_24 = arith.constant 0 : index
    %c0_25 = arith.constant 0 : index
    %13 = vector.load %arg6[%c0_23, %c0_24, %c0_25] : memref<18x18x128xbf16, #tpu.memory_space<vmem>>, vector<18x18x128xbf16>
    %14 = vector.extract_strided_slice %13 {offsets = [0, 0, 0], sizes = [16, 16, 128], strides = [1, 1, 1]} : vector<18x18x128xbf16> to vector<16x16x128xbf16>
    %15 = vector.shape_cast %14 : vector<16x16x128xbf16> to vector<256x128xbf16>
    %16 = vector.extract_strided_slice %13 {offsets = [0, 1, 0], sizes = [16, 16, 128], strides = [1, 1, 1]} : vector<18x18x128xbf16> to vector<16x16x128xbf16>
    %17 = vector.shape_cast %16 : vector<16x16x128xbf16> to vector<256x128xbf16>
    %18 = vector.extract_strided_slice %13 {offsets = [0, 2, 0], sizes = [16, 16, 128], strides = [1, 1, 1]} : vector<18x18x128xbf16> to vector<16x16x128xbf16>
    %19 = vector.shape_cast %18 : vector<16x16x128xbf16> to vector<256x128xbf16>
    %20 = vector.extract_strided_slice %13 {offsets = [1, 0, 0], sizes = [16, 16, 128], strides = [1, 1, 1]} : vector<18x18x128xbf16> to vector<16x16x128xbf16>
    %21 = vector.shape_cast %20 : vector<16x16x128xbf16> to vector<256x128xbf16>
    %22 = vector.extract_strided_slice %13 {offsets = [1, 1, 0], sizes = [16, 16, 128], strides = [1, 1, 1]} : vector<18x18x128xbf16> to vector<16x16x128xbf16>
    %23 = vector.shape_cast %22 : vector<16x16x128xbf16> to vector<256x128xbf16>
    %24 = vector.extract_strided_slice %13 {offsets = [1, 2, 0], sizes = [16, 16, 128], strides = [1, 1, 1]} : vector<18x18x128xbf16> to vector<16x16x128xbf16>
    %25 = vector.shape_cast %24 : vector<16x16x128xbf16> to vector<256x128xbf16>
    %26 = vector.extract_strided_slice %13 {offsets = [2, 0, 0], sizes = [16, 16, 128], strides = [1, 1, 1]} : vector<18x18x128xbf16> to vector<16x16x128xbf16>
    %27 = vector.shape_cast %26 : vector<16x16x128xbf16> to vector<256x128xbf16>
    %28 = vector.extract_strided_slice %13 {offsets = [2, 1, 0], sizes = [16, 16, 128], strides = [1, 1, 1]} : vector<18x18x128xbf16> to vector<16x16x128xbf16>
    %29 = vector.shape_cast %28 : vector<16x16x128xbf16> to vector<256x128xbf16>
    %30 = vector.extract_strided_slice %13 {offsets = [2, 2, 0], sizes = [16, 16, 128], strides = [1, 1, 1]} : vector<18x18x128xbf16> to vector<16x16x128xbf16>
    %31 = vector.shape_cast %30 : vector<16x16x128xbf16> to vector<256x128xbf16>
    %32 = tpu.concatenate %15, %17, %19, %21, %23, %25, %27, %29, %31 in 1 : vector<256x128xbf16>, vector<256x128xbf16>, vector<256x128xbf16>, vector<256x128xbf16>, vector<256x128xbf16>, vector<256x128xbf16>, vector<256x128xbf16>, vector<256x128xbf16>, vector<256x128xbf16> -> vector<256x1152xbf16>
    %cst_26 = arith.constant dense<0.000000e+00> : vector<256x128xf32>
    %33 = tpu.matmul %32, %10, %cst_26 {dimension_numbers = #tpu.dot_dimension_numbers<[1], [0], [0], [1], [0, 0, 1, 1], [], []>} : vector<256x1152xbf16>, vector<1152x128xbf16>, vector<256x128xf32> -> vector<256x128xf32>
    %34 = vector.broadcast %9 : vector<1x128xf32> to vector<256x128xf32>
    %35 = arith.addf %33, %34 : vector<256x128xf32>
    %36 = vector.shape_cast %35 : vector<256x128xf32> to vector<1x16x16x128xf32>
    %37 = arith.truncf %36 : vector<1x16x16x128xf32> to vector<1x16x16x128xbf16>
    %c0_27 = arith.constant 0 : index
    %c0_28 = arith.constant 0 : index
    %c0_29 = arith.constant 0 : index
    %c0_30 = arith.constant 0 : index
    %38 = vector.load %arg4[%c0_27, %c0_28, %c0_29, %c0_30] : memref<1x16x16x128xbf16, #tpu.memory_space<vmem>>, vector<1x16x16x128xbf16>
    tpu.vector_store %arg4[%c0_27, %c0_28, %c0_29, %c0_30], %37 {strides = array<i32>} : memref<1x16x16x128xbf16, #tpu.memory_space<vmem>>, vector<1x16x16x128xbf16>,
    %cst_31 = arith.constant dense<0.000000e+00> : vector<128xf32>
    %39 = vector.multi_reduction <add>, %35, %cst_31 [0] : vector<256x128xf32> to vector<128xf32>
    %40 = vector.shape_cast %39 : vector<128xf32> to vector<1x128xf32>
    %41 = arith.addf %11, %40 : vector<1x128xf32>
    %42 = arith.mulf %35, %35 : vector<256x128xf32>
    %cst_32 = arith.constant dense<0.000000e+00> : vector<128xf32>
    %43 = vector.multi_reduction <add>, %42, %cst_32 [0] : vector<256x128xf32> to vector<128xf32>
    %44 = vector.shape_cast %43 : vector<128xf32> to vector<1x128xf32>
    %45 = arith.addf %12, %44 : vector<1x128xf32>
    %46 = tpu.concatenate %41, %45 in 0 : vector<1x128xf32>, vector<1x128xf32> -> vector<2x128xf32>
    %47 = vector.shape_cast %46 : vector<2x128xf32> to vector<1x2x128xf32>
    %c0_33 = arith.constant 0 : index
    %c0_34 = arith.constant 0 : index
    %c0_35 = arith.constant 0 : index
    %48 = vector.load %arg5[%c0_33, %c0_34, %c0_35] : memref<1x2x128xf32, #tpu.memory_space<vmem>>, vector<1x2x128xf32>
    tpu.vector_store %arg5[%c0_33, %c0_34, %c0_35], %47 {strides = array<i32>} : memref<1x2x128xf32, #tpu.memory_space<vmem>>, vector<1x2x128xf32>,
    return
  }
  func.func @transform_0(%arg0: i32) -> (i32, i32, i32, i32) {
    %c0_i32 = arith.constant 0 : i32
    %c0_i32_0 = arith.constant 0 : i32
    %c0_i32_1 = arith.constant 0 : i32
    %c0_i32_2 = arith.constant 0 : i32
    return %arg0, %c0_i32, %c0_i32_0, %c0_i32_1 : i32, i32, i32, i32
  }
  func.func @transform_1(%arg0: i32) -> (i32, i32) {
    %c0_i32 = arith.constant 0 : i32
    %c0_i32_0 = arith.constant 0 : i32
    %c0_i32_1 = arith.constant 0 : i32
    return %c0_i32, %c0_i32_0 : i32, i32
  }
  func.func @transform_2(%arg0: i32) -> (i32, i32) {
    %c0_i32 = arith.constant 0 : i32
    %c0_i32_0 = arith.constant 0 : i32
    %c0_i32_1 = arith.constant 0 : i32
    return %c0_i32, %c0_i32_0 : i32, i32
  }
  func.func @transform_3(%arg0: i32) -> (i32, i32, i32, i32) {
    %c0_i32 = arith.constant 0 : i32
    %c0_i32_0 = arith.constant 0 : i32
    %c0_i32_1 = arith.constant 0 : i32
    %c0_i32_2 = arith.constant 0 : i32
    return %arg0, %c0_i32, %c0_i32_0, %c0_i32_1 : i32, i32, i32, i32
  }
  func.func @transform_4(%arg0: i32) -> (i32, i32, i32) {
    %c0_i32 = arith.constant 0 : i32
    %c0_i32_0 = arith.constant 0 : i32
    %c0_i32_1 = arith.constant 0 : i32
    return %arg0, %c0_i32, %c0_i32_0 : i32, i32, i32
  }
}

</mosaic_0001>

<bundles_post_ra>
// kernel: tpu_custom_call.1
= control target key start
LH: loop header
LB: loop body
LE: loop exit
PB: predicated region body
PF: predicated region fallthrough
CT: control target
= control target key end

     0   :  { %10 = vsyncpa [#allocation4], 0  ;;  %s6325_s0 = inlined_call_operand.hbm [shape: bf16[2,16,16,128], index: 0, kind: input, shape index: {}]   ;;  %s6326_s1 = inlined_call_operand.hbm [shape: bf16[1152,128], index: 1, kind: input, shape index: {}]   ;;  %s6327_s2 = inlined_call_operand.vmem [shape: f32[1,128], index: 2, kind: input, shape index: {}]   ;;  %s6328_s3 = inlined_call_operand.hbm [shape: bf16[2,16,16,128], index: 3, kind: output, shape index: {0}]   ;;  %s6329_s4 = inlined_call_operand.hbm [shape: f32[2,2,128], index: 4, kind: output, shape index: {1}]  }
   0x1   :  { %12 = vsyncpa [#allocation4 + $0x1], 0 }
   0x2   :  { %13 = vsyncpa [#allocation7], 0 }
   0x3   :  { %14 = vsyncpa [#allocation5], 0 }
   0x4   :  { %16 = vsyncpa [#allocation5 + $0x1], 0 }
   0x5   :  { %17 = vsyncpa [#allocation10], 0 }
   0x6   :  { %19 = vsyncpa [#allocation10 + $0x1], 0  ;;  %s4744_s15 = smov 0   ;;  %s4746_s16 = smov 0  }
   0x7   :  { %s4748_s17 = smov 0   ;;  %s4750_s18 = smov 0  }
   0x8 LB: > { %s4765_s19 = sadd.s32 4294967295, %s4708_s18   ;;  %s3526_s20 = sadd.s32 4294967294, %s4708_s18   ;;  %s4708_s18 = sphi %s4750_s18, %s6439_s18   ;;  %s4704_s17 = sphi %s4748_s17, %s6438_s17   ;;  %s4700_s16 = sphi %s4746_s16, %s6437_s16   ;;  %s4696_s15 = sphi %s4744_s15, %s6436_s15  }
   0x9   : > { %p45_p0 = scmp.ne.s32.totalorder %s4700_s16, %s4696_s15  ;;  %p6330_p1 = scmp.eq.s32.totalorder %s4765_s19, 0 }
   0xa   : > { %p117_p3 = scmp.eq.s32.totalorder %s3526_s20, 1  ;;  %p3527_p5 = scmp.ge.s32.totalorder %s4708_s18, 1 }
   0xb   : > { %p4774_p4 = por %p6330_p1, %p45_p0  ;;  %p150_p7 = scmp.lt.s32.totalorder %s4708_s18, 3 }
   0xc   : > { %p4779_p6 = por %p117_p3, %p45_p0  ;;  %s4710_s24 = smov [#allocation6]  }
   0xd   : > { %s6346_s21 = scalar_select %p4774_p4, 1, 0 }
   0xe   : > { %s6347_s22 = scalar_select %p4779_p6, 1, 0 }
   0xf   : > { %p4784_p8 = pnand %p3527_p5, %p150_p7  ;;  %s162_s25 = sshll.u32 %s4710_s24, 4  ;;  %s163_s25 = int_to_ptr.vmem [resolvable:$true] %s162_s25 }
  0x10   : > { %s4798_s27 = sadd.s32 1, %s4708_s18   ;;  %s32_s28 = sadd.s32 1, %s4704_s17 }
  0x11   : > { %s6348_s23 = scalar_select %p4784_p8, 1, 0 }
  0x12   : > { %p4397_p9 = pneg %p4784_p8  ;;  %s29_s29 = ssub.s32 %s4708_s18, %s4798_s27 }
  0x13   : > { %s4567_s30 = scalar_lea.vmem %s163_s25, 9216  ;;  %p4575_p5 = scmp.lt.s32.totalorder %s163_s25, %s163_s25 }
  0x14   : > { %p4793_p11 = pnand %p4397_p9, %p6330_p1  ;;  %p4568_p13 = scmp.ne.s32.totalorder %s163_s25, %s4567_s30 }
  0x15   : > { %p4576_p7 = scmp.lt.s32.totalorder %s4567_s30, %s4567_s30 }
  0x16   : > { %p4558_p12 = pneg %p4793_p11 }
  0x17   : > { %p4577_p10 = por %p4576_p7, %p4575_p5 }
  0x18   : > { %p4570_p0 = pnand %p4568_p13, %p4558_p12 }
  0x1a   : > { %p4571_p3 = pneg %p4570_p0 }
  0x1c   : > { %p4578_p2 = pnand %p4577_p10, %p4571_p3 }
  0x1e   : > { %4581 = shalt.err (!%p4578_p2)
}
  0x1f   : > { %s4711_s5 = smov 64   ;;  %s4712_s6 = smov 4  }
  0x20   : > { %4400 = dma.hbm_to_vmem [thread:$0]  (!%p4793_p11), %s6326_s1, 9216, %s163_s25, [#allocation7], %s4711_s5, %s4711_s5, %s4712_s6  }
  0x21   : > { %p30_p2 = scmp.eq.s32.totalorder %s29_s29, 0  ;;  %p39_p9 = scmp.ne.s32.totalorder %s4704_s17, %s4700_s16 }
  0x22   : > { %p40_p10 = scmp.eq.s32.totalorder %s4708_s18, 0  ;;  %p4413_p12 = scmp.lt.s32.totalorder %s4708_s18, 2 }
  0x23   : > { %s4818_s9 = scalar_select %p30_p2, %s4704_s17, %s32_s28  }
  0x24   : > { %p41_p13 = por %p40_p10, %p39_p9  ;;  %p6350_p0 = scmp.eq.s32.totalorder %s4765_s19, 1 }
  0x25   : > { %s179_s11 = sand.u32 1, %s4704_s17   ;;  %s3722_s12 = sshll.u32 %s4708_s18, 11 }
  0x26   : > { %p4822_p3 = por %p6350_p0, %p39_p9  ;;  %s3530_s13 = sshll.u32 %s179_s11, 7 }
  0x27   : > { %s4831_s24 = scalar_lea.hbm %s6325_s0, %s3722_s12  ;;  %s183_s25 = scalar_lea.vmem [#allocation3], %s3530_s13 }
  0x28   : > { %s6351_s10 = scalar_select %p4822_p3, 1, 0 }
  0x29   : > { %s190_s26 = sshll.u32 %s183_s25, 4  ;;  %p4833_p11 = pnand %p4413_p12, %p41_p13  ;;  %s4837_s26 = int_to_ptr.vmem [resolvable:$true] %s190_s26 }
  0x2a   : > { %s4839_s29 = scalar_lea.sflag [#allocation4], %s179_s11  ;;  %s4582_s30 = scalar_lea.hbm %s4831_s24, 2048 }
  0x2b   : > { %p4583_p5 = scmp.ne.s32.totalorder %s4831_s24, %s4582_s30  ;;  %p4584_p7 = pneg %p4833_p11 }
  0x2c   : > { %s4587_s12 = scalar_lea.hbm %s6325_s0, 4096  ;;  %p4588_p10 = scmp.lt.s32.totalorder %s4831_s24, %s6325_s0 }
  0x2d   : > { %p4585_p2 = pnand %p4584_p7, %p4583_p5  ;;  %p4589_p12 = scmp.lt.s32.totalorder %s4587_s12, %s4582_s30 }
  0x2f   : > { %p4586_p9 = pneg %p4585_p2  ;;  %p4590_p13 = por %p4589_p12, %p4588_p10 }
  0x31   : > { %p4591_p0 = pnand %p4590_p13, %p4586_p9 }
  0x33   : > { %4594 = shalt.err (!%p4591_p0)
}
  0x34   : > { %s4595_s11 = scalar_lea.vmem %s4837_s26, 2048  ;;  %s4713_s20 = smov [#allocation3]  }
  0x35   : > { %p4596_p1 = scmp.ne.s32.totalorder %s4837_s26, %s4595_s11  ;;  %s4600_s25 = sshll.u32 %s4713_s20, 4  ;;  %s4601_s25 = int_to_ptr.vmem [resolvable:$false] %s4600_s25 }
  0x36   : > { %s4602_s7 = scalar_lea.vmem %s4601_s25, 4096  ;;  %p4603_p2 = scmp.lt.s32.totalorder %s4837_s26, %s4601_s25 }
  0x37   : > { %p4598_p6 = pnand %p4596_p1, %p4584_p7  ;;  %p4604_p3 = scmp.lt.s32.totalorder %s4602_s7, %s4595_s11 }
  0x39   : > { %p4599_p5 = pneg %p4598_p6  ;;  %p4605_p4 = por %p4604_p3, %p4603_p2 }
  0x3b   : > { %p4606_p8 = pnand %p4605_p4, %p4599_p5 }
  0x3d   : > { %4609 = shalt.err (!%p4606_p8)
}
  0x3e   : > { %4404 = dma.hbm_to_vmem [thread:$0]  (!%p4833_p11), %s4831_s24, 2048, %s4837_s26, %s4839_s29, %s4711_s5, %s4711_s5, %s4712_s6  }
  0x3f   : > { %p6353_p1 = scmp.ne.s32.totalorder %s6348_s23, 0 }
  0x41   : > { %202 = sbr.rel (%p6353_p1) target bundleno = 693 (0x2b5), region = 32 }
  0x46   : > { %s4866_s30 = sand.u32 1, %s4700_s16   ;;  %p6354_p4 = scmp.ne.s32.totalorder %s6346_s21, 0 }
  0x47   : > { %s3534_s8 = sshll.u32 %s4866_s30, 7  ;;  %s205_s12 = scalar_lea.sflag [#allocation4], %s4866_s30 }
  0x48   : > { %s4872_s28 = scalar_lea.vmem [#allocation3], %s3534_s8 }
  0x49   : > { %4679 = dma.done.wait (%p6354_p4), %s205_s12, 2048  }
  0x4a   : > { %4681 = vsyncadd (%p6354_p4), %s205_s12, 4294965248  ;;  %p6355_p6 = scmp.eq.s32.totalorder %s4765_s19, 0 }
  0x4c   : > { %4683 = dma.done.wait (%p6355_p6), [#allocation7], 9216   ;;  %p6356_p8 = pmov %p6355_p6 }
  0x4d   : > { %v4714_v0 = vmov 0   ;;  %v4454_v1 = vld [vmem:[#allocation6 + $0x78] sm:$0xff]   ;;  %v4456_v3 = vld [vmem:[#allocation6 + $0x70] sm:$0xff]   ;;  %v4458_v5 = vld [vmem:[#allocation6 + $0x68] sm:$0xff]   ;;  %vm251_vm0 = vsmask.f32 256 }
  0x4e   : > { %4685 = vsyncadd (%p6356_p8), [#allocation7], 4294958080  ;;  %243 = vst [vmem:[#allocation2] sm:$0xf] %v4714_v0  ;;  %v4455_v2 = vld [vmem:[#allocation6 + $0x38] sm:$0xff]   ;;  %3851 = vmatprep.subr.bf16.mxu0 %v4454_v1  ;;  %4371 = vmatprep.subr.bf16.mxu1 %v4454_v1  ;;  %v4457_v4 = vld [vmem:[#allocation6 + $0x30] sm:$0xff]  }
  0x4f   : > { %244 = vst [vmem:[#allocation2 + $0x4] sm:$0xf] %v4714_v0  ;;  %245 = vst [vmem:[#allocation2 + $0x8] sm:$0x1] %v4714_v0  ;;  %3852 = vmatpush3.bf16.msra.mxu0 %v4455_v2  ;;  %4379 = vmatpush3.bf16.msra.mxu1 %v4455_v2  ;;  %v4459_v6 = vld [vmem:[#allocation6 + $0x28] sm:$0xff]   ;;  %vm250_vm1 = vcmask 1040384  }
  0x50   : > { %247 = vst [vmem:[#allocation2 + $0xcc] sm:$0xf] %v4714_v0  ;;  %248 = vst [vmem:[#allocation2 + $0xd0] sm:$0xf] %v4714_v0  ;;  %3853 = vmatprep.subr.bf16.mxu0 %v4456_v3  ;;  %4372 = vmatprep.subr.bf16.mxu1 %v4456_v3  ;;  %v4460_v7 = vld [vmem:[#allocation6 + $0x60] sm:$0xff]   ;;  %v4462_v10 = vld [vmem:[#allocation6 + $0x58] sm:$0xff]  }
  0x51   : > { %249 = vst [vmem:[#allocation2 + $0xd4] sm:$0x1] %v4714_v0  ;;  %vm4884_vm2 = vmand %vm250_vm1, %vm251_vm0  ;;  %vm307_vm3 = vsmask.f32 7938  ;;  %v4461_v9 = vld [vmem:[#allocation6 + $0x20] sm:$0xff]   ;;  %v4463_v12 = vld [vmem:[#allocation6 + $0x18] sm:$0xff]  }
  0x52   : > { %vm4890_vm4 = vmand %vm250_vm1, %vm307_vm3  ;;  %vm395_vm5 = vsmask.f32 4368  ;;  %v4464_v13 = vld [vmem:[#allocation6 + $0x50] sm:$0xff]   ;;  %vm1031_vm6 = vsmask.f32 3328  ;;  %v4466_v23 = vld [vmem:[#allocation6 + $0x48] sm:$0xff]  }
  0x53   : > { %3854 = vmatpush3.bf16.msra.mxu0 %v4457_v4  ;;  %4380 = vmatpush3.bf16.msra.mxu1 %v4457_v4  ;;  %v4465_v17 = vld [vmem:[#allocation6 + $0x10] sm:$0xff]   ;;  %vm1032_vm7 = vsmask.f32 7440  ;;  %v289_v22 = vld [vmem:[#allocation2 + $0x90] sm:$0x1]  ;;  %vm718_vm8 = vcmask 1043456   ;;  %vm4913_vm10 = vmor %vm251_vm0, %vm395_vm5 }
  0x54   : > { %3855 = vmatprep.subr.bf16.mxu0 %v4458_v5  ;;  %4373 = vmatprep.subr.bf16.mxu1 %v4458_v5  ;;  %v290_v24 = vsel %vm4884_vm2, 0, %v289_v22  ;;  %v345_v25 = vld [vmem:[#allocation2 + $0x98] sm:$0x1]  ;;  %v385_v26 = vld [vmem:[%s4872_s28 + $0x58] sm:$0xf]  ;;  %vm1466_vm9 = vcmask 1042432   ;;  %vm4920_vm12 = vmand %vm718_vm8, %vm307_vm3 }
  0x55   : > { %v253_v14 = vld [vmem:[#allocation2] sm:$0x1]  ;;  %291 = vst [vmem:[#allocation2 + $0x90] sm:$0x1] %v290_v24  ;;  %v346_v29 = vsel %vm4890_vm4, 0, %v345_v25  ;;  %v585_v31 = vshrl.u32 %v385_v26, 16  ;;  %vm4941_vm14 = vmor %vm1031_vm6, %vm1032_vm7 }
  0x56   : > { %v309_v15 = vld [vmem:[#allocation2 + $0x8] sm:$0x1]  ;;  %v4894_v16 = vld [vmem:[#allocation2 + $0x4] sm:$0xf]  ;;  %v254_v18 = vsel %vm4884_vm2, 0, %v253_v14  ;;  %v588_v33 = vshll.u32 %v385_v26, 16 }
  0x57   : > { %3856 = vmatpush3.bf16.msra.mxu0 %v4459_v6  ;;  %4381 = vmatpush3.bf16.msra.mxu1 %v4459_v6  ;;  %v310_v19 = vsel %vm4890_vm4, 0, %v309_v15  ;;  %v1044_v20 = vshll.u32 %v4894_v16, 16  ;;  %v1048_v21 = vshrl.u32 %v4894_v16, 16  ;;  %255 = vst [vmem:[#allocation2] sm:$0x1] %v254_v18  ;;  %v1471_v32 = vrot.slane %v4894_v16, 5 }
  0x58   : > { %3857 = vmatprep.subr.bf16.mxu0 %v4460_v7  ;;  %4374 = vmatprep.subr.bf16.mxu1 %v4460_v7  ;;  %311 = vst [vmem:[#allocation2 + $0x8] sm:$0x1] %v310_v19  ;;  %v386_v30 = vld [vmem:[%s4872_s28 + $0x5c] sm:$0xf]  ;;  %347 = vst [vmem:[#allocation2 + $0x98] sm:$0x1] %v346_v29 }
  0x59   : > { %v4905_v27 = vrot.slane %v1044_v20, 5  ;;  %v1050_v28 = vrot.slane %v1048_v21, 4  ;;  %v593_v34 = vshrl.u32 %v386_v30, 16  ;;  %v596_v35 = vshll.u32 %v386_v30, 16  ;;  %v4467_v39 = vld [vmem:[#allocation6 + $0x8] sm:$0xff]   ;;  %v4468_v40 = vld [vmem:[#allocation6 + $0x40] sm:$0xff]  }
  0x5a   : > { %v587_v36 = vrot.slane %v585_v31, 7  ;;  %vm1467_vm11 = vcmask 1046532   ;;  %v1473_v44 = vrot.slane %v1471_v32, 4  ;;  %v4469_v48 = vld [vmem:[#allocation6] sm:$0xff]   ;;  %v4472_v57 = vld [vmem:[#allocation6 + $0xf8] sm:$0xff]   ;;  %v4533_v47 = vld [vmem:[#allocation6 + $0x228] sm:$0xff]  }
  0x5b   : > { %3858 = vmatpush3.bf16.msra.mxu0 %v4461_v9  ;;  %4382 = vmatpush3.bf16.msra.mxu1 %v4461_v9  ;;  %v595_v38 = vrot.slane %v593_v34, 7  ;;  %v1051_v41 = vor.u32 %v1050_v28, %v4905_v27  ;;  %vm4930_vm13 = vmor %vm1466_vm9, %vm1467_vm11  ;;  %v4473_v4 = vld [vmem:[#allocation6 + $0x178] sm:$0xff]   ;;  %v256_v6 = vld [vmem:[#allocation2 + $0xc] sm:$0x1]  ;;  %s6125_s5 = scalar_lea.vmem [#allocation8], %s3534_s8  ;;  %s3755_s6 = sshll.u32 %s4765_s19, 11 }
  0x5c   : > { %3859 = vmatprep.subr.bf16.mxu0 %v4462_v10  ;;  %4375 = vmatprep.subr.bf16.mxu1 %v4462_v10  ;;  %v590_v42 = vor.u32 %v588_v33, %v587_v36  ;;  %v591_v43 = vrot.slane %v587_v36, 4  ;;  %v797_v56 = vld [vmem:[#allocation2 + $0x90] sm:$0xf]  ;;  %v312_v7 = vld [vmem:[#allocation2 + $0x14] sm:$0x1]  ;;  %s3398_s24 = sshll.u32 %s6125_s5, 4  ;;  %s6253_s13 = scalar_lea.hbm %s6328_s3, %s3755_s6  ;;  %s6255_s24 = int_to_ptr.vmem [resolvable:$true] %s3398_s24 }
  0x5d   : > { %v598_v45 = vor.u32 %v596_v35, %v595_v38  ;;  %v600_v46 = vrot.slane %v595_v38, 4  ;;  %v1052_v58 = vrot.slane %v1051_v41, 4  ;;  %v313_v14 = vsel %vm4890_vm4, 0, %v312_v7  ;;  %v363_v15 = vld [vmem:[%s4872_s28] sm:$0xf]  ;;  %s3380_s14 = scalar_lea.sflag [#allocation5], %s4866_s30 }
  0x5e   : > { %v4924_v49 = vld [vmem:[#allocation2] sm:$0xf]  ;;  %v798_v61 = vsel %vm4920_vm12, %v590_v42, %v797_v56  ;;  %314 = vst [vmem:[#allocation2 + $0x14] sm:$0x1] %v313_v14  ;;  %v398_v18 = vshrl.u32 %v363_v15, 16  ;;  %v401_v19 = vshll.u32 %v363_v15, 16 }
  0x5f   : > { %3860 = vmatpush3.bf16.msra.mxu0 %v4463_v12  ;;  %4383 = vmatpush3.bf16.msra.mxu1 %v4463_v12  ;;  %v979_v50 = vld [vmem:[#allocation2 + $0x8] sm:$0x1]  ;;  %v1035_v51 = vshrl.u32 %v4924_v49, 16  ;;  %v1038_v52 = vshll.u32 %v4924_v49, 16  ;;  %v3538_v55 = vrot.slane %v4924_v49, 9  ;;  %v599_v60 = vsel %vm4913_vm10, %v591_v43, %v598_v45  ;;  %v4475_v42 = vld [vmem:[#allocation6 + $0x138] sm:$0xff]  }
  0x60   : > { %3861 = vmatprep.subr.bf16.mxu0 %v4464_v13  ;;  %4376 = vmatprep.subr.bf16.mxu1 %v4464_v13  ;;  %v1054_v53 = vshll.u32 %v979_v50, 16  ;;  %v1474_v59 = vrot.slane %v979_v50, 5  ;;  %v801_v62 = vld [vmem:[#allocation2 + $0x98] sm:$0x1]  ;;  %799 = vst [vmem:[#allocation2 + $0x90] sm:$0xf] %v798_v61  ;;  %v3556_v12 = vcombine.low %v4924_v49, %v4894_v16 }
  0x61   : > { %v1037_v0 = vrot.slane %v1035_v51, 4  ;;  %v1040_v1 = vrot.slane %v1038_v52, 5  ;;  %800 = vst [vmem:[#allocation2 + $0x94] sm:$0xf] %v599_v60  ;;  %v802_v3 = vsel %vm4884_vm2, %v600_v46, %v801_v62  ;;  %v4953_v9 = vsel %vm4930_vm13, %v3538_v55, %v1471_v32  ;;  %v292_v22 = vld [vmem:[#allocation2 + $0x9c] sm:$0x1] }
  0x62   : > { %v1056_v2 = vrot.slane %v1054_v53, 5  ;;  %v4949_v5 = vsel %vm4930_vm13, %v1473_v44, %v1474_v59  ;;  %803 = vst [vmem:[#allocation2 + $0x98] sm:$0x1] %v802_v3  ;;  %v257_v13 = vsel %vm4884_vm2, 0, %v256_v6  ;;  %v293_v24 = vsel %vm4884_vm2, 0, %v292_v22  ;;  %s4610_s11 = scalar_lea.vmem %s6255_s24, 2048 }
  0x63   : > { %3862 = vmatpush3.bf16.msra.mxu0 %v4465_v17  ;;  %4384 = vmatpush3.bf16.msra.mxu1 %v4465_v17  ;;  %v1041_v10 = vor.u32 %v1040_v1, %v1037_v0  ;;  %v364_v17 = vld [vmem:[%s4872_s28 + $0x4] sm:$0xf]  ;;  %258 = vst [vmem:[#allocation2 + $0xc] sm:$0x1] %v257_v13  ;;  %v348_v25 = vld [vmem:[#allocation2 + $0xa4] sm:$0x1]  ;;  %v3588_v28 = vcombine.low %v4953_v9, %v4949_v5  ;;  %p4611_p3 = scmp.ne.s32.totalorder %s6255_s24, %s4610_s11 }
  0x64   : > { %3863 = vmatprep.subr.bf16.mxu0 %v4466_v23  ;;  %4377 = vmatprep.subr.bf16.mxu1 %v4466_v23  ;;  %v406_v20 = vshrl.u32 %v364_v17, 16  ;;  %v409_v21 = vshll.u32 %v364_v17, 16  ;;  %v1057_v23 = vsel %vm4941_vm14, %v1052_v58, %v1056_v2  ;;  %v387_v26 = vld [vmem:[%s4872_s28 + $0x60] sm:$0xf]  ;;  %v400_v29 = vrot.slane %v398_v18, 7  ;;  %v4483_v2 = vld [vmem:[#allocation6 + $0x170] sm:$0xff]  }
  0x65   : > { %v1042_v16 = vrot.slane %v1041_v10, 4  ;;  %294 = vst [vmem:[#allocation2 + $0x9c] sm:$0x1] %v293_v24  ;;  %v349_v31 = vsel %vm4890_vm4, 0, %v348_v25  ;;  %v388_v32 = vld [vmem:[%s4872_s28 + $0x64] sm:$0xf] }
  0x66   : > { %v408_v30 = vrot.slane %v406_v20, 7  ;;  %v602_v33 = vshrl.u32 %v387_v26, 16  ;;  %350 = vst [vmem:[#allocation2 + $0xa4] sm:$0x1] %v349_v31  ;;  %v605_v35 = vshll.u32 %v387_v26, 16  ;;  %v610_v36 = vshrl.u32 %v388_v32, 16 }
  0x67   : > { %3864 = vmatpush3.bf16.msra.mxu0 %v4467_v39  ;;  %4385 = vmatpush3.bf16.msra.mxu1 %v4467_v39  ;;  %v1047_v34 = vsel %vm4941_vm14, %v1042_v16, %v4905_v27  ;;  %v613_v38 = vshll.u32 %v388_v32, 16  ;;  %v403_v43 = vor.u32 %v401_v19, %v400_v29  ;;  %v404_v44 = vrot.slane %v400_v29, 4  ;;  %v724_v62 = vld [vmem:[#allocation2 + $0x14] sm:$0x1]  ;;  %v4476_v25 = vld [vmem:[#allocation6 + $0xf0] sm:$0xff]   ;;  %p6433_p11 = scmp.ne.s32.totalorder %s6351_s10, 0 }
  0x68   : > { %3865 = vmatprep.subr.bf16.mxu0 %v4468_v40  ;;  %4378 = vmatprep.subr.bf16.mxu1 %v4468_v40  ;;  %v3572_v39 = vcombine.low %v1047_v34, %v1057_v23  ;;  %v1013_v40 = vld [vmem:[#allocation2 + $0x90] sm:$0xf]  ;;  %v1014_v41 = vld [vmem:[#allocation2 + $0x94] sm:$0xf]  ;;  %v411_v45 = vor.u32 %v409_v21, %v408_v30  ;;  %v413_v53 = vrot.slane %v408_v30, 4  ;;  %v604_v0 = vrot.slane %v602_v33, 7 }
  0x69   : > { %v1015_v46 = vld [vmem:[#allocation2 + $0x98] sm:$0x1]  ;;  %v1326_v49 = vshll.u32 %v1013_v40, 16  ;;  %v1332_v50 = vshll.u32 %v1014_v41, 16  ;;  %v1336_v51 = vshrl.u32 %v1014_v41, 16  ;;  %v612_v1 = vrot.slane %v610_v36, 7  ;;  %p4612_p7 = pnand %p4611_p3, %p6433_p11 }
  0x6a   : > { %2335 = vmatprep.mubr.bf16.mxu0 %v3572_v39  ;;  %v1342_v52 = vshll.u32 %v1015_v46, 16  ;;  %v412_v27 = vsel %vm4913_vm10, %v404_v44, %v411_v45  ;;  %v720_v59 = vld [vmem:[#allocation2 + $0xc] sm:$0xf]  ;;  %v725_v6 = vsel %vm4884_vm2, %v413_v53, %v724_v62  ;;  %v607_v10 = vor.u32 %v605_v35, %v604_v0  ;;  %v4474_v19 = vld [vmem:[#allocation6 + $0xb8] sm:$0xff]   ;;  %v259_v31 = vld [vmem:[#allocation2 + $0x18] sm:$0x1] }
  0x6b   : > { %3866 = vmatpush3.bf16.msra.mxu0 %v4469_v48  ;;  %4386 = vmatpush3.bf16.msra.mxu1 %v4469_v48  ;;  %v1323_v48 = vshrl.u32 %v1013_v40, 16  ;;  %v1328_v56 = vrot.slane %v1326_v49, 5  ;;  %v1338_v58 = vrot.slane %v1336_v51, 4  ;;  %723 = vst [vmem:[#allocation2 + $0x10] sm:$0xf] %v412_v27  ;;  %v721_v61 = vsel %vm4920_vm12, %v403_v43, %v720_v59  ;;  %v4485_v26 = vld [vmem:[#allocation6 + $0x130] sm:$0xff]   ;;  %p4613_p9 = pneg %p4612_p7 }
  0x6c   : > { %3963 = vmatprep.subr.bf16.mxu1 %v4472_v57  ;;  %4075 = vmatprep.subr.bf16.mxu0 %v4473_v4  ;;  %v1334_v57 = vrot.slane %v1332_v50, 5  ;;  %v1344_v60 = vrot.slane %v1342_v52, 5  ;;  %722 = vst [vmem:[#allocation2 + $0xc] sm:$0xf] %v721_v61  ;;  %v804_v7 = vld [vmem:[#allocation2 + $0x9c] sm:$0xf]  ;;  %v615_v13 = vor.u32 %v613_v38, %v612_v1  ;;  %v4992_v24 = vcombine.low %v1013_v40, %v1014_v41 }
  0x6d   : > { %v1325_v55 = vrot.slane %v1323_v48, 4  ;;  %726 = vst [vmem:[#allocation2 + $0x14] sm:$0x1] %v725_v6  ;;  %v617_v14 = vrot.slane %v612_v1, 4  ;;  %v808_v15 = vld [vmem:[#allocation2 + $0xa4] sm:$0x1]  ;;  %v805_v21 = vsel %vm4920_vm12, %v607_v10, %v804_v7 }
  0x6e   : > { %2336 = vmatmul.mubr.bf16.vlgmr.msra.gmra.mxu0 %v3556_v12  ;;  %v1339_v4 = vor.u32 %v1338_v58, %v1334_v57  ;;  %v608_v12 = vrot.slane %v604_v0, 4  ;;  %806 = vst [vmem:[#allocation2 + $0x9c] sm:$0xf] %v805_v21  ;;  %v315_v32 = vld [vmem:[#allocation2 + $0x20] sm:$0x1]  ;;  %v260_v35 = vsel %vm4884_vm2, 0, %v259_v31 }
  0x6f   : > { %4076 = vmatpush3.bf16.msra.mxu0 %v4475_v42  ;;  %v1329_v3 = vor.u32 %v1328_v56, %v1325_v55  ;;  %v809_v22 = vsel %vm4884_vm2, %v617_v14, %v808_v15  ;;  %v316_v36 = vsel %vm4890_vm4, 0, %v315_v32  ;;  %v365_v38 = vld [vmem:[%s4872_s28 + $0x8] sm:$0xf]  ;;  %261 = vst [vmem:[#allocation2 + $0x18] sm:$0x1] %v260_v35  ;;  %v4477_v49 = vld [vmem:[#allocation6 + $0xb0] sm:$0xff]  }
  0x70   : > { %4077 = vmatprep.subr.bf16.mxu0 %v4483_v2  ;;  %v1340_v18 = vrot.slane %v1339_v4, 4  ;;  %v616_v20 = vsel %vm4913_vm10, %v608_v12, %v615_v13  ;;  %810 = vst [vmem:[#allocation2 + $0xa4] sm:$0x1] %v809_v22  ;;  %317 = vst [vmem:[#allocation2 + $0x20] sm:$0x1] %v316_v36  ;;  %v415_v41 = vshrl.u32 %v365_v38, 16 }
  0x71   : > { %v1330_v17 = vrot.slane %v1329_v3, 4  ;;  %807 = vst [vmem:[#allocation2 + $0xa0] sm:$0xf] %v616_v20  ;;  %v366_v40 = vld [vmem:[%s4872_s28 + $0xc] sm:$0xf]  ;;  %v418_v42 = vshll.u32 %v365_v38, 16 }
  0x72   : > { %v1345_v23 = vsel %vm4941_vm14, %v1340_v18, %v1344_v60  ;;  %v4996_v30 = vld [vmem:[#allocation2 + $0x10] sm:$0xf]  ;;  %v5015_v51 = vrot.slane %v415_v41, 7  ;;  %v4480_v55 = vld [vmem:[#allocation6 + $0xe8] sm:$0xff]   ;;  %v423_v56 = vshrl.u32 %v366_v40, 16  ;;  %v426_v62 = vshll.u32 %v366_v40, 16 }
  0x73   : > { %v1335_v16 = vsel %vm4941_vm14, %v1330_v17, %v1334_v57  ;;  %v1068_v33 = vshll.u32 %v4996_v30, 16  ;;  %v1072_v34 = vshrl.u32 %v4996_v30, 16  ;;  %4078 = vmatpush3.bf16.msra.mxu0 %v4485_v26  ;;  %v5006_v39 = vld [vmem:[#allocation2 + $0xc] sm:$0xf]  ;;  %v295_v0 = vld [vmem:[#allocation2 + $0xa8] sm:$0x1] }
  0x74   : > { %v4994_v29 = vcombine.low %v1335_v16, %v1345_v23  ;;  %v5010_v43 = vld [vmem:[#allocation2 + $0x14] sm:$0x1]  ;;  %v1059_v44 = vshrl.u32 %v5006_v39, 16  ;;  %v1062_v45 = vshll.u32 %v5006_v39, 16  ;;  %v5023_v60 = vcombine.low %v5006_v39, %v4996_v30  ;;  %v4481_v7 = vld [vmem:[#allocation6 + $0xa8] sm:$0xff]   ;;  %v4482_v22 = vld [vmem:[#allocation6 + $0xe0] sm:$0xff]  }
  0x75   : > { %v1070_v46 = vrot.slane %v1068_v33, 5  ;;  %v1074_v48 = vrot.slane %v1072_v34, 4  ;;  %v1078_v50 = vshll.u32 %v5010_v43, 16  ;;  %v5017_v58 = vld [vmem:[#allocation2 + $0x9c] sm:$0xf]  ;;  %v420_v61 = vor.u32 %v418_v42, %v5015_v51  ;;  %v4495_v41 = vld [vmem:[#allocation6 + $0x168] sm:$0xff]  }
  0x76   : > { %6369 = vst [vmem:[#allocation15_spill] sm:$0xff] %v4994_v29  ;;  %2431 = vmatprep.mubr.bf16.mxu1 %v4994_v29  ;;  %v1061_v52 = vrot.slane %v1059_v44, 4  ;;  %v1064_v27 = vrot.slane %v1062_v45, 5  ;;  %v1347_v4 = vshrl.u32 %v5017_v58, 16  ;;  %v1350_v6 = vshll.u32 %v5017_v58, 16  ;;  %v4484_v31 = vld [vmem:[#allocation6 + $0xa0] sm:$0xff]   ;;  %4079 = vmatprep.subr.bf16.mxu0 %v4495_v41 }
  0x77   : > { %2432 = vmatmul.mubr.bf16.vlgmr.msra.gmra.mxu1 %v4992_v24  ;;  %v1075_v53 = vor.u32 %v1074_v48, %v1070_v46  ;;  %v1080_v57 = vrot.slane %v1078_v50, 5  ;;  %v1018_v3 = vld [vmem:[#allocation2 + $0xa4] sm:$0x1]  ;;  %v421_v14 = vrot.slane %v5015_v51, 4  ;;  %v351_v15 = vld [vmem:[#allocation2 + $0xb0] sm:$0x1] }
  0x78   : > { %3964 = vmatpush3.bf16.msra.mxu1 %v4474_v19  ;;  %v5019_v59 = vld [vmem:[#allocation2 + $0xa0] sm:$0xf]  ;;  %v1065_v1 = vor.u32 %v1064_v27, %v1061_v52  ;;  %v1366_v13 = vshll.u32 %v1018_v3, 16  ;;  %v1349_v20 = vrot.slane %v1347_v4, 4  ;;  %v1352_v21 = vrot.slane %v1350_v6, 5  ;;  %v4537_v29 = vld [vmem:[#allocation6 + $0x180] sm:$0xff]  }
  0x79   : > { %3965 = vmatprep.subr.bf16.mxu1 %v4476_v25  ;;  %v1076_v2 = vrot.slane %v1075_v53, 4  ;;  %v1356_v10 = vshll.u32 %v5019_v59, 16  ;;  %v1360_v12 = vshrl.u32 %v5019_v59, 16  ;;  %v389_v17 = vld [vmem:[%s4872_s28 + $0x68] sm:$0xf]  ;;  %v425_v32 = vrot.slane %v423_v56, 7 }
  0x7a   : > { %v1066_v18 = vrot.slane %v1065_v1, 4  ;;  %v727_v16 = vld [vmem:[#allocation2 + $0x18] sm:$0xf]  ;;  %v1368_v26 = vrot.slane %v1366_v13, 5  ;;  %v731_v33 = vld [vmem:[#allocation2 + $0x20] sm:$0x1]  ;;  %v1353_v35 = vor.u32 %v1352_v21, %v1349_v20 }
  0x7b   : > { %v1081_v19 = vsel %vm4941_vm14, %v1076_v2, %v1080_v57  ;;  %v1358_v23 = vrot.slane %v1356_v10, 5  ;;  %v1362_v25 = vrot.slane %v1360_v12, 4  ;;  %v728_v36 = vsel %vm4920_vm12, %v420_v61, %v727_v16  ;;  %v390_v40 = vld [vmem:[%s4872_s28 + $0x6c] sm:$0xf]  ;;  %v318_v6 = vld [vmem:[#allocation2 + $0x2c] sm:$0x1] }
  0x7c   : > { %3966 = vmatpush3.bf16.msra.mxu1 %v4477_v49  ;;  %v1071_v34 = vsel %vm4941_vm14, %v1066_v18, %v1070_v46  ;;  %v296_v38 = vsel %vm4884_vm2, 0, %v295_v0  ;;  %v428_v45 = vor.u32 %v426_v62, %v425_v32  ;;  %v430_v48 = vrot.slane %v425_v32, 4  ;;  %729 = vst [vmem:[#allocation2 + $0x18] sm:$0xf] %v728_v36  ;;  %v4488_v49 = vld [vmem:[#allocation6 + $0xd8] sm:$0xff]   ;;  %v4490_v20 = vld [vmem:[#allocation6 + $0xd0] sm:$0xff]  }
  0x7d   : > { %3967 = vmatprep.subr.bf16.mxu1 %v4480_v55  ;;  %v5041_v42 = vcombine.low %v1071_v34, %v1081_v19  ;;  %v1363_v44 = vor.u32 %v1362_v25, %v1358_v23  ;;  %297 = vst [vmem:[#allocation2 + $0xa8] sm:$0x1] %v296_v38  ;;  %v1354_v50 = vrot.slane %v1353_v35, 4  ;;  %v352_v46 = vsel %vm4890_vm4, 0, %v351_v15  ;;  %v4489_v0 = vld [vmem:[#allocation6 + $0x98] sm:$0xff]   ;;  %v4491_v34 = vld [vmem:[#allocation6 + $0x90] sm:$0xff]  }
  0x7e   : > { %v619_v51 = vshrl.u32 %v389_v17, 16  ;;  %v622_v52 = vshll.u32 %v389_v17, 16  ;;  %v429_v53 = vsel %vm4913_vm10, %v421_v14, %v428_v45  ;;  %v732_v55 = vsel %vm4884_vm2, %v430_v48, %v731_v33  ;;  %353 = vst [vmem:[#allocation2 + $0xb0] sm:$0x1] %v352_v46  ;;  %v262_v4 = vld [vmem:[#allocation2 + $0x24] sm:$0x1] }
  0x7f   : > { %2343 = vmatprep.mubr.bf16.mxu0 %v5041_v42  ;;  %v1364_v27 = vrot.slane %v1363_v44, 4  ;;  %v627_v56 = vshrl.u32 %v390_v40, 16  ;;  %v1359_v57 = vsel %vm4941_vm14, %v1354_v50, %v1358_v23  ;;  %730 = vst [vmem:[#allocation2 + $0x1c] sm:$0xf] %v429_v53  ;;  %733 = vst [vmem:[#allocation2 + $0x20] sm:$0x1] %v732_v55  ;;  %v5057_v2 = vcombine.low %v5017_v58, %v5019_v59 }
  0x80   : > { %3968 = vmatpush3.bf16.msra.mxu1 %v4481_v7  ;;  %2344 = vmatmul.mubr.bf16.gmra.mxu0 %v5023_v60  ;;  %v621_v61 = vrot.slane %v619_v51, 7  ;;  %v630_v62 = vshll.u32 %v390_v40, 16  ;;  %v4497_v7 = vld [vmem:[#allocation6 + $0x128] sm:$0xff]   ;;  %v263_v14 = vsel %vm4884_vm2, 0, %v262_v4  ;;  %v367_v15 = vld [vmem:[%s4872_s28 + $0x10] sm:$0xf] }
  0x81   : > { %3969 = vmatprep.subr.bf16.mxu1 %v4482_v22  ;;  %v1369_v1 = vsel %vm4941_vm14, %v1364_v27, %v1368_v26  ;;  %v629_v3 = vrot.slane %v627_v56, 7  ;;  %v368_v17 = vld [vmem:[%s4872_s28 + $0x14] sm:$0xf]  ;;  %264 = vst [vmem:[#allocation2 + $0x24] sm:$0x1] %v263_v14  ;;  %v319_v58 = vsel %vm4890_vm4, 0, %v318_v6  ;;  %4080 = vmatpush3.bf16.msra.mxu0 %v4497_v7 }
  0x82   : > { %v5059_v10 = vcombine.low %v1359_v57, %v1369_v1  ;;  %v624_v12 = vor.u32 %v622_v52, %v621_v61  ;;  %v625_v13 = vrot.slane %v621_v61, 4  ;;  %v432_v59 = vshrl.u32 %v367_v15, 16  ;;  %v298_v21 = vld [vmem:[#allocation2 + $0xb4] sm:$0x1]  ;;  %320 = vst [vmem:[#allocation2 + $0x2c] sm:$0x1] %v319_v58 }
  0x83   : > { %v632_v18 = vor.u32 %v630_v62, %v629_v3  ;;  %v634_v19 = vrot.slane %v629_v3, 4  ;;  %v5068_v22 = vld [vmem:[#allocation2 + $0x18] sm:$0xf]  ;;  %v435_v23 = vshll.u32 %v367_v15, 16  ;;  %v440_v25 = vshrl.u32 %v368_v17, 16  ;;  %v4494_v35 = vld [vmem:[#allocation6 + $0xc8] sm:$0xff]  }
  0x84   : > { %3970 = vmatpush3.bf16.msra.mxu1 %v4484_v31  ;;  %6370 = vst [vmem:[#allocation16_spill] sm:$0xff] %v5059_v10  ;;  %2439 = vmatprep.mubr.bf16.mxu1 %v5059_v10  ;;  %v811_v16 = vld [vmem:[#allocation2 + $0xa8] sm:$0xf]  ;;  %v1083_v26 = vshrl.u32 %v5068_v22, 16  ;;  %v1086_v31 = vshll.u32 %v5068_v22, 16  ;;  %v434_v38 = vrot.slane %v432_v59, 7 }
  0x85   : > { %3971 = vmatprep.subr.bf16.mxu1 %v4488_v49  ;;  %2440 = vmatmul.mubr.bf16.gmra.mxu1 %v5057_v2  ;;  %v633_v32 = vsel %vm4913_vm10, %v625_v13, %v632_v18  ;;  %v812_v33 = vsel %vm4920_vm12, %v624_v12, %v811_v16  ;;  %v815_v36 = vld [vmem:[#allocation2 + $0xb0] sm:$0x1]  ;;  %v442_v40 = vrot.slane %v440_v25, 7  ;;  %v443_v41 = vshll.u32 %v368_v17, 16  ;;  %v354_v45 = vld [vmem:[#allocation2 + $0xbc] sm:$0x1] }
  0x86   : > { %813 = vst [vmem:[#allocation2 + $0xa8] sm:$0xf] %v812_v33  ;;  %814 = vst [vmem:[#allocation2 + $0xac] sm:$0xf] %v633_v32  ;;  %v299_v44 = vsel %vm4884_vm2, 0, %v298_v21  ;;  %v1085_v50 = vrot.slane %v1083_v26, 4  ;;  %v816_v51 = vsel %vm4884_vm2, %v634_v19, %v815_v36  ;;  %v437_v62 = vor.u32 %v435_v23, %v434_v38 }
  0x87   : > { %v5079_v48 = vld [vmem:[#allocation2 + $0x1c] sm:$0xf]  ;;  %v5081_v49 = vld [vmem:[#allocation2 + $0x20] sm:$0x1]  ;;  %v1088_v46 = vrot.slane %v1086_v31, 5  ;;  %v445_v1 = vor.u32 %v443_v41, %v442_v40  ;;  %v447_v12 = vrot.slane %v442_v40, 4 }
  0x88   : > { %3972 = vmatpush3.bf16.msra.mxu1 %v4489_v0  ;;  %300 = vst [vmem:[#allocation2 + $0xb4] sm:$0x1] %v299_v44  ;;  %v391_v52 = vld [vmem:[%s4872_s28 + $0x70] sm:$0xf]  ;;  %v1092_v27 = vshll.u32 %v5079_v48, 16  ;;  %v1096_v53 = vshrl.u32 %v5079_v48, 16  ;;  %v5102_v44 = vcombine.low %v5068_v22, %v5079_v48 }
  0x89   : > { %3973 = vmatprep.subr.bf16.mxu1 %v4490_v20  ;;  %v1102_v55 = vshll.u32 %v5081_v49, 16  ;;  %817 = vst [vmem:[#allocation2 + $0xb0] sm:$0x1] %v816_v51  ;;  %v392_v56 = vld [vmem:[%s4872_s28 + $0x74] sm:$0xf]  ;;  %v4496_v57 = vld [vmem:[#allocation6 + $0x88] sm:$0xff]   ;;  %v1089_v61 = vor.u32 %v1088_v46, %v1085_v50 }
  0x8a   : > { %v438_v0 = vrot.slane %v434_v38, 4  ;;  %v4498_v3 = vld [vmem:[#allocation6 + $0xc0] sm:$0xff]   ;;  %v1094_v4 = vrot.slane %v1092_v27, 5  ;;  %v1098_v6 = vrot.slane %v1096_v53, 4  ;;  %v734_v13 = vld [vmem:[#allocation2 + $0x24] sm:$0xf] }
  0x8b   : > { %v1104_v7 = vrot.slane %v1102_v55, 5  ;;  %v1090_v14 = vrot.slane %v1089_v61, 4  ;;  %v735_v17 = vsel %vm4920_vm12, %v437_v62, %v734_v13  ;;  %v738_v18 = vld [vmem:[#allocation2 + $0x2c] sm:$0x1]  ;;  %v355_v19 = vsel %vm4890_vm4, 0, %v354_v45  ;;  %v4499_v16 = vld [vmem:[#allocation6 + $0x80] sm:$0xff]  }
  0x8c   : > { %3974 = vmatpush3.bf16.msra.mxu1 %v4491_v34  ;;  %v446_v15 = vsel %vm4913_vm10, %v438_v0, %v445_v1  ;;  %v1099_v20 = vor.u32 %v1098_v6, %v1094_v4  ;;  %736 = vst [vmem:[#allocation2 + $0x24] sm:$0xf] %v735_v17  ;;  %v739_v58 = vsel %vm4884_vm2, %v447_v12, %v738_v18  ;;  %356 = vst [vmem:[#allocation2 + $0xbc] sm:$0x1] %v355_v19  ;;  %v4501_v46 = vld [vmem:[#allocation6 + $0x1f8] sm:$0xff]   ;;  %v4503_v55 = vld [vmem:[#allocation6 + $0x160] sm:$0xff]  }
  0x8d   : > { %3975 = vmatprep.subr.bf16.mxu1 %v4494_v35  ;;  %737 = vst [vmem:[#allocation2 + $0x28] sm:$0xf] %v446_v15  ;;  %v636_v59 = vshrl.u32 %v391_v52, 16  ;;  %v639_v21 = vshll.u32 %v391_v52, 16  ;;  %v1095_v23 = vsel %vm4941_vm14, %v1090_v14, %v1094_v4  ;;  %v1019_v25 = vld [vmem:[#allocation2 + $0xa8] sm:$0xf]  ;;  %4081 = vmatprep.subr.bf16.mxu0 %v4503_v55 }
  0x8e   : > { %v1020_v26 = vld [vmem:[#allocation2 + $0xac] sm:$0xf]  ;;  %740 = vst [vmem:[#allocation2 + $0x2c] sm:$0x1] %v739_v58  ;;  %v644_v31 = vshrl.u32 %v392_v56, 16  ;;  %v647_v32 = vshll.u32 %v392_v56, 16 }
  0x8f   : > { %v1100_v33 = vrot.slane %v1099_v20, 4  ;;  %v1371_v34 = vshrl.u32 %v1019_v25, 16  ;;  %v1374_v35 = vshll.u32 %v1019_v25, 16  ;;  %v1380_v36 = vshll.u32 %v1020_v26, 16  ;;  %v818_v38 = vld [vmem:[#allocation2 + $0xb4] sm:$0xf] }
  0x90   : > { %3976 = vmatpush3.bf16.msra.mxu1 %v4496_v57  ;;  %v1021_v40 = vld [vmem:[#allocation2 + $0xb0] sm:$0x1]  ;;  %v1384_v41 = vshrl.u32 %v1020_v26, 16  ;;  %v638_v45 = vrot.slane %v636_v59, 7  ;;  %v646_v50 = vrot.slane %v644_v31, 7  ;;  %v4504_v17 = vld [vmem:[#allocation6 + $0x120] sm:$0xff]  }
  0x91   : > { %3977 = vmatprep.subr.bf16.mxu1 %v4498_v3  ;;  %v1105_v51 = vsel %vm4941_vm14, %v1100_v33, %v1104_v7  ;;  %v1373_v52 = vrot.slane %v1371_v34, 4  ;;  %v1376_v27 = vrot.slane %v1374_v35, 5  ;;  %v1382_v53 = vrot.slane %v1380_v36, 5  ;;  %4082 = vmatpush3.bf16.msra.mxu0 %v4504_v17  ;;  %v4507_v31 = vld [vmem:[#allocation6 + $0x158] sm:$0xff]   ;;  %s4715_s20 = smov [#allocation8]  }
  0x92   : > { %v5106_v56 = vcombine.low %v1095_v23, %v1105_v51  ;;  %v1386_v57 = vrot.slane %v1384_v41, 4  ;;  %v1390_v61 = vshll.u32 %v1021_v40, 16  ;;  %v641_v62 = vor.u32 %v639_v21, %v638_v45  ;;  %4083 = vmatprep.subr.bf16.mxu0 %v4507_v31  ;;  %s4614_s25 = sshll.u32 %s4715_s20, 4  ;;  %s4615_s25 = int_to_ptr.vmem [resolvable:$false] %s4614_s25 }
  0x93   : > { %v1377_v0 = vor.u32 %v1376_v27, %v1373_v52  ;;  %v642_v1 = vrot.slane %v638_v45, 4  ;;  %v649_v4 = vor.u32 %v647_v32, %v646_v50  ;;  %v651_v6 = vrot.slane %v646_v50, 4  ;;  %v5111_v13 = vld [vmem:[#allocation2 + $0x24] sm:$0xf]  ;;  %v265_v45 = vld [vmem:[#allocation2 + $0x30] sm:$0x1]  ;;  %p4617_p10 = scmp.lt.s32.totalorder %s6255_s24, %s4615_s25 }
  0x94   : > { %3978 = vmatpush3.bf16.msra.mxu1 %v4499_v16  ;;  %2351 = vmatprep.mubr.bf16.mxu0 %v5106_v56  ;;  %v1387_v3 = vor.u32 %v1386_v57, %v1382_v53  ;;  %v1392_v12 = vrot.slane %v1390_v61, 5  ;;  %v5109_v7 = vcombine.low %v1019_v25, %v1020_v26  ;;  %v5113_v14 = vld [vmem:[#allocation2 + $0x28] sm:$0xf]  ;;  %v819_v15 = vsel %vm4920_vm12, %v641_v62, %v818_v38  ;;  %v822_v26 = vld [vmem:[#allocation2 + $0xbc] sm:$0x1]  ;;  %s4616_s7 = scalar_lea.vmem %s4615_s25, 4096 }
  0x95   : > { %4187 = vmatprep.subr.bf16.mxu1 %v4501_v46  ;;  %v1378_v18 = vrot.slane %v1377_v0, 4  ;;  %2352 = vmatmul.mubr.bf16.gmra.mxu0 %v5102_v44  ;;  %v5118_v19 = vld [vmem:[#allocation2 + $0x2c] sm:$0x1]  ;;  %v1107_v20 = vshrl.u32 %v5111_v13, 16  ;;  %v1110_v58 = vshll.u32 %v5111_v13, 16  ;;  %v1116_v59 = vshll.u32 %v5113_v14, 16  ;;  %p4618_p12 = scmp.lt.s32.totalorder %s4616_s7, %s4610_s11 }
  0x96   : > { %820 = vst [vmem:[#allocation2 + $0xb4] sm:$0xf] %v819_v15  ;;  %v1388_v21 = vrot.slane %v1387_v3, 4  ;;  %v1120_v16 = vshrl.u32 %v5113_v14, 16  ;;  %v1126_v23 = vshll.u32 %v5118_v19, 16  ;;  %v650_v25 = vsel %vm4913_vm10, %v642_v1, %v649_v4 }
  0x97   : > { %v1383_v32 = vsel %vm4941_vm14, %v1378_v18, %v1382_v53  ;;  %v1109_v33 = vrot.slane %v1107_v20, 4  ;;  %v1112_v34 = vrot.slane %v1110_v58, 5  ;;  %v1118_v35 = vrot.slane %v1116_v59, 5  ;;  %821 = vst [vmem:[#allocation2 + $0xb8] sm:$0xf] %v650_v25  ;;  %v4509_v53 = vld [vmem:[#allocation6 + $0x118] sm:$0xff]   ;;  %p4619_p13 = por %p4618_p12, %p4617_p10 }
  0x98   : > { %v1393_v36 = vsel %vm4941_vm14, %v1388_v21, %v1392_v12  ;;  %v1122_v38 = vrot.slane %v1120_v16, 4  ;;  %v1128_v40 = vrot.slane %v1126_v23, 5  ;;  %v823_v41 = vsel %vm4884_vm2, %v651_v6, %v822_v26  ;;  %v321_v52 = vld [vmem:[#allocation2 + $0x38] sm:$0x1]  ;;  %v369_v27 = vld [vmem:[%s4872_s28 + $0x18] sm:$0xf]  ;;  %4084 = vmatpush3.bf16.msra.mxu0 %v4509_v53 }
  0x99   : > { %v5133_v50 = vcombine.low %v1383_v32, %v1393_v36  ;;  %v1113_v46 = vor.u32 %v1112_v34, %v1109_v33  ;;  %824 = vst [vmem:[#allocation2 + $0xbc] sm:$0x1] %v823_v41  ;;  %v266_v51 = vsel %vm4884_vm2, 0, %v265_v45  ;;  %v322_v57 = vsel %vm4890_vm4, 0, %v321_v52  ;;  %v370_v61 = vld [vmem:[%s4872_s28 + $0x1c] sm:$0xf]  ;;  %p4620_p0 = pnand %p4619_p13, %p4613_p9 }
  0x9a   : > { %v1123_v55 = vor.u32 %v1122_v38, %v1118_v35  ;;  %267 = vst [vmem:[#allocation2 + $0x30] sm:$0x1] %v266_v51  ;;  %v449_v62 = vshrl.u32 %v369_v27, 16  ;;  %v452_v0 = vshll.u32 %v369_v27, 16  ;;  %323 = vst [vmem:[#allocation2 + $0x38] sm:$0x1] %v322_v57  ;;  %v5146_v17 = vcombine.low %v5111_v13, %v5113_v14 }
  0x9b   : > { %6371 = vst [vmem:[#allocation17_spill] sm:$0xff] %v5133_v50  ;;  %2447 = vmatprep.mubr.bf16.mxu1 %v5133_v50  ;;  %v1114_v1 = vrot.slane %v1113_v46, 4  ;;  %v457_v4 = vshrl.u32 %v370_v61, 16  ;;  %v460_v6 = vshll.u32 %v370_v61, 16  ;;  %v3539_v3 = vrot.slane %v5006_v39, 9  ;;  %v4512_v16 = vld [vmem:[#allocation6 + $0x150] sm:$0xff]  }
  0x9c   : > { %2448 = vmatmul.mubr.bf16.gmra.mxu1 %v5109_v7  ;;  %v1124_v12 = vrot.slane %v1123_v55, 4  ;;  %v451_v18 = vrot.slane %v449_v62, 7  ;;  %v1478_v31 = vrot.slane %v4996_v30, 5  ;;  %4085 = vmatprep.subr.bf16.mxu0 %v4512_v16  ;;  %v4513_v38 = vld [vmem:[#allocation6 + $0x110] sm:$0xff]  }
  0x9d   : > { %v1022_v15 = vld [vmem:[#allocation2 + $0xb4] sm:$0xf]  ;;  %v1119_v20 = vsel %vm4941_vm14, %v1114_v1, %v1118_v35  ;;  %v459_v21 = vrot.slane %v457_v4, 7  ;;  %4086 = vmatpush3.bf16.msra.mxu0 %v4513_v38  ;;  %v327_v38 = vld [vmem:[#allocation2 + $0x50] sm:$0x1] }
  0x9e   : > { %v1395_v58 = vshrl.u32 %v1022_v15, 16  ;;  %v1398_v59 = vshll.u32 %v1022_v15, 16  ;;  %v1129_v39 = vsel %vm4941_vm14, %v1124_v12, %v1128_v40  ;;  %v1023_v23 = vld [vmem:[#allocation2 + $0xb8] sm:$0xf]  ;;  %v454_v25 = vor.u32 %v452_v0, %v451_v18 }
  0x9f   : > { %v455_v26 = vrot.slane %v451_v18, 4  ;;  %v5153_v32 = vcombine.low %v1119_v20, %v1129_v39  ;;  %v1404_v36 = vshll.u32 %v1023_v23, 16  ;;  %v1408_v41 = vshrl.u32 %v1023_v23, 16 }
  0xa0   : > { %v1397_v33 = vrot.slane %v1395_v58, 4  ;;  %v1400_v34 = vrot.slane %v1398_v59, 5  ;;  %v1024_v35 = vld [vmem:[#allocation2 + $0xbc] sm:$0x1]  ;;  %v462_v45 = vor.u32 %v460_v6, %v459_v21  ;;  %v464_v46 = vrot.slane %v459_v21, 4 }
  0xa1   : > { %2359 = vmatprep.mubr.bf16.mxu0 %v5153_v32  ;;  %v1406_v40 = vrot.slane %v1404_v36, 5  ;;  %v1414_v52 = vshll.u32 %v1024_v35, 16  ;;  %v741_v27 = vld [vmem:[#allocation2 + $0x30] sm:$0xf]  ;;  %v1479_v30 = vsel %vm4930_vm13, %v3539_v3, %v1478_v31  ;;  %v1410_v53 = vrot.slane %v1408_v41, 4 }
  0xa2   : > { %v1401_v51 = vor.u32 %v1400_v34, %v1397_v33  ;;  %2360 = vmatmul.mubr.bf16.gmra.mxu0 %v5146_v17  ;;  %v463_v55 = vsel %vm4913_vm10, %v455_v26, %v462_v45  ;;  %v742_v57 = vsel %vm4920_vm12, %v454_v25, %v741_v27  ;;  %v745_v61 = vld [vmem:[#allocation2 + $0x38] sm:$0x1]  ;;  %v1480_v62 = vrot.slane %v1478_v31, 4  ;;  %v268_v6 = vld [vmem:[#allocation2 + $0x3c] sm:$0x1] }
  0xa3   : > { %v1416_v1 = vrot.slane %v1414_v52, 5  ;;  %743 = vst [vmem:[#allocation2 + $0x30] sm:$0xf] %v742_v57  ;;  %744 = vst [vmem:[#allocation2 + $0x34] sm:$0xf] %v463_v55  ;;  %v746_v4 = vsel %vm4884_vm2, %v464_v46, %v745_v61  ;;  %v1411_v12 = vor.u32 %v1410_v53, %v1406_v40  ;;  %v269_v18 = vsel %vm4884_vm2, 0, %v268_v6 }
  0xa4   : > { %v1402_v0 = vrot.slane %v1401_v51, 4  ;;  %v324_v3 = vld [vmem:[#allocation2 + $0x44] sm:$0x1]  ;;  %747 = vst [vmem:[#allocation2 + $0x38] sm:$0x1] %v746_v4  ;;  %v1481_v34 = vrot.slane %v5010_v43, 5  ;;  %v5176_v35 = vcombine.low %v1022_v15, %v1023_v23 }
  0xa5   : > { %v325_v20 = vsel %vm4890_vm4, 0, %v324_v3  ;;  %v371_v58 = vld [vmem:[%s4872_s28 + $0x20] sm:$0xf]  ;;  %v372_v59 = vld [vmem:[%s4872_s28 + $0x24] sm:$0xf]  ;;  %v1412_v31 = vrot.slane %v1411_v12, 4 }
  0xa6   : > { %v1407_v21 = vsel %vm4941_vm14, %v1402_v0, %v1406_v40  ;;  %270 = vst [vmem:[#allocation2 + $0x3c] sm:$0x1] %v269_v18  ;;  %326 = vst [vmem:[#allocation2 + $0x44] sm:$0x1] %v325_v20  ;;  %v466_v16 = vshrl.u32 %v371_v58, 16  ;;  %v469_v39 = vshll.u32 %v371_v58, 16  ;;  %v1482_v43 = vsel %vm4930_vm13, %v1480_v62, %v1481_v34 }
  0xa7   : > { %v474_v25 = vshrl.u32 %v372_v59, 16  ;;  %v271_v26 = vld [vmem:[#allocation2 + $0x48] sm:$0x1]  ;;  %v477_v33 = vshll.u32 %v372_v59, 16  ;;  %v328_v46 = vsel %vm4890_vm4, 0, %v327_v38  ;;  %v1417_v40 = vsel %vm4941_vm14, %v1412_v31, %v1416_v1 }
  0xa8   : > { %v272_v36 = vsel %vm4884_vm2, 0, %v271_v26  ;;  %v468_v41 = vrot.slane %v466_v16, 7  ;;  %v373_v51 = vld [vmem:[%s4872_s28 + $0x28] sm:$0xf]  ;;  %329 = vst [vmem:[#allocation2 + $0x50] sm:$0x1] %v328_v46  ;;  %v5185_v53 = vcombine.low %v1407_v21, %v1417_v40  ;;  %v5192_v6 = vcombine.low %v1479_v30, %v1482_v43 }
  0xa9   : > { %v476_v45 = vrot.slane %v474_v25, 7  ;;  %273 = vst [vmem:[#allocation2 + $0x48] sm:$0x1] %v272_v36  ;;  %v483_v52 = vshrl.u32 %v373_v51, 16  ;;  %v486_v27 = vshll.u32 %v373_v51, 16  ;;  %v3540_v55 = vrot.slane %v5068_v22, 9 }
  0xaa   : > { %6372 = vst [vmem:[#allocation18_spill] sm:$0xff] %v5185_v53  ;;  %v472_v15 = vrot.slane %v468_v41, 4  ;;  %v5188_v57 = vld [vmem:[#allocation2 + $0x30] sm:$0xf]  ;;  %v5190_v61 = vld [vmem:[#allocation2 + $0x34] sm:$0xf]  ;;  %v471_v0 = vor.u32 %v469_v39, %v468_v41  ;;  %2455 = vmatprep.mubr.bf16.mxu1 %v5185_v53 }
  0xab   : > { %v479_v23 = vor.u32 %v477_v33, %v476_v45  ;;  %v481_v4 = vrot.slane %v476_v45, 4  ;;  %v374_v1 = vld [vmem:[%s4872_s28 + $0x2c] sm:$0xf]  ;;  %v5195_v3 = vrot.slane %v483_v52, 7  ;;  %v5198_v62 = vld [vmem:[#allocation2 + $0x38] sm:$0x1]  ;;  %2456 = vmatmul.mubr.bf16.gmra.mxu1 %v5176_v35 }
  0xac   : > { %v1131_v12 = vshrl.u32 %v5188_v57, 16  ;;  %v1134_v18 = vshll.u32 %v5188_v57, 16  ;;  %v1140_v22 = vshll.u32 %v5190_v61, 16  ;;  %v1144_v20 = vshrl.u32 %v5190_v61, 16  ;;  %v4518_v39 = vld [vmem:[#allocation6 + $0x148] sm:$0xff]   ;;  %2496 = vmatprep.mubr.bf16.mxu1 %v5023_v60  ;;  %v4502_v40 = vld [vmem:[#allocation6 + $0x1b8] sm:$0xff]  }
  0xad   : > { %v1150_v30 = vshll.u32 %v5198_v62, 16  ;;  %v480_v58 = vsel %vm4913_vm10, %v472_v15, %v479_v23  ;;  %v748_v59 = vld [vmem:[#allocation2 + $0x3c] sm:$0xf]  ;;  %v752_v21 = vld [vmem:[#allocation2 + $0x44] sm:$0x1]  ;;  %v488_v16 = vor.u32 %v486_v27, %v5195_v3  ;;  %v489_v41 = vrot.slane %v5195_v3, 4  ;;  %4087 = vmatprep.subr.bf16.mxu0 %v4518_v39 }
  0xae   : > { %v1133_v25 = vrot.slane %v1131_v12, 4  ;;  %v1136_v26 = vrot.slane %v1134_v18, 5  ;;  %v1142_v31 = vrot.slane %v1140_v22, 5  ;;  %v1146_v33 = vrot.slane %v1144_v20, 4  ;;  %751 = vst [vmem:[#allocation2 + $0x40] sm:$0xf] %v480_v58 }
  0xaf   : > { %v1152_v34 = vrot.slane %v1150_v30, 5  ;;  %v749_v36 = vsel %vm4920_vm12, %v471_v0, %v748_v59  ;;  %v753_v38 = vsel %vm4884_vm2, %v481_v4, %v752_v21  ;;  %v491_v43 = vshrl.u32 %v374_v1, 16  ;;  %v759_v27 = vld [vmem:[#allocation2 + $0x50] sm:$0x1]  ;;  %v4508_v0 = vld [vmem:[#allocation6 + $0x1f0] sm:$0xff]  }
  0xb0   : > { %v755_v45 = vld [vmem:[#allocation2 + $0x48] sm:$0xf]  ;;  %v1137_v46 = vor.u32 %v1136_v26, %v1133_v25  ;;  %v1147_v51 = vor.u32 %v1146_v33, %v1142_v31  ;;  %750 = vst [vmem:[#allocation2 + $0x3c] sm:$0xf] %v749_v36  ;;  %754 = vst [vmem:[#allocation2 + $0x44] sm:$0x1] %v753_v38 }
  0xb1   : > { %v494_v52 = vshll.u32 %v374_v1, 16  ;;  %v756_v60 = vsel %vm4920_vm12, %v488_v16, %v755_v45  ;;  %v1485_v15 = vrot.slane %v5079_v48, 5  ;;  %v1488_v23 = vrot.slane %v5081_v49, 5  ;;  %v274_v18 = vld [vmem:[#allocation2 + $0x54] sm:$0x1]  ;;  %v4510_v25 = vld [vmem:[#allocation6 + $0x1b0] sm:$0xff]  }
  0xb2   : > { %v1138_v4 = vrot.slane %v1137_v46, 4  ;;  %v1148_v3 = vrot.slane %v1147_v51, 4  ;;  %v493_v12 = vrot.slane %v491_v43, 7  ;;  %757 = vst [vmem:[#allocation2 + $0x48] sm:$0xf] %v756_v60  ;;  %v3541_v22 = vrot.slane %v5111_v13, 9 }
  0xb3   : > { %v5222_v1 = vcombine.low %v5188_v57, %v5190_v61  ;;  %v1486_v20 = vsel %vm4930_vm13, %v3540_v55, %v1485_v15  ;;  %v1487_v30 = vrot.slane %v1485_v15, 4  ;;  %v275_v48 = vsel %vm4884_vm2, 0, %v274_v18  ;;  %v330_v49 = vld [vmem:[#allocation2 + $0x5c] sm:$0x1]  ;;  %v375_v58 = vld [vmem:[%s4872_s28 + $0x30] sm:$0xf]  ;;  %2497 = vmatmul.mubr.bf16.vlgmr.msra.gmra.mxu1 %v3588_v28 }
  0xb4   : > { %v1143_v59 = vsel %vm4941_vm14, %v1138_v4, %v1142_v31  ;;  %v1153_v21 = vsel %vm4941_vm14, %v1148_v3, %v1152_v34  ;;  %v496_v16 = vor.u32 %v494_v52, %v493_v12  ;;  %v498_v39 = vrot.slane %v493_v12, 4  ;;  %276 = vst [vmem:[#allocation2 + $0x54] sm:$0x1] %v275_v48  ;;  %v4519_v26 = vld [vmem:[#allocation6 + $0x108] sm:$0xff]   ;;  %4188 = vmatpush3.bf16.msra.mxu1 %v4502_v40  ;;  %v376_v15 = vld [vmem:[%s4872_s28 + $0x34] sm:$0xf] }
  0xb5   : > { %v5233_v33 = vcombine.low %v1143_v59, %v1153_v21  ;;  %v5238_v55 = vld [vmem:[#allocation2 + $0x40] sm:$0xf]  ;;  %v1489_v36 = vsel %vm4930_vm13, %v1487_v30, %v1488_v23  ;;  %v331_v31 = vsel %vm4890_vm4, 0, %v330_v49  ;;  %v500_v34 = vshrl.u32 %v375_v58, 16  ;;  %2504 = vmatprep.mubr.bf16.mxu1 %v5102_v44  ;;  %4189 = vmatprep.subr.bf16.mxu1 %v4508_v0  ;;  %v4521_v21 = vld [vmem:[#allocation6 + $0x1e0] sm:$0xff]  }
  0xb6   : > { %v4515_v38 = vld [vmem:[#allocation6 + $0x1e8] sm:$0xff]   ;;  %v1164_v45 = vshll.u32 %v5238_v55, 16  ;;  %v1168_v46 = vshrl.u32 %v5238_v55, 16  ;;  %v497_v5 = vsel %vm4913_vm10, %v489_v41, %v496_v16  ;;  %v760_v9 = vsel %vm4884_vm2, %v498_v39, %v759_v27  ;;  %332 = vst [vmem:[#allocation2 + $0x5c] sm:$0x1] %v331_v31  ;;  %4088 = vmatpush3.bf16.msra.mxu0 %v4519_v26 }
  0xb7   : > { %2367 = vmatprep.mubr.bf16.mxu0 %v5233_v33  ;;  %v5252_v28 = vld [vmem:[#allocation2 + $0x3c] sm:$0xf]  ;;  %v5254_v51 = vld [vmem:[#allocation2 + $0x44] sm:$0x1]  ;;  %758 = vst [vmem:[#allocation2 + $0x4c] sm:$0xf] %v497_v5  ;;  %v5265_v3 = vcombine.low %v1486_v20, %v1489_v36 }
  0xb8   : > { %761 = vst [vmem:[#allocation2 + $0x50] sm:$0x1] %v760_v9  ;;  %v5256_v40 = vrot.slane %v500_v34, 7  ;;  %v503_v43 = vshll.u32 %v375_v58, 16  ;;  %2368 = vmatmul.mubr.bf16.gmra.mxu0 %v5222_v1  ;;  %v1155_v41 = vshrl.u32 %v5252_v28, 16  ;;  %v1158_v52 = vshll.u32 %v5252_v28, 16  ;;  %4190 = vmatpush3.bf16.msra.mxu1 %v4510_v25 }
  0xb9   : > { %v1166_v60 = vrot.slane %v1164_v45, 5  ;;  %v1170_v27 = vrot.slane %v1168_v46, 4  ;;  %v1174_v23 = vshll.u32 %v5254_v51, 16  ;;  %v5263_v4 = vld [vmem:[#allocation2 + $0x48] sm:$0xf]  ;;  %v4516_v18 = vld [vmem:[#allocation6 + $0x1a8] sm:$0xff]   ;;  %4191 = vmatprep.subr.bf16.mxu1 %v4515_v38 }
  0xba   : > { %v505_v0 = vor.u32 %v503_v43, %v5256_v40  ;;  %v506_v12 = vrot.slane %v5256_v40, 4  ;;  %v1157_v30 = vrot.slane %v1155_v41, 4  ;;  %v1160_v48 = vrot.slane %v1158_v52, 5  ;;  %v277_v59 = vld [vmem:[#allocation2 + $0x60] sm:$0x1] }
  0xbb   : > { %v1171_v49 = vor.u32 %v1170_v27, %v1166_v60  ;;  %v1179_v58 = vshrl.u32 %v5263_v4, 16  ;;  %v1176_v16 = vrot.slane %v1174_v23, 5  ;;  %v1182_v39 = vshll.u32 %v5263_v4, 16  ;;  %v762_v36 = vld [vmem:[#allocation2 + $0x54] sm:$0xf]  ;;  %2505 = vmatmul.mubr.bf16.gmra.mxu1 %v5192_v6 }
  0xbc   : > { %v508_v31 = vshrl.u32 %v376_v15, 16  ;;  %v511_v20 = vshll.u32 %v376_v15, 16  ;;  %v1161_v34 = vor.u32 %v1160_v48, %v1157_v30  ;;  %v763_v26 = vsel %vm4920_vm12, %v505_v0, %v762_v36  ;;  %2512 = vmatprep.mubr.bf16.mxu1 %v5146_v17  ;;  %v333_v23 = vld [vmem:[#allocation2 + $0x68] sm:$0x1]  ;;  %4192 = vmatpush3.bf16.msra.mxu1 %v4516_v18 }
  0xbd   : > { %v1172_v45 = vrot.slane %v1171_v49, 4  ;;  %v1181_v46 = vrot.slane %v1179_v58, 4  ;;  %v1184_v5 = vrot.slane %v1182_v39, 5  ;;  %764 = vst [vmem:[#allocation2 + $0x54] sm:$0xf] %v763_v26  ;;  %v1492_v40 = vrot.slane %v5113_v14, 5  ;;  %4193 = vmatprep.subr.bf16.mxu1 %v4521_v21 }
  0xbe   : > { %v510_v9 = vrot.slane %v508_v31, 7  ;;  %v766_v25 = vld [vmem:[#allocation2 + $0x5c] sm:$0x1]  ;;  %v1495_v43 = vrot.slane %v5118_v19, 5  ;;  %v1162_v41 = vrot.slane %v1161_v34, 4  ;;  %v5280_v52 = vcombine.low %v5252_v28, %v5238_v55 }
  0xbf   : > { %v1177_v38 = vsel %vm4941_vm14, %v1172_v45, %v1176_v16  ;;  %v5282_v27 = vld [vmem:[#allocation2 + $0x4c] sm:$0xf]  ;;  %v5284_v15 = vld [vmem:[#allocation2 + $0x50] sm:$0x1]  ;;  %v278_v14 = vsel %vm4884_vm2, 0, %v277_v59  ;;  %v1185_v19 = vor.u32 %v1184_v5, %v1181_v46  ;;  %v4522_v58 = vld [vmem:[#allocation6 + $0x1a0] sm:$0xff]  }
  0xc0   : > { %6373 = vst [vmem:[#allocation19_spill] sm:$0xff] %v5280_v52  ;;  %v1188_v0 = vshll.u32 %v5282_v27, 16  ;;  %v1192_v30 = vshrl.u32 %v5282_v27, 16  ;;  %v1198_v48 = vshll.u32 %v5284_v15, 16  ;;  %279 = vst [vmem:[#allocation2 + $0x60] sm:$0x1] %v278_v14  ;;  %v1167_v16 = vsel %vm4941_vm14, %v1162_v41, %v1166_v60  ;;  %4194 = vmatpush3.bf16.msra.mxu1 %v4522_v58 }
  0xc1   : > { %v377_v49 = vld [vmem:[%s4872_s28 + $0x38] sm:$0xf]  ;;  %v5297_v59 = vcombine.low %v5263_v4, %v5282_v27  ;;  %v513_v18 = vor.u32 %v511_v20, %v510_v9  ;;  %v515_v39 = vrot.slane %v510_v9, 4  ;;  %v4523_v31 = vld [vmem:[#allocation6 + $0x140] sm:$0xff]   ;;  %v5299_v36 = vcombine.low %v1167_v16, %v1177_v38  ;;  %v378_v26 = vld [vmem:[%s4872_s28 + $0x3c] sm:$0xf] }
  0xc2   : > { %v1186_v34 = vrot.slane %v1185_v19, 4  ;;  %v1190_v45 = vrot.slane %v1188_v0, 5  ;;  %v1194_v46 = vrot.slane %v1192_v30, 4  ;;  %v4524_v5 = vld [vmem:[#allocation6 + $0x100] sm:$0xff]   ;;  %v1200_v14 = vrot.slane %v1198_v48, 5  ;;  %4089 = vmatprep.subr.bf16.mxu0 %v4523_v31  ;;  %v4526_v9 = vld [vmem:[#allocation6 + $0x1d8] sm:$0xff]  }
  0xc3   : > { %6374 = vst [vmem:[#allocation20_spill] sm:$0xff] %v5297_v59  ;;  %v514_v21 = vsel %vm4913_vm10, %v506_v12, %v513_v18  ;;  %v767_v60 = vsel %vm4884_vm2, %v515_v39, %v766_v25  ;;  %v1493_v20 = vsel %vm4930_vm13, %v3541_v22, %v1492_v40  ;;  %2375 = vmatprep.mubr.bf16.mxu0 %v5299_v36  ;;  %v1494_v12 = vrot.slane %v1492_v40, 4  ;;  %v280_v16 = vld [vmem:[#allocation2 + $0x6c] sm:$0x1]  ;;  %v5323_v18 = vld [vmem:[#allocation6 + $0x238] sm:$0xff]  }
  0xc4   : > { %v1191_v41 = vsel %vm4941_vm14, %v1186_v34, %v1190_v45  ;;  %v1195_v38 = vor.u32 %v1194_v46, %v1190_v45  ;;  %765 = vst [vmem:[#allocation2 + $0x58] sm:$0xf] %v514_v21  ;;  %768 = vst [vmem:[#allocation2 + $0x5c] sm:$0x1] %v767_v60  ;;  %v334_v25 = vsel %vm4890_vm4, 0, %v333_v23  ;;  %4090 = vmatpush3.bf16.msra.mxu0 %v4524_v5  ;;  %v517_v22 = vshrl.u32 %v377_v49, 16 }
  0xc5   : > { %2376 = vmatmul.mubr.bf16.gmra.mxu0 %v5280_v52  ;;  %v5316_v13 = vld [vmem:[#allocation2 + $0x54] sm:$0xf]  ;;  %335 = vst [vmem:[#allocation2 + $0x68] sm:$0x1] %v334_v25  ;;  %v520_v19 = vshll.u32 %v377_v49, 16  ;;  %v525_v0 = vshrl.u32 %v378_v26, 16  ;;  %4195 = vmatprep.subr.bf16.mxu1 %v4526_v9  ;;  %v1496_v23 = vsel %vm4930_vm13, %v1494_v12, %v1495_v43 }
  0xc6   : > { %v528_v30 = vshll.u32 %v378_v26, 16  ;;  %v1196_v48 = vrot.slane %v1195_v38, 4  ;;  %2513 = vmatmul.mubr.bf16.gmra.mxu1 %v5265_v3  ;;  %v1203_v58 = vshrl.u32 %v5316_v13, 16  ;;  %v1206_v40 = vshll.u32 %v5316_v13, 16  ;;  %v4528_v46 = vld [vmem:[#allocation6 + $0x198] sm:$0xff]   ;;  %4323 = vmatprep.subr.bf16.mxu0 %v5323_v18  ;;  %v4529_v60 = vld [vmem:[#allocation6 + $0x1d0] sm:$0xff]  }
  0xc7   : > { %2520 = vmatprep.mubr.bf16.mxu1 %v5222_v1  ;;  %v5326_v39 = vcombine.low %v1493_v20, %v1496_v23  ;;  %v519_v49 = vrot.slane %v517_v22, 7  ;;  %v527_v31 = vrot.slane %v525_v0, 7  ;;  %v769_v34 = vld [vmem:[#allocation2 + $0x60] sm:$0xf]  ;;  %v3542_v45 = vrot.slane %v5188_v57, 9  ;;  %4196 = vmatpush3.bf16.msra.mxu1 %v4528_v46 }
  0xc8   : > { %v1201_v26 = vsel %vm4941_vm14, %v1196_v48, %v1200_v14  ;;  %v1205_v5 = vrot.slane %v1203_v58, 4  ;;  %v1208_v43 = vrot.slane %v1206_v40, 5  ;;  %v1499_v21 = vrot.slane %v5190_v61, 5  ;;  %v336_v25 = vld [vmem:[#allocation2 + $0x74] sm:$0x1]  ;;  %4197 = vmatprep.subr.bf16.mxu1 %v4529_v60  ;;  %v4531_v60 = vld [vmem:[#allocation6 + $0x190] sm:$0xff]  }
  0xc9   : > { %v5333_v20 = vcombine.low %v1191_v41, %v1201_v26  ;;  %v522_v9 = vor.u32 %v520_v19, %v519_v49  ;;  %v523_v38 = vrot.slane %v519_v49, 4  ;;  %v530_v12 = vor.u32 %v528_v30, %v527_v31  ;;  %v379_v48 = vld [vmem:[%s4872_s28 + $0x40] sm:$0xf]  ;;  %v380_v58 = vld [vmem:[%s4872_s28 + $0x44] sm:$0xf] }
  0xca   : > { %v1209_v57 = vor.u32 %v1208_v43, %v1205_v5  ;;  %v532_v22 = vrot.slane %v527_v31, 4  ;;  %v1500_v14 = vsel %vm4930_vm13, %v3542_v45, %v1499_v21  ;;  %v1501_v0 = vrot.slane %v1499_v21, 4  ;;  %v283_v5 = vld [vmem:[#allocation2 + $0x78] sm:$0x1]  ;;  %v339_v21 = vld [vmem:[#allocation2 + $0x80] sm:$0x1] }
  0xcb   : > { %2383 = vmatprep.mubr.bf16.mxu0 %v5333_v20  ;;  %v5340_v61 = vld [vmem:[#allocation2 + $0x58] sm:$0xf]  ;;  %v5342_v41 = vld [vmem:[#allocation2 + $0x5c] sm:$0x1]  ;;  %v531_v19 = vsel %vm4913_vm10, %v523_v38, %v530_v12  ;;  %v770_v30 = vsel %vm4920_vm12, %v522_v9, %v769_v34  ;;  %v1502_v40 = vrot.slane %v5198_v62, 5  ;;  %v281_v23 = vsel %vm4884_vm2, 0, %v280_v16  ;;  %4198 = vmatpush3.bf16.msra.mxu1 %v4531_v60 }
  0xcc   : > { %v1210_v49 = vrot.slane %v1209_v57, 4  ;;  %v1212_v31 = vshll.u32 %v5340_v61, 16  ;;  %v1216_v45 = vshrl.u32 %v5340_v61, 16  ;;  %v1222_v46 = vshll.u32 %v5342_v41, 16  ;;  %771 = vst [vmem:[#allocation2 + $0x60] sm:$0xf] %v770_v30 }
  0xcd   : > { %772 = vst [vmem:[#allocation2 + $0x64] sm:$0xf] %v531_v19  ;;  %v773_v26 = vld [vmem:[#allocation2 + $0x68] sm:$0x1]  ;;  %282 = vst [vmem:[#allocation2 + $0x6c] sm:$0x1] %v281_v23  ;;  %2384 = vmatmul.mubr.bf16.gmra.mxu0 %v5297_v59  ;;  %v5357_v62 = vcombine.low %v5316_v13, %v5340_v61  ;;  %v1503_v34 = vsel %vm4930_vm13, %v1501_v0, %v1502_v40 }
  0xce   : > { %v774_v16 = vsel %vm4884_vm2, %v532_v22, %v773_v26  ;;  %v337_v43 = vsel %vm4890_vm4, 0, %v336_v25  ;;  %v1214_v9 = vrot.slane %v1212_v31, 5  ;;  %v1218_v38 = vrot.slane %v1216_v45, 4  ;;  %2521 = vmatmul.mubr.bf16.gmra.mxu1 %v5326_v39  ;;  %v4532_v19 = vld [vmem:[#allocation6 + $0x1c8] sm:$0xff]  }
  0xcf   : > { %6375 = vst [vmem:[#allocation21_spill] sm:$0xff] %v5357_v62  ;;  %v1224_v12 = vrot.slane %v1222_v46, 5  ;;  %775 = vst [vmem:[#allocation2 + $0x68] sm:$0x1] %v774_v16  ;;  %v5366_v57 = vcombine.low %v1500_v14, %v1503_v34  ;;  %2528 = vmatprep.mubr.bf16.mxu1 %v5280_v52  ;;  %v534_v22 = vshrl.u32 %v379_v48, 16  ;;  %v537_v30 = vshll.u32 %v379_v48, 16  ;;  %4199 = vmatprep.subr.bf16.mxu1 %v4532_v19 }
  0xd0   : > { %338 = vst [vmem:[#allocation2 + $0x74] sm:$0x1] %v337_v43  ;;  %v542_v0 = vshrl.u32 %v380_v58, 16  ;;  %v545_v40 = vshll.u32 %v380_v58, 16  ;;  %v1215_v25 = vsel %vm4941_vm14, %v1210_v49, %v1214_v9  ;;  %v1219_v23 = vor.u32 %v1218_v38, %v1214_v9 }
  0xd1   : > { %v3543_v31 = vrot.slane %v5252_v28, 9  ;;  %v1506_v45 = vrot.slane %v5238_v55, 5  ;;  %v536_v14 = vrot.slane %v534_v22, 7  ;;  %v1509_v26 = vrot.slane %v5254_v51, 5 }
  0xd2   : > { %v544_v46 = vrot.slane %v542_v0, 7  ;;  %v284_v48 = vsel %vm4884_vm2, 0, %v283_v5  ;;  %v1220_v16 = vrot.slane %v1219_v23, 4  ;;  %v340_v28 = vsel %vm4890_vm4, 0, %v339_v21  ;;  %v381_v5 = vld [vmem:[%s4872_s28 + $0x48] sm:$0xf] }
  0xd3   : > { %v1507_v58 = vsel %vm4930_vm13, %v3543_v31, %v1506_v45  ;;  %v1508_v34 = vrot.slane %v1506_v45, 4  ;;  %285 = vst [vmem:[#allocation2 + $0x78] sm:$0x1] %v284_v48  ;;  %v5380_v55 = vld [vmem:[#allocation2 + $0x60] sm:$0xf]  ;;  %v539_v43 = vor.u32 %v537_v30, %v536_v14  ;;  %v540_v60 = vrot.slane %v536_v14, 4 }
  0xd4   : > { %v5382_v49 = vld [vmem:[#allocation2 + $0x64] sm:$0xf]  ;;  %v547_v51 = vor.u32 %v545_v40, %v544_v46  ;;  %v549_v9 = vrot.slane %v544_v46, 4  ;;  %341 = vst [vmem:[#allocation2 + $0x80] sm:$0x1] %v340_v28  ;;  %v1225_v38 = vsel %vm4941_vm14, %v1220_v16, %v1224_v12  ;;  %v1227_v19 = vshrl.u32 %v5380_v55, 16 }
  0xd5   : > { %v1230_v22 = vshll.u32 %v5380_v55, 16  ;;  %v1236_v0 = vshll.u32 %v5382_v49, 16  ;;  %v776_v21 = vld [vmem:[#allocation2 + $0x6c] sm:$0xf]  ;;  %v382_v23 = vld [vmem:[%s4872_s28 + $0x4c] sm:$0xf]  ;;  %v5391_v45 = vcombine.low %v1215_v25, %v1225_v38  ;;  %v5398_v14 = vcombine.low %v5380_v55, %v5382_v49 }
  0xd6   : > { %v4534_v31 = vld [vmem:[#allocation6 + $0x188] sm:$0xff]   ;;  %v5393_v30 = vld [vmem:[#allocation2 + $0x68] sm:$0x1]  ;;  %v1240_v40 = vshrl.u32 %v5382_v49, 16  ;;  %v548_v12 = vsel %vm4913_vm10, %v540_v60, %v547_v51  ;;  %v4535_v48 = vld [vmem:[#allocation6 + $0x1c0] sm:$0xff]   ;;  %v1229_v16 = vrot.slane %v1227_v19, 4  ;;  %2529 = vmatmul.mubr.bf16.gmra.mxu1 %v5366_v57  ;;  %v777_v38 = vsel %vm4920_vm12, %v539_v43, %v776_v21 }
  0xd7   : > { %6376 = vst [vmem:[#allocation22_spill] sm:$0xff] %v5398_v14  ;;  %v780_v46 = vld [vmem:[#allocation2 + $0x74] sm:$0x1]  ;;  %v1232_v28 = vrot.slane %v1230_v22, 5  ;;  %v1238_v53 = vrot.slane %v1236_v0, 5  ;;  %v1246_v50 = vshll.u32 %v5393_v30, 16  ;;  %2391 = vmatprep.mubr.bf16.mxu0 %v5391_v45  ;;  %2536 = vmatprep.mubr.bf16.mxu1 %v5297_v59  ;;  %v1510_v60 = vsel %vm4930_vm13, %v1508_v34, %v1509_v26 }
  0xd8   : > { %779 = vst [vmem:[#allocation2 + $0x70] sm:$0xf] %v548_v12  ;;  %v1242_v25 = vrot.slane %v1240_v40, 4  ;;  %v781_v10 = vsel %vm4884_vm2, %v549_v9, %v780_v46  ;;  %2392 = vmatmul.mubr.bf16.gmra.mxu0 %v5357_v62  ;;  %778 = vst [vmem:[#allocation2 + $0x6c] sm:$0xf] %v777_v38  ;;  %v5413_v22 = vcombine.low %v1507_v58, %v1510_v60  ;;  %v551_v0 = vshrl.u32 %v381_v5, 16 }
  0xd9   : > { %v1233_v51 = vor.u32 %v1232_v28, %v1229_v16  ;;  %v1248_v19 = vrot.slane %v1246_v50, 5  ;;  %782 = vst [vmem:[#allocation2 + $0x74] sm:$0x1] %v781_v10  ;;  %v286_v40 = vld [vmem:[#allocation2 + $0x84] sm:$0x1]  ;;  %4200 = vmatpush3.bf16.msra.mxu1 %v4534_v31  ;;  %v554_v21 = vshll.u32 %v381_v5, 16 }
  0xda   : > { %v1243_v43 = vor.u32 %v1242_v25, %v1238_v53  ;;  %v559_v12 = vshrl.u32 %v382_v23, 16  ;;  %v562_v9 = vshll.u32 %v382_v23, 16  ;;  %v783_v46 = vld [vmem:[#allocation2 + $0x78] sm:$0xf]  ;;  %4201 = vmatprep.subr.bf16.mxu1 %v4535_v48  ;;  %v553_v34 = vrot.slane %v551_v0, 7 }
  0xdb   : > { %v1234_v26 = vrot.slane %v1233_v51, 4  ;;  %v787_v59 = vld [vmem:[#allocation2 + $0x80] sm:$0x1]  ;;  %v3544_v50 = vrot.slane %v5263_v4, 9  ;;  %v1513_v10 = vrot.slane %v5282_v27, 5  ;;  %v1516_v31 = vrot.slane %v5284_v15, 5 }
  0xdc   : > { %v342_v58 = vld [vmem:[#allocation2 + $0x8c] sm:$0x1]  ;;  %v1244_v16 = vrot.slane %v1243_v43, 4  ;;  %v561_v28 = vrot.slane %v559_v12, 7  ;;  %v287_v5 = vsel %vm4884_vm2, 0, %v286_v40  ;;  %v556_v48 = vor.u32 %v554_v21, %v553_v34 }
  0xdd   : > { %v1239_v23 = vsel %vm4941_vm14, %v1234_v26, %v1238_v53  ;;  %v557_v25 = vrot.slane %v553_v34, 4  ;;  %v1514_v38 = vsel %vm4930_vm13, %v3544_v50, %v1513_v10  ;;  %288 = vst [vmem:[#allocation2 + $0x84] sm:$0x1] %v287_v5  ;;  %v383_v4 = vld [vmem:[%s4872_s28 + $0x50] sm:$0xf]  ;;  %4202 = vmatpush3.bf16.msra.mxu1 %v4537_v29  ;;  %v1515_v0 = vrot.slane %v1513_v10, 4 }
  0xde   : > { %v1249_v27 = vsel %vm4941_vm14, %v1244_v16, %v1248_v19  ;;  %v564_v15 = vor.u32 %v562_v9, %v561_v28  ;;  %v566_v51 = vrot.slane %v561_v28, 4  ;;  %2537 = vmatmul.mubr.bf16.gmra.mxu1 %v5413_v22  ;;  %v784_v21 = vsel %vm4920_vm12, %v556_v48, %v783_v46  ;;  %v384_v29 = vld [vmem:[%s4872_s28 + $0x54] sm:$0xf] }
  0xdf   : > { %v5427_v60 = vld [vmem:[#allocation2 + $0x70] sm:$0xf]  ;;  %v5429_v40 = vcombine.low %v1239_v23, %v1249_v27  ;;  %v5437_v12 = vld [vmem:[#allocation2 + $0x6c] sm:$0xf]  ;;  %785 = vst [vmem:[#allocation2 + $0x78] sm:$0xf] %v784_v21  ;;  %2544 = vmatprep.mubr.bf16.mxu1 %v5357_v62  ;;  %v1517_v34 = vsel %vm4930_vm13, %v1515_v0, %v1516_v31 }
  0xe0   : > { %v1260_v53 = vshll.u32 %v5427_v60, 16  ;;  %v1264_v43 = vshrl.u32 %v5427_v60, 16  ;;  %v5439_v19 = vld [vmem:[#allocation2 + $0x74] sm:$0x1]  ;;  %v565_v9 = vsel %vm4913_vm10, %v557_v25, %v564_v15  ;;  %v788_v26 = vsel %vm4884_vm2, %v566_v51, %v787_v59 }
  0xe1   : > { %v343_v46 = vsel %vm4890_vm4, 0, %v342_v58  ;;  %2399 = vmatprep.mubr.bf16.mxu0 %v5429_v40  ;;  %v1251_v50 = vshrl.u32 %v5437_v12, 16  ;;  %v1254_v10 = vshll.u32 %v5437_v12, 16  ;;  %786 = vst [vmem:[#allocation2 + $0x7c] sm:$0xf] %v565_v9  ;;  %v1270_v59 = vshll.u32 %v5439_v19, 16 }
  0xe2   : > { %v1262_v16 = vrot.slane %v1260_v53, 5  ;;  %v1266_v28 = vrot.slane %v1264_v43, 4  ;;  %789 = vst [vmem:[#allocation2 + $0x80] sm:$0x1] %v788_v26  ;;  %344 = vst [vmem:[#allocation2 + $0x8c] sm:$0x1] %v343_v46  ;;  %2400 = vmatmul.mubr.bf16.gmra.mxu0 %v5398_v14  ;;  %v5455_v5 = vcombine.low %v1514_v38, %v1517_v34 }
  0xe3   : > { %v568_v31 = vshrl.u32 %v383_v4, 16  ;;  %v1253_v23 = vrot.slane %v1251_v50, 4  ;;  %v1256_v58 = vrot.slane %v1254_v10, 5  ;;  %v571_v25 = vshll.u32 %v383_v4, 16 }
  0xe4   : > { %v1267_v48 = vor.u32 %v1266_v28, %v1262_v16  ;;  %v1272_v27 = vrot.slane %v1270_v59, 5  ;;  %v576_v51 = vshrl.u32 %v384_v29, 16  ;;  %v579_v0 = vshll.u32 %v384_v29, 16  ;;  %v790_v53 = vld [vmem:[#allocation2 + $0x84] sm:$0xf] }
  0xe5   : > { %v570_v15 = vrot.slane %v568_v31, 7  ;;  %v1257_v43 = vor.u32 %v1256_v58, %v1253_v23  ;;  %v3545_v9 = vrot.slane %v5316_v13, 9  ;;  %v1520_v26 = vrot.slane %v5340_v61, 5 }
  0xe6   : > { %v1268_v21 = vrot.slane %v1267_v48, 4  ;;  %v578_v38 = vrot.slane %v576_v51, 7  ;;  %v1523_v34 = vrot.slane %v5342_v41, 5  ;;  %v5464_v10 = vcombine.low %v5437_v12, %v5427_v60  ;;  %v5466_v29 = vld [vmem:[#allocation2 + $0x78] sm:$0xf]  ;;  %2545 = vmatmul.mubr.bf16.gmra.mxu1 %v5455_v5 }
  0xe7   : > { %v573_v46 = vor.u32 %v571_v25, %v570_v15  ;;  %v574_v62 = vrot.slane %v570_v15, 4  ;;  %v1258_v50 = vrot.slane %v1257_v43, 4  ;;  %v1522_v13 = vrot.slane %v1520_v26, 4  ;;  %2552 = vmatprep.mubr.bf16.mxu1 %v5398_v14 }
  0xe8   : > { %v1273_v4 = vsel %vm4941_vm14, %v1268_v21, %v1272_v27  ;;  %v5469_v28 = vld [vmem:[#allocation2 + $0x7c] sm:$0xf]  ;;  %v1275_v59 = vshrl.u32 %v5466_v29, 16  ;;  %v1278_v41 = vshll.u32 %v5466_v29, 16  ;;  %v581_v31 = vor.u32 %v579_v0, %v578_v38 }
  0xe9   : > { %v5471_v61 = vld [vmem:[#allocation2 + $0x80] sm:$0x1]  ;;  %v791_v23 = vsel %vm4920_vm12, %v573_v46, %v790_v53  ;;  %v1263_v58 = vsel %vm4941_vm14, %v1258_v50, %v1262_v16  ;;  %v1284_v48 = vshll.u32 %v5469_v28, 16  ;;  %v1288_v25 = vshrl.u32 %v5469_v28, 16  ;;  %v794_v15 = vld [vmem:[#allocation2 + $0x8c] sm:$0x1] }
  0xea   : > { %v1294_v27 = vshll.u32 %v5471_v61, 16  ;;  %792 = vst [vmem:[#allocation2 + $0x84] sm:$0xf] %v791_v23  ;;  %v5483_v51 = vcombine.low %v1263_v58, %v1273_v4  ;;  %v1277_v43 = vrot.slane %v1275_v59, 4  ;;  %v1280_v0 = vrot.slane %v1278_v41, 5 }
  0xeb   : > { %v1521_v53 = vsel %vm4930_vm13, %v3545_v9, %v1520_v26  ;;  %v1286_v21 = vrot.slane %v1284_v48, 5  ;;  %v1290_v46 = vrot.slane %v1288_v25, 4  ;;  %v582_v16 = vsel %vm4913_vm10, %v574_v62, %v581_v31 }
  0xec   : > { %v1296_v14 = vrot.slane %v1294_v27, 5  ;;  %2407 = vmatprep.mubr.bf16.mxu0 %v5483_v51  ;;  %v1281_v50 = vor.u32 %v1280_v0, %v1277_v43  ;;  %v583_v52 = vrot.slane %v578_v38, 4  ;;  %793 = vst [vmem:[#allocation2 + $0x88] sm:$0xf] %v582_v16  ;;  %v1524_v4 = vsel %vm4930_vm13, %v1522_v13, %v1523_v34 }
  0xed   : > { %v3546_v59 = vrot.slane %v5380_v55, 9  ;;  %2408 = vmatmul.mubr.bf16.gmra.mxu0 %v5464_v10  ;;  %v1291_v41 = vor.u32 %v1290_v46, %v1286_v21  ;;  %v5494_v9 = vcombine.low %v1521_v53, %v1524_v4  ;;  %v1527_v26 = vrot.slane %v5382_v49, 5 }
  0xee   : > { %v1530_v23 = vrot.slane %v5393_v30, 5  ;;  %v1282_v62 = vrot.slane %v1281_v50, 4  ;;  %v795_v31 = vsel %vm4884_vm2, %v583_v52, %v794_v15  ;;  %v1534_v55 = vrot.slane %v5427_v60, 5 }
  0xef   : > { %v1292_v38 = vrot.slane %v1291_v41, 4  ;;  %796 = vst [vmem:[#allocation2 + $0x8c] sm:$0x1] %v795_v31  ;;  %2553 = vmatmul.mubr.bf16.gmra.mxu1 %v5494_v9  ;;  %v1529_v34 = vrot.slane %v1527_v26, 4  ;;  %v5506_v58 = vcombine.low %v5466_v29, %v5469_v28  ;;  %v1528_v52 = vsel %vm4930_vm13, %v3546_v59, %v1527_v26 }
  0xf0   : > { %v1287_v13 = vsel %vm4941_vm14, %v1282_v62, %v1286_v21  ;;  %2560 = vmatprep.mubr.bf16.mxu1 %v5464_v10  ;;  %v3547_v15 = vrot.slane %v5437_v12, 9  ;;  %v1537_v43 = vrot.slane %v5439_v19, 5 }
  0xf1   : > { %v5508_v49 = vld [vmem:[#allocation2 + $0x84] sm:$0xf]  ;;  %v1297_v30 = vsel %vm4941_vm14, %v1292_v38, %v1296_v14  ;;  %v1531_v25 = vsel %vm4930_vm13, %v1529_v34, %v1530_v23  ;;  %v1536_v14 = vrot.slane %v1534_v55, 4  ;;  %v1541_v38 = vrot.slane %v5469_v28, 5 }
  0xf2   : > { %v1299_v48 = vshrl.u32 %v5508_v49, 16  ;;  %v1302_v60 = vshll.u32 %v5508_v49, 16  ;;  %v5519_v27 = vcombine.low %v1287_v13, %v1297_v30  ;;  %v5525_v46 = vcombine.low %v1528_v52, %v1531_v25  ;;  %v393_v25 = vld [vmem:[%s4872_s28 + $0x78] sm:$0xf] }
  0xf3   : > { %v5523_v0 = vld [vmem:[#allocation2 + $0x88] sm:$0xf]  ;;  %v1535_v62 = vsel %vm4930_vm13, %v3547_v15, %v1534_v55  ;;  %v1538_v31 = vsel %vm4930_vm13, %v1536_v14, %v1537_v43  ;;  %v1543_v15 = vrot.slane %v1541_v38, 4  ;;  %v1544_v28 = vrot.slane %v5471_v61, 5  ;;  %v394_v43 = vld [vmem:[%s4872_s28 + $0x7c] sm:$0xf] }
  0xf4   : > { %v1301_v53 = vrot.slane %v1299_v48, 4  ;;  %v1304_v21 = vrot.slane %v1302_v60, 5  ;;  %2415 = vmatprep.mubr.bf16.mxu0 %v5519_v27  ;;  %v1308_v16 = vshll.u32 %v5523_v0, 16  ;;  %v1312_v50 = vshrl.u32 %v5523_v0, 16  ;;  %v301_v60 = vld [vmem:[#allocation2 + $0xc0] sm:$0x1] }
  0xf5   : > { %2416 = vmatmul.mubr.bf16.gmra.mxu0 %v5506_v58  ;;  %v5540_v30 = vcombine.low %v1535_v62, %v1538_v31  ;;  %v3548_v48 = vrot.slane %v5466_v29, 9  ;;  %v5548_v55 = vcombine.low %v5508_v49, %v5523_v0  ;;  %v302_v14 = vsel %vm4884_vm2, 0, %v301_v60 }
  0xf6   : > { %v1305_v4 = vor.u32 %v1304_v21, %v1301_v53  ;;  %v1012_v59 = vld [vmem:[#allocation2 + $0x8c] sm:$0x1]  ;;  %v1310_v12 = vrot.slane %v1308_v16, 5  ;;  %v1314_v19 = vrot.slane %v1312_v50, 4  ;;  %v653_v16 = vshrl.u32 %v393_v25, 16 }
  0xf7   : > { %v1318_v26 = vshll.u32 %v1012_v59, 16  ;;  %2561 = vmatmul.mubr.bf16.gmra.mxu1 %v5525_v46  ;;  %303 = vst [vmem:[#allocation2 + $0xc0] sm:$0x1] %v302_v14  ;;  %v656_v29 = vshll.u32 %v393_v25, 16  ;;  %v661_v50 = vshrl.u32 %v394_v43, 16  ;;  %v1542_v61 = vsel %vm4930_vm13, %v3548_v48, %v1541_v38  ;;  %v4530_v25 = vld [vmem:[#allocation6 + $0x230] sm:$0xff]  }
  0xf8   : > { %v1306_v41 = vrot.slane %v1305_v4, 4  ;;  %v1315_v23 = vor.u32 %v1314_v19, %v1310_v12  ;;  %2568 = vmatprep.mubr.bf16.mxu1 %v5506_v58  ;;  %v664_v4 = vshll.u32 %v394_v43, 16  ;;  %v1545_v19 = vsel %vm4930_vm13, %v1543_v15, %v1544_v28 }
  0xf9   : > { %v1320_v34 = vrot.slane %v1318_v26, 5  ;;  %v655_v26 = vrot.slane %v653_v16, 7  ;;  %v3549_v38 = vrot.slane %v5508_v49, 9  ;;  %v1551_v60 = vrot.slane %v1012_v59, 5  ;;  %v4544_v59 = vld [vmem:[#allocation2 + $0x94] sm:$0xf] }
  0xfa   : > { %v1311_v13 = vsel %vm4941_vm14, %v1306_v41, %v1310_v12  ;;  %v1316_v52 = vrot.slane %v1315_v23, 4  ;;  %v357_v12 = vld [vmem:[#allocation2 + $0xc8] sm:$0x1]  ;;  %v1548_v41 = vrot.slane %v5523_v0, 5  ;;  %v663_v23 = vrot.slane %v661_v50, 7 }
  0xfb   : > { %v659_v62 = vrot.slane %v655_v26, 4  ;;  %v358_v31 = vsel %vm4890_vm4, 0, %v357_v12  ;;  %v1555_v28 = vrot.slane %v4544_v59, 5 }
  0xfc   : > { %v1321_v53 = vsel %vm4941_vm14, %v1316_v52, %v1320_v34  ;;  %v5568_v34 = vcombine.low %v1542_v61, %v1545_v19  ;;  %v666_v52 = vor.u32 %v664_v4, %v663_v23  ;;  %359 = vst [vmem:[#allocation2 + $0xc8] sm:$0x1] %v358_v31  ;;  %v1550_v48 = vrot.slane %v1548_v41, 4  ;;  %v4546_v4 = vld [vmem:[#allocation2 + $0x98] sm:$0x1] }
  0xfd   : > { %v5552_v21 = vcombine.low %v1311_v13, %v1321_v53  ;;  %v658_v13 = vor.u32 %v656_v29, %v655_v26  ;;  %v1549_v49 = vsel %vm4930_vm13, %v3549_v38, %v1548_v41  ;;  %v1557_v50 = vrot.slane %v1555_v28, 4 }
  0xfe   : > { %v667_v0 = vsel %vm4913_vm10, %v659_v62, %v666_v52  ;;  %v825_v53 = vld [vmem:[#allocation2 + $0xc0] sm:$0xf]  ;;  %v1552_v37 = vsel %vm4930_vm13, %v1550_v48, %v1551_v60  ;;  %v1558_v12 = vrot.slane %v4546_v4, 5 }
  0xff   : > { %2423 = vmatprep.mubr.bf16.mxu0 %v5552_v21  ;;  %2569 = vmatmul.mubr.bf16.gmra.mxu1 %v5540_v30  ;;  %828 = vst [vmem:[#allocation2 + $0xc4] sm:$0xf] %v667_v0  ;;  %v826_v15 = vsel %vm4920_vm12, %v658_v13, %v825_v53  ;;  %v5584_v14 = vcombine.low %v1549_v49, %v1552_v37  ;;  %v4547_v62 = vld [vmem:[#allocation2 + $0xa0] sm:$0xf]  ;;  %v4539_v53 = vld [vmem:[#allocation6 + $0x218] sm:$0xff]  }
 0x100   : > { %2424 = vmatmul.mubr.bf16.gmra.mxu0 %v5548_v55  ;;  %2576 = vmatprep.mubr.bf16.mxu1 %v5548_v55  ;;  %827 = vst [vmem:[#allocation2 + $0xc0] sm:$0xf] %v826_v15  ;;  %v1562_v31 = vrot.slane %v4547_v62, 5  ;;  %v1559_v52 = vsel %vm4930_vm13, %v1557_v50, %v1558_v12  ;;  %v4540_v62 = vld [vmem:[#allocation6 + $0x210] sm:$0xff]  }
 0x101   : > { %2657 = vmatprep.mubr.bf16.mxu0 %v5192_v6  ;;  %v668_v6 = vrot.slane %v663_v23, 4 }
 0x102   : > { %v1564_v4 = vrot.slane %v1562_v31, 4 }
 0x103   : > { %v829_v43 = vld [vmem:[#allocation2 + $0xc8] sm:$0x1] }
 0x104   : > { %v830_v29 = vsel %vm4884_vm2, %v668_v6, %v829_v43 }
 0x105   : > { %831 = vst [vmem:[#allocation2 + $0xc8] sm:$0x1] %v830_v29 }
 0x106   : > { %v5588_v61 = vld [vmem:[#allocation2 + $0xc4] sm:$0xf] }
 0x107   : > { %2577 = vmatmul.mubr.bf16.gmra.mxu1 %v5568_v34  ;;  %v1595_v19 = vshrl.u32 %v5588_v61, 16  ;;  %v1610_v41 = vrot.slane %v5588_v61, 5  ;;  %v1591_v26 = vshll.u32 %v5588_v61, 16  ;;  %v5596_v13 = vld [vmem:[#allocation2 + $0xc0] sm:$0xf] }
 0x108   : > { %2658 = vmatmul.mubr.bf16.vlgmr.msra.gmra.mxu0 %v5041_v42  ;;  %2584 = vmatprep.mubr.bf16.mxu1 %v4992_v24  ;;  %v4545_v42 = vld [vmem:[#allocation2 + $0x90] sm:$0xf]  ;;  %v1582_v38 = vshrl.u32 %v5596_v13, 16  ;;  %v1585_v48 = vshll.u32 %v5596_v13, 16  ;;  %v3554_v60 = vrot.slane %v5596_v13, 9 }
 0x109   : > { %4324 = vmatpush3.bf16.msra.mxu0 %v5323_v18  ;;  %2665 = vmatprep.mubr.bf16.mxu0 %v5265_v3  ;;  %v3550_v16 = vrot.slane %v4545_v42, 9  ;;  %v4536_v18 = vld [vmem:[#allocation6 + $0x220] sm:$0xff]   ;;  %v1593_v0 = vrot.slane %v1591_v26, 5  ;;  %v1612_v15 = vrot.slane %v1610_v41, 4  ;;  %v4549_v42 = vld [vmem:[#allocation2 + $0xa4] sm:$0x1] }
 0x10a   : > { %4325 = vmatprep.subr.bf16.mxu0 %v4530_v25  ;;  %v1611_v6 = vsel %vm4930_vm13, %v3554_v60, %v1610_v41  ;;  %v1584_v49 = vrot.slane %v1582_v38, 4  ;;  %v1587_v37 = vrot.slane %v1585_v48, 5  ;;  %v4550_v60 = vld [vmem:[#allocation2 + $0xac] sm:$0xf] }
 0x10b   : > { %v1556_v23 = vsel %vm4930_vm13, %v3550_v16, %v1555_v28  ;;  %v4548_v28 = vld [vmem:[#allocation2 + $0x9c] sm:$0xf]  ;;  %v1565_v16 = vrot.slane %v4549_v42, 5 }
 0x10c   : > { %v5608_v59 = vcombine.low %v1556_v23, %v1559_v52  ;;  %v3551_v43 = vrot.slane %v4548_v28, 9  ;;  %v1027_v29 = vld [vmem:[#allocation2 + $0xc8] sm:$0x1]  ;;  %v1588_v12 = vor.u32 %v1587_v37, %v1584_v49 }
 0x10d   : > { %4326 = vmatpush3.bf16.msra.mxu0 %v4530_v25  ;;  %v1597_v25 = vrot.slane %v1595_v19, 4  ;;  %v1601_v19 = vshll.u32 %v1027_v29, 16  ;;  %v4551_v28 = vld [vmem:[#allocation2 + $0xa8] sm:$0xf] }
 0x10e   : > { %4327 = vmatprep.subr.bf16.mxu0 %v4533_v47  ;;  %v1589_v38 = vrot.slane %v1588_v12, 4  ;;  %v1563_v52 = vsel %vm4930_vm13, %v3551_v43, %v1562_v31  ;;  %v3552_v43 = vrot.slane %v4551_v28, 9 }
 0x10f   : > { %2585 = vmatmul.mubr.bf16.gmra.mxu1 %v5584_v14  ;;  %v1598_v50 = vor.u32 %v1597_v25, %v1593_v0  ;;  %v1603_v23 = vrot.slane %v1601_v19, 5  ;;  %v1569_v25 = vrot.slane %v4550_v60, 5  ;;  %v5642_v19 = vcombine.low %v5596_v13, %v5588_v61  ;;  %v304_v61 = vld [vmem:[#allocation2 + $0xcc] sm:$0x1] }
 0x110   : > { %2666 = vmatmul.mubr.bf16.gmra.mxu0 %v5106_v56  ;;  %2592 = vmatprep.mubr.bf16.mxu1 %v5057_v2  ;;  %v305_v60 = vsel %vm4884_vm2, 0, %v304_v61  ;;  %v6379_v61 = vld [vmem:[#allocation21_spill] sm:$0xff] }
 0x111   : > { %2673 = vmatprep.mubr.bf16.mxu0 %v5326_v39  ;;  %4328 = vmatpush3.bf16.msra.mxu0 %v4533_v47  ;;  %v1613_v47 = vrot.slane %v1027_v29, 5  ;;  %v1599_v26 = vrot.slane %v1598_v50, 4  ;;  %v1571_v42 = vrot.slane %v1569_v25, 4  ;;  %306 = vst [vmem:[#allocation2 + $0xcc] sm:$0x1] %v305_v60 }
 0x112   : > { %4329 = vmatprep.subr.bf16.mxu0 %v4536_v18 }
 0x113   : > { %v1614_v41 = vsel %vm4930_vm13, %v1612_v15, %v1613_v47  ;;  %v1594_v15 = vsel %vm4941_vm14, %v1589_v38, %v1593_v0  ;;  %v1604_v49 = vsel %vm4941_vm14, %v1599_v26, %v1603_v23  ;;  %v4542_v0 = vld [vmem:[#allocation6 + $0x200] sm:$0xff]   ;;  %v4554_v26 = vld [vmem:[#allocation2 + $0xb4] sm:$0xf] }
 0x114   : > { %v5615_v48 = vcombine.low %v1611_v6, %v1614_v41  ;;  %v5626_v31 = vcombine.low %v1594_v15, %v1604_v49  ;;  %v4541_v6 = vld [vmem:[#allocation6 + $0x208] sm:$0xff]   ;;  %v4555_v38 = vld [vmem:[#allocation2 + $0xbc] sm:$0x1]  ;;  %v360_v15 = vld [vmem:[#allocation2 + $0xd4] sm:$0x1] }
 0x115   : > { %4330 = vmatpush3.bf16.msra.mxu0 %v4536_v18  ;;  %v1566_v18 = vsel %vm4930_vm13, %v1564_v4, %v1565_v16  ;;  %v4552_v16 = vld [vmem:[#allocation2 + $0xb0] sm:$0x1]  ;;  %v4553_v4 = vld [vmem:[#allocation2 + $0xb8] sm:$0xf]  ;;  %v1579_v23 = vrot.slane %v4555_v38, 5  ;;  %v361_v49 = vsel %vm4890_vm4, 0, %v360_v15 }
 0x116   : > { %4331 = vmatprep.subr.bf16.mxu0 %v4539_v53  ;;  %v5628_v37 = vcombine.low %v1563_v52, %v1566_v18  ;;  %v1572_v29 = vrot.slane %v4552_v16, 5  ;;  %v1576_v47 = vrot.slane %v4553_v4, 5  ;;  %362 = vst [vmem:[#allocation2 + $0xd4] sm:$0x1] %v361_v49  ;;  %v6380_v15 = vld [vmem:[#allocation15_spill] sm:$0xff] }
 0x117   : > { %2593 = vmatmul.mubr.bf16.gmra.mxu1 %v5608_v59 }
 0x118   : > { %2674 = vmatmul.mubr.bf16.gmra.mxu0 %v5153_v32  ;;  %2600 = vmatprep.mubr.bf16.mxu1 %v5109_v7  ;;  %v1573_v50 = vsel %vm4930_vm13, %v1571_v42, %v1572_v29  ;;  %v1578_v41 = vrot.slane %v1576_v47, 4 }
 0x119   : > { %2681 = vmatprep.mubr.bf16.mxu0 %v5366_v57  ;;  %4332 = vmatpush3.bf16.msra.mxu0 %v4539_v53  ;;  %v1570_v53 = vsel %vm4930_vm13, %v3552_v43, %v1569_v25 }
 0x11a   : > { %4333 = vmatprep.subr.bf16.mxu0 %v4540_v62  ;;  %v5638_v12 = vcombine.low %v1570_v53, %v1573_v50  ;;  %v1580_v18 = vsel %vm4930_vm13, %v1578_v41, %v1579_v23  ;;  %v6378_v41 = vld [vmem:[#allocation20_spill] sm:$0xff] }
 0x11d   : > { %4334 = vmatpush3.bf16.msra.mxu0 %v4540_v62  ;;  %v3553_v62 = vrot.slane %v4554_v26, 9 }
 0x11e   : > { %4335 = vmatprep.subr.bf16.mxu0 %v4541_v6 }
 0x11f   : > { %2601 = vmatmul.mubr.bf16.gmra.mxu1 %v5628_v37  ;;  %v1577_v52 = vsel %vm4930_vm13, %v3553_v62, %v1576_v47  ;;  %v6377_v47 = vld [vmem:[#allocation19_spill] sm:$0xff] }
 0x120   : > { %2682 = vmatmul.mubr.bf16.gmra.mxu0 %v5233_v33  ;;  %2608 = vmatprep.mubr.bf16.mxu1 %v5176_v35  ;;  %v5652_v13 = vcombine.low %v1577_v52, %v1580_v18 }
 0x121   : > { %2689 = vmatprep.mubr.bf16.mxu0 %v5413_v22  ;;  %4336 = vmatpush3.bf16.msra.mxu0 %v4541_v6 }
 0x122   : > { %4337 = vmatprep.subr.bf16.mxu0 %v4542_v0 }
 0x125   : > { %4338 = vmatpush3.bf16.msra.mxu0 %v4542_v0 }
 0x127   : > { %2609 = vmatmul.mubr.bf16.gmra.mxu1 %v5638_v12 }
 0x128   : > { %2690 = vmatmul.mubr.bf16.gmra.mxu0 %v5299_v36  ;;  %2616 = vmatprep.mubr.bf16.mxu1 %v5642_v19 }
 0x129   : > { %2697 = vmatprep.mubr.bf16.mxu0 %v5455_v5 }
 0x12e   : > { %v3867_v25 = vpop.f32.mrf.mxu0 }
 0x12f   : > { %2617 = vmatmul.mubr.bf16.gmra.mxu1 %v5652_v13 }
 0x130   : > { %2698 = vmatmul.mubr.bf16.gmra.mxu0 %v5333_v20  ;;  %2818 = vmatprep.mubr.bf16.mxu1 %v5106_v56  ;;  %v3868_v6 = vpop.f32.mrf.mxu0 }
 0x131   : > { %2705 = vmatprep.mubr.bf16.mxu0 %v5494_v9  ;;  %v5662_v28 = vadd.f32 %v3868_v6, %v3867_v25 }
 0x132   : > { %v5670_v42 = vpop.f32.mrf.mxu0 }
 0x137   : > { %2819 = vmatmul.mubr.bf16.vlgmr.msra.gmra.mxu1 %v5102_v44  ;;  %v3939_v8 = vpop.f32.mrf.mxu1  ;;  %v5677_v44 = vpop.f32.mrf.mxu0 }
 0x138   : > { %2706 = vmatmul.mubr.bf16.gmra.mxu0 %v5391_v45  ;;  %2826 = vmatprep.mubr.bf16.mxu1 %v5153_v32 }
 0x139   : > { %2713 = vmatprep.mubr.bf16.mxu0 %v5525_v46  ;;  %v3940_v11 = vpop.f32.mrf.mxu1 }
 0x13a   : > { %v5668_v43 = vadd.f32 %v3940_v11, %v3939_v8 }
 0x13b   : > { %v3942_v56 = vpop.f32.mrf.mxu1 }
 0x13d   : > { %v3943_v16 = vpop.f32.mrf.mxu1 }
 0x13e   : > { %v5673_v29 = vadd.f32 %v3943_v16, %v3942_v56  ;;  %v6381_v16 = vld [vmem:[#allocation22_spill] sm:$0xff] }
 0x13f   : > { %2827 = vmatmul.mubr.bf16.gmra.mxu1 %v5146_v17 }
 0x140   : > { %2714 = vmatmul.mubr.bf16.gmra.mxu0 %v5429_v40  ;;  %2834 = vmatprep.mubr.bf16.mxu1 %v5233_v33  ;;  %v3873_v32 = vpop.f32.mrf.mxu0 }
 0x141   : > { %2721 = vmatprep.mubr.bf16.mxu0 %v5540_v30 }
 0x142   : > { %v3874_v0 = vpop.f32.mrf.mxu0 }
 0x143   : > { %v5681_v53 = vadd.f32 %v3874_v0, %v3873_v32  ;;  %v6382_v0 = vld [vmem:[#allocation16_spill] sm:$0xff] }
 0x145   : > { %v3945_v17 = vpop.f32.mrf.mxu1 }
 0x147   : > { %2835 = vmatmul.mubr.bf16.gmra.mxu1 %v5222_v1  ;;  %v3946_v50 = vpop.f32.mrf.mxu1  ;;  %v5691_v1 = vpop.f32.mrf.mxu0 }
 0x148   : > { %2722 = vmatmul.mubr.bf16.gmra.mxu0 %v5483_v51  ;;  %2842 = vmatprep.mubr.bf16.mxu1 %v5299_v36  ;;  %v5686_v4 = vadd.f32 %v3946_v50, %v3945_v17 }
 0x149   : > { %2729 = vmatprep.mubr.bf16.mxu0 %v5568_v34  ;;  %v3948_v33 = vpop.f32.mrf.mxu1  ;;  %v5696_v36 = vpop.f32.mrf.mxu0 }
 0x14b   : > { %v3949_v26 = vpop.f32.mrf.mxu1 }
 0x14c   : > { %v5693_v62 = vadd.f32 %v3949_v26, %v3948_v33  ;;  %v6383_v26 = vld [vmem:[#allocation17_spill] sm:$0xff] }
 0x14f   : > { %2843 = vmatmul.mubr.bf16.gmra.mxu1 %v6377_v47 }
 0x150   : > { %2730 = vmatmul.mubr.bf16.gmra.mxu0 %v5519_v27  ;;  %2850 = vmatprep.mubr.bf16.mxu1 %v5333_v20 }
 0x151   : > { %2737 = vmatprep.mubr.bf16.mxu0 %v5584_v14 }
 0x155   : > { %v3879_v38 = vpop.f32.mrf.mxu0 }
 0x157   : > { %2851 = vmatmul.mubr.bf16.gmra.mxu1 %v6378_v41  ;;  %v3880_v23 = vpop.f32.mrf.mxu0 }
 0x158   : > { %2738 = vmatmul.mubr.bf16.gmra.mxu0 %v5552_v21  ;;  %2858 = vmatprep.mubr.bf16.mxu1 %v5391_v45  ;;  %v5702_v52 = vadd.f32 %v3880_v23, %v3879_v38 }
 0x159   : > { %2745 = vmatprep.mubr.bf16.mxu0 %v5608_v59  ;;  %v3882_v20 = vpop.f32.mrf.mxu0 }
 0x15b   : > { %v3883_v18 = vpop.f32.mrf.mxu0 }
 0x15c   : > { %v3951_v60 = vpop.f32.mrf.mxu1  ;;  %v5705_v25 = vadd.f32 %v3883_v18, %v3882_v20  ;;  %v5733_v18 = vld [vmem:[%s6327_s2] ss:$0 sm:$0xff] }
 0x15e   : > { %v3952_v45 = vpop.f32.mrf.mxu1 }
 0x15f   : > { %2859 = vmatmul.mubr.bf16.gmra.mxu1 %v6379_v61  ;;  %v5710_v49 = vadd.f32 %v3952_v45, %v3951_v60  ;;  %v2338_v60 = vadd.f32 %v5662_v28, %v5733_v18  ;;  %v3872_v45 = vadd.f32 %v5677_v44, %v5670_v42 }
 0x160   : > { %2746 = vmatmul.mubr.bf16.gmra.mxu0 %v6380_v15  ;;  %2866 = vmatprep.mubr.bf16.mxu1 %v5429_v40  ;;  %v3954_v6 = vpop.f32.mrf.mxu1 }
 0x161   : > { %2753 = vmatprep.mubr.bf16.mxu0 %v5628_v37 }
 0x162   : > { %v3955_v8 = vpop.f32.mrf.mxu1  ;;  %v3885_v11 = vpop.f32.mrf.mxu0 }
 0x163   : > { %v5712_v56 = vadd.f32 %v3955_v8, %v3954_v6 }
 0x164   : > { %v3886_v32 = vpop.f32.mrf.mxu0 }
 0x165   : > { %v5717_v17 = vadd.f32 %v3886_v32, %v3885_v11 }
 0x166   : > { %v3888_v40 = vpop.f32.mrf.mxu0 }
 0x167   : > { %2867 = vmatmul.mubr.bf16.gmra.mxu1 %v6381_v16 }
 0x168   : > { %2754 = vmatmul.mubr.bf16.gmra.mxu0 %v6382_v0  ;;  %2874 = vmatprep.mubr.bf16.mxu1 %v5483_v51  ;;  %v3889_v50 = vpop.f32.mrf.mxu0 }
 0x169   : > { %2761 = vmatprep.mubr.bf16.mxu0 %v5638_v12  ;;  %v5720_v33 = vadd.f32 %v3889_v50, %v3888_v40 }
 0x16b   : > { %v3957_v47 = vpop.f32.mrf.mxu1 }
 0x16d   : > { %v3958_v41 = vpop.f32.mrf.mxu1 }
 0x16e   : > { %v5726_v38 = vadd.f32 %v3958_v41, %v3957_v47 }
 0x16f   : > { %2875 = vmatmul.mubr.bf16.gmra.mxu1 %v5464_v10  ;;  %v3960_v51 = vpop.f32.mrf.mxu1  ;;  %v6384_v10 = vld [vmem:[#allocation18_spill] sm:$0xff] }
 0x170   : > { %2762 = vmatmul.mubr.bf16.gmra.mxu0 %v6383_v26  ;;  %2882 = vmatprep.mubr.bf16.mxu1 %v5519_v27 }
 0x171   : > { %2769 = vmatprep.mubr.bf16.mxu0 %v5652_v13  ;;  %v3961_v23 = vpop.f32.mrf.mxu1 }
 0x172   : > { %v5728_v20 = vadd.f32 %v3961_v23, %v3960_v51  ;;  %v2346_v23 = vadd.f32 %v5681_v53, %v5733_v18 }
 0x173   : > { %v3979_v61 = vpop.f32.mrf.mxu1 }
 0x175   : > { %v3980_v27 = vpop.f32.mrf.mxu1 }
 0x176   : > { %v3981_v8 = vadd.f32 %v3980_v27, %v3979_v61  ;;  %v3878_v61 = vadd.f32 %v5696_v36, %v5691_v1  ;;  %v2354_v36 = vadd.f32 %v5702_v52, %v5733_v18 }
 0x177   : > { %2883 = vmatmul.mubr.bf16.gmra.mxu1 %v5506_v58  ;;  %v3982_v11 = vpop.f32.mrf.mxu1 }
 0x178   : > { %2770 = vmatmul.mubr.bf16.gmra.mxu0 %v6384_v10  ;;  %2890 = vmatprep.mubr.bf16.mxu1 %v5552_v21  ;;  %v3891_v6 = vpop.f32.mrf.mxu0  ;;  %v5743_v32 = vadd.f32 %v3981_v8, %v2338_v60  ;;  %v2341_v21 = vadd.f32 %v3872_v45, %v5733_v18 }
 0x179   : > { %2777 = vmatprep.mubr.bf16.mxu0 %v5615_v48  ;;  %v3983_v40 = vpop.f32.mrf.mxu1 }
 0x17a   : > { %v3892_v16 = vpop.f32.mrf.mxu0  ;;  %v3984_v47 = vadd.f32 %v3983_v40, %v3982_v11 }
 0x17b   : > { %v5745_v58 = vadd.f32 %v3892_v16, %v3891_v6  ;;  %v3985_v41 = vpop.f32.mrf.mxu1  ;;  %v2349_v6 = vadd.f32 %v3878_v61, %v5733_v18 }
 0x17c   : > { %v3894_v50 = vpop.f32.mrf.mxu0  ;;  %v5750_v42 = vadd.f32 %v3984_v47, %v2341_v21 }
 0x17d   : > { %v3986_v51 = vpop.f32.mrf.mxu1 }
 0x17e   : > { %v3895_v28 = vpop.f32.mrf.mxu0  ;;  %v3987_v27 = vadd.f32 %v3986_v51, %v3985_v41 }
 0x17f   : > { %2891 = vmatmul.mubr.bf16.gmra.mxu1 %v5548_v55  ;;  %v5754_v44 = vadd.f32 %v3895_v28, %v3894_v50  ;;  %v3988_v55 = vpop.f32.mrf.mxu1  ;;  %v5777_v28 = vld [vmem:[#allocation2 + $0xcc] sm:$0xf] }
 0x180   : > { %2778 = vmatmul.mubr.bf16.gmra.mxu0 %v5626_v31  ;;  %2898 = vmatprep.mubr.bf16.mxu1 %v6380_v15  ;;  %v5760_v60 = vadd.f32 %v3987_v27, %v2346_v23  ;;  %v5781_v23 = vld [vmem:[#allocation2 + $0xd0] sm:$0xf] }
 0x181   : > { %4339 = vmatprep.mubr.bf16.mxu0 %v5265_v3  ;;  %v3989_v45 = vpop.f32.mrf.mxu1 }
 0x182   : > { %v3990_v15 = vadd.f32 %v3989_v45, %v3988_v55  ;;  %v1616_v55 = vshrl.u32 %v5777_v28, 16 }
 0x184   : > { %v5765_v16 = vadd.f32 %v3990_v15, %v2349_v6  ;;  %v1619_v6 = vshll.u32 %v5777_v28, 16 }
 0x185   : > { %v3897_v8 = vpop.f32.mrf.mxu0 }
 0x186   : > { %v3991_v11 = vpop.f32.mrf.mxu1 }
 0x187   : > { %2899 = vmatmul.mubr.bf16.gmra.mxu1 %v4992_v24  ;;  %v3898_v3 = vpop.f32.mrf.mxu0 }
 0x188   : > { %4340 = vmatmul.mubr.bf16.vlgmr.msra.gmra.mxu0 %v5326_v39  ;;  %2906 = vmatprep.mubr.bf16.mxu1 %v6382_v0  ;;  %v5769_v53 = vadd.f32 %v3898_v3, %v3897_v8  ;;  %v3992_v1 = vpop.f32.mrf.mxu1  ;;  %v1625_v8 = vshll.u32 %v5781_v23, 16 }
 0x189   : > { %4343 = vmatprep.mubr.bf16.mxu0 %v5366_v57  ;;  %v3900_v40 = vpop.f32.mrf.mxu0  ;;  %v3993_v21 = vadd.f32 %v3992_v1, %v3991_v11  ;;  %v2357_v57 = vadd.f32 %v5705_v25, %v5733_v18 }
 0x18a   : > { %v3994_v50 = vpop.f32.mrf.mxu1 }
 0x18b   : > { %v3901_v47 = vpop.f32.mrf.mxu0  ;;  %v5773_v24 = vadd.f32 %v3993_v21, %v2354_v36  ;;  %v1618_v36 = vrot.slane %v1616_v55, 4  ;;  %v1621_v21 = vrot.slane %v1619_v6, 5  ;;  %v2370_v6 = vadd.f32 %v5745_v58, %v5733_v18 }
 0x18c   : > { %v5775_v39 = vadd.f32 %v3901_v47, %v3900_v40  ;;  %v3995_v41 = vpop.f32.mrf.mxu1 }
 0x18d   : > { %v3903_v0 = vpop.f32.mrf.mxu0  ;;  %v3996_v51 = vadd.f32 %v3995_v41, %v3994_v50  ;;  %v1627_v50 = vrot.slane %v1625_v8, 5  ;;  %v2365_v41 = vadd.f32 %v5720_v33, %v5733_v18  ;;  %v1622_v55 = vor.u32 %v1621_v21, %v1618_v36 }
 0x18e   : > { %v3997_v61 = vpop.f32.mrf.mxu1 }
 0x18f   : > { %2907 = vmatmul.mubr.bf16.gmra.mxu1 %v5057_v2  ;;  %v3904_v52 = vpop.f32.mrf.mxu0  ;;  %v5785_v27 = vadd.f32 %v3996_v51, %v2357_v57  ;;  %v1629_v2 = vshrl.u32 %v5781_v23, 16 }
 0x190   : > { %4344 = vmatmul.mubr.bf16.gmra.mxu0 %v5413_v22  ;;  %2914 = vmatprep.mubr.bf16.mxu1 %v6383_v26  ;;  %v5790_v45 = vadd.f32 %v3904_v52, %v3903_v0  ;;  %v3998_v25 = vpop.f32.mrf.mxu1  ;;  %v2362_v22 = vadd.f32 %v5717_v17, %v5733_v18  ;;  %v5803_v0 = vld [vmem:[#allocation2 + $0xd4] sm:$0x1] }
 0x191   : > { %4347 = vmatprep.mubr.bf16.mxu0 %v5455_v5  ;;  %v3906_v15 = vpop.f32.mrf.mxu0  ;;  %v3999_v11 = vadd.f32 %v3998_v25, %v3997_v61  ;;  %v1631_v47 = vrot.slane %v1629_v2, 4  ;;  %v1635_v33 = vshll.u32 %v5803_v0, 16 }
 0x192   : > { %v4000_v3 = vpop.f32.mrf.mxu1 }
 0x193   : > { %v3907_v26 = vpop.f32.mrf.mxu0  ;;  %v5797_v1 = vadd.f32 %v3999_v11, %v2362_v22  ;;  %v1632_v25 = vor.u32 %v1631_v47, %v1627_v50 }
 0x194   : > { %v5799_v5 = vadd.f32 %v3907_v26, %v3906_v15  ;;  %v4001_v40 = vpop.f32.mrf.mxu1  ;;  %v2373_v26 = vadd.f32 %v5754_v44, %v5733_v18 }
 0x195   : > { %v4002_v57 = vadd.f32 %v4001_v40, %v4000_v3  ;;  %v1633_v3 = vrot.slane %v1632_v25, 4 }
 0x196   : > { %v4003_v17 = vpop.f32.mrf.mxu1 }
 0x197   : > { %2915 = vmatmul.mubr.bf16.gmra.mxu1 %v5109_v7  ;;  %v5807_v51 = vadd.f32 %v4002_v57, %v2365_v41 }
 0x198   : > { %4348 = vmatmul.mubr.bf16.gmra.mxu0 %v5494_v9  ;;  %2922 = vmatprep.mubr.bf16.mxu1 %v6384_v10  ;;  %v3909_v61 = vpop.f32.mrf.mxu0  ;;  %v4004_v52 = vpop.f32.mrf.mxu1  ;;  %v1623_v10 = vrot.slane %v1622_v55, 4 }
 0x199   : > { %4351 = vmatprep.mubr.bf16.mxu0 %v5525_v46  ;;  %v4005_v8 = vadd.f32 %v4004_v52, %v4003_v17  ;;  %v1637_v46 = vrot.slane %v1635_v33, 5  ;;  %v2378_v17 = vadd.f32 %v5769_v53, %v5733_v18 }
 0x19a   : > { %v3910_v2 = vpop.f32.mrf.mxu0  ;;  %v4006_v7 = vpop.f32.mrf.mxu1  ;;  %v1628_v57 = vsel %vm4941_vm14, %v1623_v10, %v1627_v50  ;;  %v3607_v10 = vcombine.low %v5777_v28, %v5781_v23 }
 0x19b   : > { %v3911_v22 = vadd.f32 %v3910_v2, %v3909_v61  ;;  %v5814_v9 = vadd.f32 %v4005_v8, %v2370_v6  ;;  %v1638_v44 = vsel %vm4941_vm14, %v1633_v3, %v1637_v46  ;;  %v2389_v46 = vadd.f32 %v5799_v5, %v5733_v18 }
 0x19c   : > { %v3912_v15 = vpop.f32.mrf.mxu0  ;;  %v4007_v11 = vpop.f32.mrf.mxu1  ;;  %v3608_v25 = vcombine.low %v1628_v57, %v1638_v44 }
 0x19d   : > { %v4008_v36 = vadd.f32 %v4007_v11, %v4006_v7  ;;  %v2394_v44 = vadd.f32 %v3911_v22, %v5733_v18 }
 0x19e   : > { %v3913_v40 = vpop.f32.mrf.mxu0  ;;  %v4009_v21 = vpop.f32.mrf.mxu1 }
 0x19f   : > { %2923 = vmatmul.mubr.bf16.gmra.mxu1 %v5176_v35  ;;  %v3914_v58 = vadd.f32 %v3913_v40, %v3912_v15  ;;  %v5820_v47 = vadd.f32 %v4008_v36, %v2373_v26  ;;  %v2386_v15 = vadd.f32 %v5790_v45, %v5733_v18 }
 0x1a0   : > { %4352 = vmatmul.mubr.bf16.gmra.mxu0 %v5540_v30  ;;  %2930 = vmatprep.mubr.bf16.mxu1 %v5626_v31  ;;  %v4010_v41 = vpop.f32.mrf.mxu1 }
 0x1a1   : > { %4355 = vmatprep.mubr.bf16.mxu0 %v5568_v34  ;;  %v4011_v61 = vadd.f32 %v4010_v41, %v4009_v21  ;;  %v2381_v34 = vadd.f32 %v5775_v39, %v5733_v18  ;;  %v1644_v41 = vrot.slane %v5781_v23, 5 }
 0x1a2   : > { %v3915_v35 = vpop.f32.mrf.mxu0  ;;  %v4012_v30 = vpop.f32.mrf.mxu1 }
 0x1a3   : > { %v5830_v55 = vadd.f32 %v4011_v61, %v2378_v17 }
 0x1a4   : > { %v3916_v52 = vpop.f32.mrf.mxu0  ;;  %v4013_v33 = vpop.f32.mrf.mxu1 }
 0x1a5   : > { %v3917_v31 = vadd.f32 %v3916_v52, %v3915_v35  ;;  %v4014_v50 = vadd.f32 %v4013_v33, %v4012_v30  ;;  %v1646_v33 = vrot.slane %v1644_v41, 4 }
 0x1a6   : > { %v3918_v6 = vpop.f32.mrf.mxu0  ;;  %v4015_v8 = vpop.f32.mrf.mxu1 }
 0x1a7   : > { %2931 = vmatmul.mubr.bf16.gmra.mxu1 %v5642_v19  ;;  %v5836_v53 = vadd.f32 %v4014_v50, %v2381_v34 }
 0x1a8   : > { %4356 = vmatmul.mubr.bf16.gmra.mxu0 %v5584_v14  ;;  %v3919_v63 = vpop.f32.mrf.mxu0  ;;  %2938 = vmatprep.mubr.bf16.mxu1 %v3608_v25  ;;  %v4016_v7 = vpop.f32.mrf.mxu1  ;;  %v3555_v25 = vrot.slane %v5777_v28, 9 }
 0x1a9   : > { %v3920_v2 = vadd.f32 %v3919_v63, %v3918_v6  ;;  %4359 = vmatprep.mubr.bf16.mxu0 %v5608_v59  ;;  %v4017_v11 = vadd.f32 %v4016_v7, %v4015_v8 }
 0x1aa   : > { %v4018_v39 = vpop.f32.mrf.mxu1 }
 0x1ab   : > { %v5843_v3 = vadd.f32 %v4017_v11, %v2386_v15 }
 0x1ac   : > { %v4019_v14 = vpop.f32.mrf.mxu1 }
 0x1ad   : > { %v3921_v19 = vpop.f32.mrf.mxu0  ;;  %v4020_v26 = vadd.f32 %v4019_v14, %v4018_v39 }
 0x1af   : > { %v3922_v36 = vpop.f32.mrf.mxu0  ;;  %v4021_v40 = vpop.f32.mrf.mxu1  ;;  %2939 = vmatmul.mubr.bf16.gmra.mxu1 %v3607_v10  ;;  %v5848_v45 = vadd.f32 %v4020_v26, %v2389_v46  ;;  %v2405_v46 = vadd.f32 %v3920_v2, %v5733_v18 }
 0x1b0   : > { %4360 = vmatmul.mubr.bf16.gmra.mxu0 %v5628_v37  ;;  %v3923_v59 = vadd.f32 %v3922_v36, %v3921_v19  ;;  %v1647_v37 = vrot.slane %v5803_v0, 5  ;;  %v1645_v0 = vsel %vm4930_vm13, %v3555_v25, %v1644_v41 }
 0x1b1   : > { %v3924_v21 = vpop.f32.mrf.mxu0  ;;  %4363 = vmatprep.mubr.bf16.mxu0 %v5638_v12  ;;  %v4022_v57 = vpop.f32.mrf.mxu1  ;;  %v2397_v12 = vadd.f32 %v3914_v58, %v5733_v18  ;;  %v2402_v58 = vadd.f32 %v3917_v31, %v5733_v18 }
 0x1b2   : > { %v4023_v17 = vadd.f32 %v4022_v57, %v4021_v40  ;;  %v1648_v28 = vsel %vm4930_vm13, %v1646_v33, %v1647_v37 }
 0x1b3   : > { %v3925_v35 = vpop.f32.mrf.mxu0  ;;  %v4024_v5 = vpop.f32.mrf.mxu1 }
 0x1b4   : > { %v3926_v61 = vadd.f32 %v3925_v35, %v3924_v21  ;;  %v5853_v30 = vadd.f32 %v4023_v17, %v2394_v44  ;;  %v2410_v21 = vadd.f32 %v3923_v59, %v5733_v18 }
 0x1b5   : > { %v3927_v52 = vpop.f32.mrf.mxu0  ;;  %v4025_v34 = vpop.f32.mrf.mxu1 }
 0x1b6   : > { %v4026_v6 = vadd.f32 %v4025_v34, %v4024_v5 }
 0x1b7   : > { %v3928_v23 = vpop.f32.mrf.mxu0  ;;  %v4027_v50 = vpop.f32.mrf.mxu1 }
 0x1b8   : > { %4364 = vmatmul.mubr.bf16.gmra.mxu0 %v5652_v13  ;;  %v3929_v22 = vadd.f32 %v3928_v23, %v3927_v52  ;;  %v5859_v8 = vadd.f32 %v4026_v6, %v2397_v12  ;;  %v3609_v13 = vcombine.low %v1645_v0, %v1648_v28  ;;  %v2413_v52 = vadd.f32 %v3926_v61, %v5733_v18 }
 0x1b9   : > { %v3930_v63 = vpop.f32.mrf.mxu0  ;;  %4367 = vmatprep.mubr.bf16.mxu0 %v5615_v48  ;;  %v4028_v7 = vpop.f32.mrf.mxu1 }
 0x1ba   : > { %v4029_v15 = vadd.f32 %v4028_v7, %v4027_v50  ;;  %v2418_v59 = vadd.f32 %v3929_v22, %v5733_v18 }
 0x1bb   : > { %v3931_v11 = vpop.f32.mrf.mxu0  ;;  %v4030_v39 = vpop.f32.mrf.mxu1 }
 0x1bc   : > { %v3932_v10 = vadd.f32 %v3931_v11, %v3930_v63  ;;  %v5867_v19 = vadd.f32 %v4029_v15, %v2402_v58 }
 0x1bd   : > { %v4031_v14 = vpop.f32.mrf.mxu1 }
 0x1be   : > { %v4032_v48 = vadd.f32 %v4031_v14, %v4030_v39  ;;  %v2421_v15 = vadd.f32 %v3932_v10, %v5733_v18 }
 0x1bf   : > { %v4033_v26 = vpop.f32.mrf.mxu1 }
 0x1c0   : > { %v3933_v36 = vpop.f32.mrf.mxu0  ;;  %4368 = vmatmul.mubr.bf16.gmra.mxu0 %v3609_v13  ;;  %v5870_v40 = vadd.f32 %v4032_v48, %v2405_v46 }
 0x1c1   : > { %v4034_v54 = vpop.f32.mrf.mxu1 }
 0x1c2   : > { %v3934_v31 = vpop.f32.mrf.mxu0  ;;  %v4035_v41 = vadd.f32 %v4034_v54, %v4033_v26 }
 0x1c3   : > { %v3935_v57 = vadd.f32 %v3934_v31, %v3933_v36  ;;  %v4036_v44 = vpop.f32.mrf.mxu1 }
 0x1c4   : > { %v3936_v17 = vpop.f32.mrf.mxu0  ;;  %v5873_v35 = vadd.f32 %v4035_v41, %v2410_v21 }
 0x1c5   : > { %v4037_v5 = vpop.f32.mrf.mxu1  ;;  %v2426_v36 = vadd.f32 %v3935_v57, %v5733_v18 }
 0x1c6   : > { %v3937_v2 = vpop.f32.mrf.mxu0  ;;  %v4038_v37 = vadd.f32 %v4037_v5, %v4036_v44 }
 0x1c7   : > { %v3938_v25 = vadd.f32 %v3937_v2, %v3936_v17  ;;  %v4039_v33 = vpop.f32.mrf.mxu1 }
 0x1c8   : > { %v4091_v34 = vpop.f32.mrf.mxu0  ;;  %v5876_v12 = vadd.f32 %v4038_v37, %v2413_v52 }
 0x1c9   : > { %v4040_v6 = vpop.f32.mrf.mxu1  ;;  %v2429_v5 = vadd.f32 %v3938_v25, %v5733_v18 }
 0x1ca   : > { %v4092_v23 = vpop.f32.mrf.mxu0  ;;  %v4041_v50 = vadd.f32 %v4040_v6, %v4039_v33 }
 0x1cb   : > { %v4093_v63 = vadd.f32 %v4092_v23, %v4091_v34  ;;  %v4042_v0 = vpop.f32.mrf.mxu1 }
 0x1cc   : > { %v4094_v28 = vpop.f32.mrf.mxu0  ;;  %v5879_v7 = vadd.f32 %v4041_v50, %v2418_v59  ;;  %v2434_v59 = vadd.f32 %v5668_v43, %v5733_v18 }
 0x1cd   : > { %v5882_v58 = vadd.f32 %v4093_v63, %v5743_v32  ;;  %v4043_v61 = vpop.f32.mrf.mxu1 }
 0x1ce   : > { %v4095_v11 = vpop.f32.mrf.mxu0  ;;  %v4044_v39 = vadd.f32 %v4043_v61, %v4042_v0 }
 0x1cf   : > { %v4096_v13 = vadd.f32 %v4095_v11, %v4094_v28  ;;  %v4045_v14 = vpop.f32.mrf.mxu1 }
 0x1d0   : > { %v4097_v46 = vpop.f32.mrf.mxu0  ;;  %v5885_v48 = vadd.f32 %v4044_v39, %v2421_v15  ;;  %v2437_v15 = vadd.f32 %v5673_v29, %v5733_v18 }
 0x1d1   : > { %v5888_v22 = vadd.f32 %v4096_v13, %v5750_v42  ;;  %v4046_v26 = vpop.f32.mrf.mxu1 }
 0x1d2   : > { %v4098_v54 = vpop.f32.mrf.mxu0  ;;  %v4047_v21 = vadd.f32 %v4046_v26, %v4045_v14 }
 0x1d3   : > { %v4099_v32 = vadd.f32 %v4098_v54, %v4097_v46  ;;  %v4048_v31 = vpop.f32.mrf.mxu1 }
 0x1d4   : > { %v4100_v41 = vpop.f32.mrf.mxu0  ;;  %v5891_v44 = vadd.f32 %v4047_v21, %v2426_v36  ;;  %v2442_v36 = vadd.f32 %v5686_v4, %v5733_v18 }
 0x1d5   : > { %v5894_v10 = vadd.f32 %v4099_v32, %v5760_v60  ;;  %v4049_v17 = vpop.f32.mrf.mxu1 }
 0x1d6   : > { %v4101_v52 = vpop.f32.mrf.mxu0  ;;  %v4050_v2 = vadd.f32 %v4049_v17, %v4048_v31 }
 0x1d7   : > { %v4102_v42 = vadd.f32 %v4101_v52, %v4100_v41  ;;  %v4051_v37 = vpop.f32.mrf.mxu1 }
 0x1d8   : > { %v4103_v33 = vpop.f32.mrf.mxu0  ;;  %v5897_v34 = vadd.f32 %v4050_v2, %v2429_v5  ;;  %v2445_v5 = vadd.f32 %v5693_v62, %v5733_v18 }
 0x1d9   : > { %v5900_v57 = vadd.f32 %v4102_v42, %v5765_v16  ;;  %v4052_v6 = vpop.f32.mrf.mxu1 }
 0x1da   : > { %v4104_v23 = vpop.f32.mrf.mxu0  ;;  %v4053_v60 = vadd.f32 %v4052_v6, %v4051_v37 }
 0x1db   : > { %v4105_v50 = vadd.f32 %v4104_v23, %v4103_v33  ;;  %v4054_v63 = vpop.f32.mrf.mxu1 }
 0x1dc   : > { %v4106_v0 = vpop.f32.mrf.mxu0  ;;  %v5904_v25 = vadd.f32 %v4053_v60, %v2434_v59  ;;  %v2450_v59 = vadd.f32 %v5710_v49, %v5733_v18 }
 0x1dd   : > { %v5907_v28 = vadd.f32 %v4105_v50, %v5773_v24  ;;  %v4055_v61 = vpop.f32.mrf.mxu1 }
 0x1de   : > { %v4107_v16 = vpop.f32.mrf.mxu0  ;;  %v4056_v11 = vadd.f32 %v4055_v61, %v4054_v63 }
 0x1df   : > { %v4108_v39 = vadd.f32 %v4107_v16, %v4106_v0  ;;  %v4057_v13 = vpop.f32.mrf.mxu1 }
 0x1e0   : > { %v4109_v14 = vpop.f32.mrf.mxu0  ;;  %v5911_v43 = vadd.f32 %v4056_v11, %v2437_v15  ;;  %v2453_v15 = vadd.f32 %v5712_v56, %v5733_v18 }
 0x1e1   : > { %v5914_v46 = vadd.f32 %v4108_v39, %v5785_v27  ;;  %v4058_v26 = vpop.f32.mrf.mxu1 }
 0x1e2   : > { %v4110_v24 = vpop.f32.mrf.mxu0  ;;  %v4059_v54 = vadd.f32 %v4058_v26, %v4057_v13 }
 0x1e3   : > { %v4111_v21 = vadd.f32 %v4110_v24, %v4109_v14  ;;  %v4060_v32 = vpop.f32.mrf.mxu1 }
 0x1e4   : > { %v4112_v31 = vpop.f32.mrf.mxu0  ;;  %v5918_v29 = vadd.f32 %v4059_v54, %v2442_v36  ;;  %v2458_v36 = vadd.f32 %v5726_v38, %v5733_v18 }
 0x1e5   : > { %v5921_v41 = vadd.f32 %v4111_v21, %v5797_v1  ;;  %v4061_v17 = vpop.f32.mrf.mxu1 }
 0x1e6   : > { %v4113_v27 = vpop.f32.mrf.mxu0  ;;  %v4062_v52 = vadd.f32 %v4061_v17, %v4060_v32 }
 0x1e7   : > { %v4114_v2 = vadd.f32 %v4113_v27, %v4112_v31  ;;  %v4063_v42 = vpop.f32.mrf.mxu1 }
 0x1e8   : > { %v4115_v37 = vpop.f32.mrf.mxu0  ;;  %v5925_v4 = vadd.f32 %v4062_v52, %v2445_v5  ;;  %v2461_v5 = vadd.f32 %v5728_v20, %v5733_v18 }
 0x1e9   : > { %v5928_v33 = vadd.f32 %v4114_v2, %v5807_v51  ;;  %v4064_v6 = vpop.f32.mrf.mxu1 }
 0x1ea   : > { %v4116_v1 = vpop.f32.mrf.mxu0  ;;  %v4065_v23 = vadd.f32 %v4064_v6, %v4063_v42 }
 0x1eb   : > { %v4117_v60 = vadd.f32 %v4116_v1, %v4115_v37  ;;  %v4066_v50 = vpop.f32.mrf.mxu1 }
 0x1ec   : > { %v4118_v63 = vpop.f32.mrf.mxu0  ;;  %v5932_v62 = vadd.f32 %v4065_v23, %v2450_v59 }
 0x1ed   : > { %v5935_v0 = vadd.f32 %v4117_v60, %v5814_v9  ;;  %v4067_v61 = vpop.f32.mrf.mxu1 }
 0x1ee   : > { %v4119_v51 = vpop.f32.mrf.mxu0  ;;  %v4068_v16 = vadd.f32 %v4067_v61, %v4066_v50 }
 0x1ef   : > { %v4120_v11 = vadd.f32 %v4119_v51, %v4118_v63  ;;  %v4069_v39 = vpop.f32.mrf.mxu1 }
 0x1f0   : > { %v4121_v13 = vpop.f32.mrf.mxu0  ;;  %v5939_v49 = vadd.f32 %v4068_v16, %v2453_v15 }
 0x1f1   : > { %v5942_v14 = vadd.f32 %v4120_v11, %v5820_v47  ;;  %v4070_v26 = vpop.f32.mrf.mxu1 }
 0x1f2   : > { %v4122_v9 = vpop.f32.mrf.mxu0  ;;  %v4071_v24 = vadd.f32 %v4070_v26, %v4069_v39 }
 0x1f3   : > { %v4123_v54 = vadd.f32 %v4122_v9, %v4121_v13  ;;  %v4072_v21 = vpop.f32.mrf.mxu1 }
 0x1f4   : > { %v4124_v32 = vpop.f32.mrf.mxu0  ;;  %v5946_v56 = vadd.f32 %v4071_v24, %v2458_v36 }
 0x1f5   : > { %v5949_v31 = vadd.f32 %v4123_v54, %v5830_v55  ;;  %v4073_v17 = vpop.f32.mrf.mxu1 }
 0x1f6   : > { %6385 = vst [vmem:[#allocation19_spill] sm:$0xff] %v5946_v56  ;;  %v4125_v47 = vpop.f32.mrf.mxu0  ;;  %v4074_v27 = vadd.f32 %v4073_v17, %v4072_v21 }
 0x1f7   : > { %v4126_v52 = vadd.f32 %v4125_v47, %v4124_v32  ;;  %v4203_v2 = vpop.f32.mrf.mxu1 }
 0x1f8   : > { %v4127_v42 = vpop.f32.mrf.mxu0  ;;  %v5953_v38 = vadd.f32 %v4074_v27, %v2461_v5 }
 0x1f9   : > { %v5956_v37 = vadd.f32 %v4126_v52, %v5836_v53  ;;  %v4204_v6 = vpop.f32.mrf.mxu1 }
 0x1fa   : > { %6386 = vst [vmem:[#allocation20_spill] sm:$0xff] %v5953_v38  ;;  %v4128_v59 = vpop.f32.mrf.mxu0  ;;  %v4205_v1 = vadd.f32 %v4204_v6, %v4203_v2 }
 0x1fb   : > { %v4129_v23 = vadd.f32 %v4128_v59, %v4127_v42  ;;  %v4206_v55 = vpop.f32.mrf.mxu1 }
 0x1fc   : > { %v4130_v60 = vpop.f32.mrf.mxu0  ;;  %v5959_v50 = vadd.f32 %v4205_v1, %v5882_v58 }
 0x1fd   : > { %v5962_v20 = vadd.f32 %v4129_v23, %v5843_v3  ;;  %v4207_v18 = vpop.f32.mrf.mxu1 }
 0x1fe   : > { %v4131_v63 = vpop.f32.mrf.mxu0  ;;  %v4208_v61 = vadd.f32 %v4207_v18, %v4206_v55 }
 0x1ff   : > { %v4132_v15 = vadd.f32 %v4131_v63, %v4130_v60  ;;  %v5964_v51 = vpop.f32.mrf.mxu1 }
 0x200   : > { %v4133_v53 = vpop.f32.mrf.mxu0  ;;  %v5967_v16 = vadd.f32 %v4208_v61, %v5888_v22 }
 0x201   : > { %v5970_v11 = vadd.f32 %v4132_v15, %v5848_v45  ;;  %v5972_v39 = vpop.f32.mrf.mxu1 }
 0x202   : > { %v4134_v58 = vpop.f32.mrf.mxu0 }
 0x203   : > { %v4135_v13 = vadd.f32 %v4134_v58, %v4133_v53  ;;  %v5974_v26 = vpop.f32.mrf.mxu1 }
 0x204   : > { %v4136_v3 = vpop.f32.mrf.mxu0 }
 0x205   : > { %v5977_v36 = vadd.f32 %v4135_v13, %v5853_v30  ;;  %v5979_v9 = vpop.f32.mrf.mxu1 }
 0x206   : > { %v4137_v24 = vpop.f32.mrf.mxu0 }
 0x207   : > { %v4138_v54 = vadd.f32 %v4137_v24, %v4136_v3  ;;  %v5981_v21 = vpop.f32.mrf.mxu1 }
 0x208   : > { %v4139_v22 = vpop.f32.mrf.mxu0 }
 0x209   : > { %v5984_v45 = vadd.f32 %v4138_v54, %v5859_v8  ;;  %v5986_v32 = vpop.f32.mrf.mxu1 }
 0x20a   : > { %v4140_v17 = vpop.f32.mrf.mxu0 }
 0x20b   : > { %v4141_v5 = vadd.f32 %v4140_v17, %v4139_v22  ;;  %v5988_v47 = vpop.f32.mrf.mxu1 }
 0x20c   : > { %v4142_v27 = vpop.f32.mrf.mxu0 }
 0x20d   : > { %v5991_v30 = vadd.f32 %v4141_v5, %v5867_v19  ;;  %v5993_v52 = vpop.f32.mrf.mxu1 }
 0x20e   : > { %v4143_v2 = vpop.f32.mrf.mxu0 }
 0x20f   : > { %v4144_v42 = vadd.f32 %v4143_v2, %v4142_v27  ;;  %v5995_v6 = vpop.f32.mrf.mxu1 }
 0x210   : > { %v4145_v59 = vpop.f32.mrf.mxu0 }
 0x211   : > { %v5998_v8 = vadd.f32 %v4144_v42, %v5870_v40  ;;  %v6000_v1 = vpop.f32.mrf.mxu1 }
 0x212   : > { %v4146_v23 = vpop.f32.mrf.mxu0 }
 0x213   : > { %6387 = vst [vmem:[#allocation21_spill] sm:$0xff] %v5998_v8  ;;  %v4147_v55 = vadd.f32 %v4146_v23, %v4145_v59  ;;  %v6002_v60 = vpop.f32.mrf.mxu1 }
 0x214   : > { %v4148_v18 = vpop.f32.mrf.mxu0 }
 0x215   : > { %v6005_v19 = vadd.f32 %v4147_v55, %v5873_v35  ;;  %v6007_v63 = vpop.f32.mrf.mxu1 }
 0x216   : > { %v4149_v61 = vpop.f32.mrf.mxu0 }
 0x217   : > { %v4150_v15 = vadd.f32 %v4149_v61, %v4148_v18  ;;  %v6009_v53 = vpop.f32.mrf.mxu1 }
 0x218   : > { %v4151_v58 = vpop.f32.mrf.mxu0 }
 0x219   : > { %v6012_v40 = vadd.f32 %v4150_v15, %v5876_v12  ;;  %v6014_v13 = vpop.f32.mrf.mxu1 }
 0x21a   : > { %v4152_v3 = vpop.f32.mrf.mxu0 }
 0x21b   : > { %6388 = vst [vmem:[#allocation15_spill] sm:$0xff] %v6012_v40  ;;  %v4153_v24 = vadd.f32 %v4152_v3, %v4151_v58  ;;  %v6016_v54 = vpop.f32.mrf.mxu1 }
 0x21c   : > { %v4154_v22 = vpop.f32.mrf.mxu0 }
 0x21d   : > { %v6019_v35 = vadd.f32 %v4153_v24, %v5879_v7  ;;  %v6021_v17 = vpop.f32.mrf.mxu1 }
 0x21e   : > { %v4155_v5 = vpop.f32.mrf.mxu0 }
 0x21f   : > { %6389 = vst [vmem:[#allocation22_spill] sm:$0xff] %v6019_v35  ;;  %v4156_v27 = vadd.f32 %v4155_v5, %v4154_v22  ;;  %v6023_v2 = vpop.f32.mrf.mxu1 }
 0x220   : > { %v4157_v42 = vpop.f32.mrf.mxu0 }
 0x221   : > { %v6026_v12 = vadd.f32 %v4156_v27, %v5885_v48  ;;  %v6028_v59 = vpop.f32.mrf.mxu1 }
 0x222   : > { %v4158_v23 = vpop.f32.mrf.mxu0 }
 0x223   : > { %6390 = vst [vmem:[#allocation16_spill] sm:$0xff] %v6026_v12  ;;  %v4159_v55 = vadd.f32 %v4158_v23, %v4157_v42  ;;  %v6030_v18 = vpop.f32.mrf.mxu1 }
 0x224   : > { %v4160_v61 = vpop.f32.mrf.mxu0 }
 0x225   : > { %v6033_v7 = vadd.f32 %v4159_v55, %v5891_v44  ;;  %v6035_v15 = vpop.f32.mrf.mxu1 }
 0x226   : > { %v4161_v58 = vpop.f32.mrf.mxu0 }
 0x227   : > { %6391 = vst [vmem:[#allocation17_spill] sm:$0xff] %v6033_v7  ;;  %v4162_v3 = vadd.f32 %v4161_v58, %v4160_v61  ;;  %v6037_v24 = vpop.f32.mrf.mxu1 }
 0x228   : > { %v4163_v22 = vpop.f32.mrf.mxu0 }
 0x229   : > { %v6040_v48 = vadd.f32 %v4162_v3, %v5897_v34  ;;  %v6042_v5 = vpop.f32.mrf.mxu1 }
 0x22a   : > { %v4164_v27 = vpop.f32.mrf.mxu0 }
 0x22b   : > { %6392 = vst [vmem:[#allocation18_spill] sm:$0xff] %v6040_v48  ;;  %v4165_v42 = vadd.f32 %v4164_v27, %v4163_v22  ;;  %v6044_v23 = vpop.f32.mrf.mxu1 }
 0x22c   : > { %v4166_v38 = vpop.f32.mrf.mxu0 }
 0x22d   : > { %v6047_v44 = vadd.f32 %v4165_v42, %v5904_v25  ;;  %v6049_v55 = vpop.f32.mrf.mxu1 }
 0x22e   : > { %v4167_v56 = vpop.f32.mrf.mxu0 }
 0x22f   : > { %6393 = vst [vmem:[#allocation23_spill] sm:$0xff] %v6047_v44  ;;  %v4168_v61 = vadd.f32 %v4167_v56, %v4166_v38  ;;  %v6051_v58 = vpop.f32.mrf.mxu1 }
 0x230   : > { %v4169_v12 = vpop.f32.mrf.mxu0 }
 0x231   : > { %v6054_v34 = vadd.f32 %v4168_v61, %v5911_v43  ;;  %v6056_v3 = vpop.f32.mrf.mxu1 }
 0x232   : > { %v4170_v48 = vpop.f32.mrf.mxu0 }
 0x233   : > { %6394 = vst [vmem:[#allocation24_spill] sm:$0xff] %v6054_v34  ;;  %v4171_v22 = vadd.f32 %v4170_v48, %v4169_v12  ;;  %v6058_v27 = vpop.f32.mrf.mxu1 }
 0x234   : > { %v4172_v7 = vpop.f32.mrf.mxu0 }
 0x235   : > { %v6061_v25 = vadd.f32 %v4171_v22, %v5918_v29  ;;  %v6063_v42 = vpop.f32.mrf.mxu1 }
 0x236   : > { %v4173_v44 = vpop.f32.mrf.mxu0 }
 0x237   : > { %6395 = vst [vmem:[#allocation25_spill] sm:$0xff] %v6061_v25  ;;  %v4174_v56 = vadd.f32 %v4173_v44, %v4172_v7  ;;  %v6065_v38 = vpop.f32.mrf.mxu1 }
 0x238   : > { %v4175_v35 = vpop.f32.mrf.mxu0 }
 0x239   : > { %v6068_v43 = vadd.f32 %v4174_v56, %v5925_v4  ;;  %v6070_v61 = vpop.f32.mrf.mxu1 }
 0x23a   : > { %v4176_v34 = vpop.f32.mrf.mxu0 }
 0x23b   : > { %6396 = vst [vmem:[#allocation26_spill] sm:$0xff] %v6068_v43  ;;  %v4177_v12 = vadd.f32 %v4176_v34, %v4175_v35  ;;  %v6072_v48 = vpop.f32.mrf.mxu1 }
 0x23c   : > { %v4178_v8 = vpop.f32.mrf.mxu0 }
 0x23d   : > { %v6075_v29 = vadd.f32 %v4177_v12, %v5932_v62  ;;  %v6077_v22 = vpop.f32.mrf.mxu1 }
 0x23e   : > { %v4179_v25 = vpop.f32.mrf.mxu0 }
 0x23f   : > { %6397 = vst [vmem:[#allocation27_spill] sm:$0xff] %v6075_v29  ;;  %v4180_v7 = vadd.f32 %v4179_v25, %v4178_v8  ;;  %v6079_v44 = vpop.f32.mrf.mxu1  ;;  %v4211_v8 = vadd.f32 %v5972_v39, %v5964_v51  ;;  %v4214_v25 = vadd.f32 %v5979_v9, %v5974_v26 }
 0x240   : > { %v6081_v40 = vpop.f32.mrf.mxu0 }
 0x241   : > { %6398 = vst [vmem:[#allocation28_spill] sm:$0xff] %v6081_v40  ;;  %v6084_v4 = vadd.f32 %v4180_v7, %v5939_v49  ;;  %v6086_v56 = vpop.f32.mrf.mxu1 }
 0x242   : > { %v6088_v35 = vpop.f32.mrf.mxu0 }
 0x243   : > { %6399 = vst [vmem:[#allocation29_spill] sm:$0xff] %v6084_v4  ;;  %6400 = vst [vmem:[#allocation30_spill] sm:$0xff] %v6088_v35  ;;  %v6090_v34 = vpop.f32.mrf.mxu1  ;;  %v2829_v35 = vadd.f32 %v4211_v8, %v5894_v10  ;;  %v4226_v10 = vadd.f32 %v6007_v63, %v6002_v60 }
 0x244   : > { %v6092_v43 = vpop.f32.mrf.mxu0 }
 0x245   : > { %6401 = vst [vmem:[#allocation31_spill] sm:$0xff] %v6092_v43  ;;  %v6094_v62 = vpop.f32.mrf.mxu1  ;;  %v2832_v43 = vadd.f32 %v4214_v25, %v5900_v57 }
 0x246   : > { %v6096_v12 = vpop.f32.mrf.mxu0 }
 0x247   : > { %6402 = vst [vmem:[#allocation32_spill] sm:$0xff] %v6096_v12  ;;  %v6102_v49 = vpop.f32.mrf.mxu1  ;;  %v4217_v12 = vadd.f32 %v5986_v32, %v5981_v21 }
 0x248   : > { %6403 = vst [vmem:[#allocation33_spill] sm:$0xff] %v6102_v49  ;;  %v4341_v7 = vpop.f32.mrf.mxu0 }
 0x249   : > { %v6104_v4 = vpop.f32.mrf.mxu1  ;;  %v2990_v39 = vadd.f32 %v4341_v7, %v2829_v35  ;;  %v2837_v32 = vadd.f32 %v4217_v12, %v5907_v28  ;;  %v2848_v28 = vadd.f32 %v4226_v10, %v5928_v33  ;;  %v4235_v33 = vadd.f32 %v6028_v59, %v6023_v2 }
 0x24a   : > { %6404 = vst [vmem:[#allocation34_spill] sm:$0xff] %v6104_v4  ;;  %v2981_v29 = vpop.f32.mrf.mxu0  ;;  %v4223_v4 = vadd.f32 %v6000_v1, %v5995_v6 }
 0x24b   : > { %v6108_v40 = vpop.f32.mrf.mxu1  ;;  %v2982_v26 = vadd.f32 %v2981_v29, %v5959_v50  ;;  %v3308_v29 = vmul.f32 %v2990_v39, %v2990_v39 }
 0x24c   : > { %6405 = vst [vmem:[#allocation35_spill] sm:$0xff] %v6108_v40  ;;  %v4342_v51 = vpop.f32.mrf.mxu0  ;;  %v2845_v63 = vadd.f32 %v4223_v4, %v5921_v41  ;;  %v4229_v41 = vadd.f32 %v6014_v13, %v6009_v53  ;;  %v4232_v53 = vadd.f32 %v6021_v17, %v6016_v54 }
 0x24d   : > { %v2993_v9 = vadd.f32 %v4342_v51, %v2832_v43  ;;  %v6113_v49 = vpop.f32.mrf.mxu1  ;;  %v3306_v35 = vmul.f32 %v2982_v26, %v2982_v26 }
 0x24e   : > { %6406 = vst [vmem:[#allocation36_spill] sm:$0xff] %v6113_v49  ;;  %v2984_v57 = vpop.f32.mrf.mxu0 }
 0x24f   : > { %v3764_v8 = vpack.c.bf16 %v2993_v9, %v2990_v39  ;;  %v2985_v25 = vadd.f32 %v2984_v57, %v5967_v16  ;;  %v6120_v40 = vpop.f32.mrf.mxu1  ;;  %v4220_v16 = vadd.f32 %v5993_v52, %v5988_v47  ;;  %v4238_v52 = vadd.f32 %v6035_v15, %v6030_v18 }
 0x250   : > { %6407 = vst [vmem:[#allocation37_spill] sm:$0xff] %v6120_v40  ;;  %v4345_v21 = vpop.f32.mrf.mxu0  ;;  %v2853_v15 = vadd.f32 %v4229_v41, %v5935_v0  ;;  %v4241_v0 = vadd.f32 %v6042_v5, %v6037_v24  ;;  %v4250_v41 = vadd.f32 %v6063_v42, %v6058_v27  ;;  %v4244_v24 = vadd.f32 %v6049_v55, %v6044_v23 }
 0x251   : > { %3836 = vst [vmem:[%s6125_s5 + $0x8] sm:$0xff] %v3764_v8   ;;  %v3759_v50 = vpack.c.bf16 %v2985_v25, %v2982_v26  ;;  %v3268_v6 = vadd.f32 %v2985_v25, %v2982_v26  ;;  %v3307_v1 = vmul.f32 %v2985_v25, %v2985_v25  ;;  %v6128_v60 = vpop.f32.mrf.mxu1  ;;  %v3309_v8 = vmul.f32 %v2993_v9, %v2993_v9 }
 0x252   : > { %6408 = vst [vmem:[#allocation38_spill] sm:$0xff] %v6128_v60  ;;  %v2997_v43 = vpop.f32.mrf.mxu0  ;;  %v3006_v49 = vadd.f32 %v4345_v21, %v2845_v63  ;;  %v2840_v4 = vadd.f32 %v4220_v16, %v5914_v46  ;;  %v2864_v16 = vadd.f32 %v4238_v52, %v5956_v37  ;;  %v2869_v27 = vadd.f32 %v4241_v0, %v5962_v20 }
 0x253   : > { %3760 = vst [vmem:[%s6125_s5] sm:$0xff] %v3759_v50   ;;  %v3269_v12 = vadd.f32 %v3268_v6, %v2990_v39  ;;  %v3338_v7 = vadd.f32 %v3307_v1, %v3306_v35  ;;  %v2998_v51 = vadd.f32 %v2997_v43, %v2837_v32  ;;  %v6135_v57 = vpop.f32.mrf.mxu1  ;;  %v4253_v20 = vadd.f32 %v6070_v61, %v6065_v38 }
 0x254   : > { %v4346_v26 = vpop.f32.mrf.mxu0  ;;  %v3312_v43 = vmul.f32 %v3006_v49, %v3006_v49  ;;  %v4256_v38 = vadd.f32 %v6077_v22, %v6072_v48 }
 0x255   : > { %v3339_v25 = vadd.f32 %v3338_v7, %v3308_v29  ;;  %v3270_v60 = vadd.f32 %v3269_v12, %v2993_v9  ;;  %v3009_v40 = vadd.f32 %v4346_v26, %v2848_v28  ;;  %v6137_v47 = vpop.f32.mrf.mxu1  ;;  %v3310_v32 = vmul.f32 %v2998_v51, %v2998_v51 }
 0x256   : > { %v3000_v39 = vpop.f32.mrf.mxu0 }
 0x257   : > { %v3271_v10 = vadd.f32 %v3270_v60, %v2998_v51  ;;  %v3340_v21 = vadd.f32 %v3339_v25, %v3309_v8  ;;  %v3774_v9 = vpack.c.bf16 %v3009_v40, %v3006_v49  ;;  %v6146_v35 = vpop.f32.mrf.mxu1  ;;  %v3001_v50 = vadd.f32 %v3000_v39, %v2840_v4 }
 0x258   : > { %v4349_v6 = vpop.f32.mrf.mxu0  ;;  %v2861_v60 = vadd.f32 %v4235_v33, %v5949_v31  ;;  %v3313_v31 = vmul.f32 %v3009_v40, %v3009_v40 }
 0x259   : > { %v3341_v13 = vadd.f32 %v3340_v21, %v3310_v32  ;;  %3838 = vst [vmem:[%s6125_s5 + $0x18] sm:$0xff] %v3774_v9   ;;  %v6151_v2 = vpop.f32.mrf.mxu1  ;;  %v3769_v59 = vpack.c.bf16 %v3001_v50, %v2998_v51  ;;  %v3272_v18 = vadd.f32 %v3271_v10, %v3001_v50  ;;  %v3311_v46 = vmul.f32 %v3001_v50, %v3001_v50 }
 0x25a   : > { %v3013_v1 = vpop.f32.mrf.mxu0  ;;  %v3022_v12 = vadd.f32 %v4349_v6, %v2861_v60  ;;  %v2856_v51 = vadd.f32 %v4232_v53, %v5942_v14  ;;  %v2880_v50 = vadd.f32 %v4250_v41, %v5984_v45 }
 0x25b   : > { %v6156_v63 = vpop.f32.mrf.mxu1  ;;  %3837 = vst [vmem:[%s6125_s5 + $0x10] sm:$0xff] %v3769_v59   ;;  %v3273_v28 = vadd.f32 %v3272_v18, %v3006_v49  ;;  %v3342_v54 = vadd.f32 %v3341_v13, %v3311_v46  ;;  %v3014_v17 = vadd.f32 %v3013_v1, %v2853_v15  ;;  %v4247_v49 = vadd.f32 %v6056_v3, %v6051_v58 }
 0x25c   : > { %v4350_v29 = vpop.f32.mrf.mxu0  ;;  %v3316_v53 = vmul.f32 %v3022_v12, %v3022_v12  ;;  %v2872_v15 = vadd.f32 %v4244_v24, %v5970_v11 }
 0x25d   : > { %v3025_v7 = vadd.f32 %v4350_v29, %v2864_v16  ;;  %v6160_v8 = vpop.f32.mrf.mxu1  ;;  %v3343_v37 = vadd.f32 %v3342_v54, %v3312_v43  ;;  %v3274_v26 = vadd.f32 %v3273_v28, %v3009_v40  ;;  %v3314_v39 = vmul.f32 %v3014_v17, %v3014_v17 }
 0x25e   : > { %v3016_v25 = vpop.f32.mrf.mxu0  ;;  %v2877_v9 = vadd.f32 %v4247_v49, %v5977_v36  ;;  %v4259_v43 = vadd.f32 %v6086_v56, %v6079_v44  ;;  %v4262_v28 = vadd.f32 %v6094_v62, %v6090_v34  ;;  %v2885_v34 = vadd.f32 %v4253_v20, %v5991_v30  ;;  %v6411_v30 = vld [vmem:[#allocation33_spill] sm:$0xff] }
 0x25f   : > { %v3784_v33 = vpack.c.bf16 %v3025_v7, %v3022_v12  ;;  %v3017_v52 = vadd.f32 %v3016_v25, %v2856_v51  ;;  %v6168_v14 = vpop.f32.mrf.mxu1  ;;  %v3275_v4 = vadd.f32 %v3274_v26, %v3014_v17  ;;  %v3344_v10 = vadd.f32 %v3343_v37, %v3313_v31  ;;  %v6409_v26 = vld [vmem:[#allocation15_spill] sm:$0xff] }
 0x260   : > { %v4353_v32 = vpop.f32.mrf.mxu0  ;;  %v3317_v36 = vmul.f32 %v3025_v7, %v3025_v7  ;;  %v2893_v37 = vadd.f32 %v4259_v43, %v6005_v19  ;;  %v2896_v25 = vadd.f32 %v4262_v28, %v6409_v26  ;;  %v6420_v26 = vld [vmem:[#allocation16_spill] sm:$0xff] }
 0x261   : > { %3840 = vst [vmem:[%s6125_s5 + $0x28] sm:$0xff] %v3784_v33   ;;  %v3779_v40 = vpack.c.bf16 %v3017_v52, %v3014_v17  ;;  %v3315_v5 = vmul.f32 %v3017_v52, %v3017_v52  ;;  %v6173_v21 = vpop.f32.mrf.mxu1  ;;  %v3345_v58 = vadd.f32 %v3344_v10, %v3314_v39  ;;  %v3276_v3 = vadd.f32 %v3275_v4, %v3017_v52  ;;  %v6410_v10 = vld [vmem:[#allocation21_spill] sm:$0xff] }
 0x262   : > { %v3029_v42 = vpop.f32.mrf.mxu0  ;;  %v3038_v18 = vadd.f32 %v4353_v32, %v2877_v9  ;;  %v2888_v32 = vadd.f32 %v4256_v38, %v6410_v10  ;;  %v6414_v9 = vld [vmem:[#allocation38_spill] sm:$0xff] }
 0x263   : > { %3839 = vst [vmem:[%s6125_s5 + $0x20] sm:$0xff] %v3779_v40   ;;  %v6179_v6 = vpop.f32.mrf.mxu1  ;;  %v3277_v13 = vadd.f32 %v3276_v3, %v3022_v12  ;;  %v3346_v23 = vadd.f32 %v3345_v58, %v3315_v5  ;;  %v3030_v55 = vadd.f32 %v3029_v42, %v2869_v27  ;;  %v6412_v40 = vld [vmem:[#allocation34_spill] sm:$0xff]  ;;  %v6413_v42 = vld [vmem:[#allocation37_spill] sm:$0xff] }
 0x264   : > { %v4354_v59 = vpop.f32.mrf.mxu0  ;;  %v3320_v41 = vmul.f32 %v3038_v18, %v3038_v18  ;;  %v4265_v5 = vadd.f32 %v6412_v40, %v6411_v30 }
 0x265   : > { %v3041_v46 = vadd.f32 %v4354_v59, %v2880_v50  ;;  %v6182_v1 = vpop.f32.mrf.mxu1  ;;  %v3347_v60 = vadd.f32 %v3346_v23, %v3316_v53  ;;  %v3278_v45 = vadd.f32 %v3277_v13, %v3025_v7  ;;  %v3318_v12 = vmul.f32 %v3030_v55, %v3030_v55 }
 0x266   : > { %v3032_v16 = vpop.f32.mrf.mxu0  ;;  %v4271_v50 = vadd.f32 %v6414_v9, %v6413_v42  ;;  %v4274_v53 = vadd.f32 %v6137_v47, %v6135_v57  ;;  %v6418_v47 = vld [vmem:[#allocation17_spill] sm:$0xff]  ;;  %v6423_v9 = vld [vmem:[#allocation23_spill] sm:$0xff] }
 0x267   : > { %v3794_v54 = vpack.c.bf16 %v3041_v46, %v3038_v18  ;;  %v3033_v17 = vadd.f32 %v3032_v16, %v2872_v15  ;;  %v6190_v11 = vpop.f32.mrf.mxu1  ;;  %v3279_v29 = vadd.f32 %v3278_v45, %v3030_v55  ;;  %v3348_v51 = vadd.f32 %v3347_v60, %v3317_v36  ;;  %v6415_v36 = vld [vmem:[#allocation35_spill] sm:$0xff]  ;;  %v6416_v60 = vld [vmem:[#allocation36_spill] sm:$0xff] }
 0x268   : > { %v4357_v0 = vpop.f32.mrf.mxu0  ;;  %v3321_v19 = vmul.f32 %v3041_v46, %v3041_v46  ;;  %v4268_v45 = vadd.f32 %v6416_v60, %v6415_v36 }
 0x269   : > { %3842 = vst [vmem:[%s6125_s5 + $0x38] sm:$0xff] %v3794_v54   ;;  %v3789_v61 = vpack.c.bf16 %v3033_v17, %v3030_v55  ;;  %v3319_v7 = vmul.f32 %v3033_v17, %v3033_v17  ;;  %v6195_v31 = vpop.f32.mrf.mxu1  ;;  %v3349_v44 = vadd.f32 %v3348_v51, %v3318_v12  ;;  %v3280_v56 = vadd.f32 %v3279_v29, %v3033_v17  ;;  %v6417_v54 = vld [vmem:[#allocation22_spill] sm:$0xff] }
 0x26a   : > { %v3045_v62 = vpop.f32.mrf.mxu0  ;;  %v3054_v4 = vadd.f32 %v4357_v0, %v2893_v37  ;;  %v2901_v17 = vadd.f32 %v4265_v5, %v6417_v54  ;;  %v2909_v12 = vadd.f32 %v4271_v50, %v6418_v47  ;;  %v6419_v51 = vld [vmem:[#allocation18_spill] sm:$0xff] }
 0x26b   : > { %3841 = vst [vmem:[%s6125_s5 + $0x30] sm:$0xff] %v3789_v61   ;;  %v6201_v49 = vpop.f32.mrf.mxu1  ;;  %v3281_v33 = vadd.f32 %v3280_v56, %v3038_v18  ;;  %v3350_v48 = vadd.f32 %v3349_v44, %v3319_v7  ;;  %v3046_v22 = vadd.f32 %v3045_v62, %v2885_v34  ;;  %v2912_v0 = vadd.f32 %v4274_v53, %v6419_v51  ;;  %v6424_v53 = vld [vmem:[#allocation31_spill] sm:$0xff] }
 0x26c   : > { %v4358_v52 = vpop.f32.mrf.mxu0  ;;  %v3324_v38 = vmul.f32 %v3054_v4, %v3054_v4  ;;  %v4277_v34 = vadd.f32 %v6151_v2, %v6146_v35  ;;  %v4286_v35 = vadd.f32 %v6182_v1, %v6179_v6  ;;  %v6425_v6 = vld [vmem:[#allocation32_spill] sm:$0xff] }
 0x26d   : > { %v3057_v39 = vadd.f32 %v4358_v52, %v2896_v25  ;;  %v6204_v24 = vpop.f32.mrf.mxu1  ;;  %v3351_v58 = vadd.f32 %v3350_v48, %v3320_v41  ;;  %v3282_v3 = vadd.f32 %v3281_v33, %v3041_v46  ;;  %v3322_v18 = vmul.f32 %v3046_v22, %v3046_v22 }
 0x26e   : > { %v3048_v27 = vpop.f32.mrf.mxu0  ;;  %v2904_v25 = vadd.f32 %v4268_v45, %v6420_v26  ;;  %v4280_v33 = vadd.f32 %v6160_v8, %v6156_v63  ;;  %v6421_v8 = vld [vmem:[#allocation28_spill] sm:$0xff]  ;;  %v4186_v1 = vadd.f32 %v6425_v6, %v6424_v53 }
 0x26f   : > { %v3804_v13 = vpack.c.bf16 %v3057_v39, %v3054_v4  ;;  %v3049_v23 = vadd.f32 %v3048_v27, %v2888_v32  ;;  %v4293_v55 = vpop.f32.mrf.mxu1  ;;  %v3283_v59 = vadd.f32 %v3282_v3, %v3046_v22  ;;  %v3352_v15 = vadd.f32 %v3351_v58, %v3321_v19 }
 0x270   : > { %v4361_v20 = vpop.f32.mrf.mxu0  ;;  %v3325_v41 = vmul.f32 %v3057_v39, %v3057_v39 }
 0x271   : > { %3844 = vst [vmem:[%s6125_s5 + $0x48] sm:$0xff] %v3804_v13   ;;  %v3799_v46 = vpack.c.bf16 %v3049_v23, %v3046_v22  ;;  %v3323_v16 = vmul.f32 %v3049_v23, %v3049_v23  ;;  %v3353_v43 = vadd.f32 %v3352_v15, %v3322_v18  ;;  %v3284_v28 = vadd.f32 %v3283_v59, %v3049_v23  ;;  %v4294_v57 = vpop.f32.mrf.mxu1  ;;  %v6426_v13 = vld [vmem:[#allocation25_spill] sm:$0xff]  ;;  %v6427_v59 = vld [vmem:[#allocation26_spill] sm:$0xff]  ;;  %v6428_v15 = vld [vmem:[#allocation24_spill] sm:$0xff] }
 0x272   : > { %v3061_v29 = vpop.f32.mrf.mxu0  ;;  %v3070_v62 = vadd.f32 %v4361_v20, %v2909_v12  ;;  %v2928_v18 = vadd.f32 %v4286_v35, %v6427_v59  ;;  %v2920_v20 = vadd.f32 %v4280_v33, %v6428_v15  ;;  %v4295_v54 = vadd.f32 %v4294_v57, %v4293_v55 }
 0x273   : > { %3843 = vst [vmem:[%s6125_s5 + $0x40] sm:$0xff] %v3799_v46   ;;  %v3285_v61 = vadd.f32 %v3284_v28, %v3054_v4  ;;  %v3354_v7 = vadd.f32 %v3353_v43, %v3323_v16  ;;  %v3062_v44 = vadd.f32 %v3061_v29, %v2901_v17  ;;  %v4296_v10 = vpop.f32.mrf.mxu1  ;;  %v4283_v4 = vadd.f32 %v6173_v21, %v6168_v14 }
 0x274   : > { %v4362_v56 = vpop.f32.mrf.mxu0  ;;  %v2917_v14 = vadd.f32 %v4277_v34, %v6423_v9  ;;  %v3328_v36 = vmul.f32 %v3070_v62, %v3070_v62  ;;  %v4289_v12 = vadd.f32 %v6195_v31, %v6190_v11  ;;  %v4292_v55 = vadd.f32 %v6204_v24, %v6201_v49 }
 0x275   : > { %v3073_v37 = vadd.f32 %v4362_v56, %v2912_v0  ;;  %v3355_v48 = vadd.f32 %v3354_v7, %v3324_v38  ;;  %v3286_v22 = vadd.f32 %v3285_v61, %v3057_v39  ;;  %v3326_v40 = vmul.f32 %v3062_v44, %v3062_v44  ;;  %v6422_v39 = vld [vmem:[#allocation30_spill] sm:$0xff]  ;;  %v4297_v50 = vpop.f32.mrf.mxu1  ;;  %v6429_v38 = vld [vmem:[#allocation19_spill] sm:$0xff]  ;;  %v6430_v7 = vld [vmem:[#allocation20_spill] sm:$0xff] }
 0x276   : > { %v3064_v52 = vpop.f32.mrf.mxu0  ;;  %v4183_v3 = vadd.f32 %v6422_v39, %v6421_v8  ;;  %v2925_v23 = vadd.f32 %v4283_v4, %v6426_v13  ;;  %v4298_v17 = vadd.f32 %v4297_v50, %v4296_v10 }
 0x277   : > { %v3814_v32 = vpack.c.bf16 %v3073_v37, %v3070_v62  ;;  %v3065_v2 = vadd.f32 %v3064_v52, %v2904_v25  ;;  %v3287_v30 = vadd.f32 %v3286_v22, %v3062_v44  ;;  %v3356_v5 = vadd.f32 %v3355_v48, %v3325_v41  ;;  %v6431_v22 = vld [vmem:[#allocation27_spill] sm:$0xff] }
 0x278   : > { %v4365_v19 = vpop.f32.mrf.mxu0  ;;  %v3329_v29 = vmul.f32 %v3073_v37, %v3073_v37  ;;  %v2780_v61 = vadd.f32 %v4183_v3, %v6429_v38  ;;  %v2933_v52 = vadd.f32 %v4289_v12, %v6431_v22 }
 0x279   : > { %3846 = vst [vmem:[%s6125_s5 + $0x58] sm:$0xff] %v3814_v32   ;;  %v3809_v58 = vpack.c.bf16 %v3065_v2, %v3062_v44  ;;  %v3327_v63 = vmul.f32 %v3065_v2, %v3065_v2  ;;  %v3357_v27 = vadd.f32 %v3356_v5, %v3326_v40  ;;  %v3288_v42 = vadd.f32 %v3287_v30, %v3065_v2  ;;  %v6432_v40 = vld [vmem:[#allocation29_spill] sm:$0xff] }
 0x27a   : > { %v3077_v21 = vpop.f32.mrf.mxu0  ;;  %v3086_v43 = vadd.f32 %v4365_v19, %v2925_v23  ;;  %v2783_v44 = vadd.f32 %v4186_v1, %v6430_v7  ;;  %v2941_v11 = vadd.f32 %v4295_v54, %v2780_v61  ;;  %v2936_v5 = vadd.f32 %v4292_v55, %v6432_v40 }
 0x27b   : > { %3845 = vst [vmem:[%s6125_s5 + $0x50] sm:$0xff] %v3809_v58   ;;  %v3289_v60 = vadd.f32 %v3288_v42, %v3070_v62  ;;  %v3358_v45 = vadd.f32 %v3357_v27, %v3327_v63  ;;  %v3078_v46 = vadd.f32 %v3077_v21, %v2917_v14 }
 0x27c   : > { %v4366_v16 = vpop.f32.mrf.mxu0  ;;  %v2944_v31 = vadd.f32 %v4298_v17, %v2783_v44  ;;  %v3332_v4 = vmul.f32 %v3086_v43, %v3086_v43 }
 0x27d   : > { %v3089_v28 = vadd.f32 %v4366_v16, %v2928_v18  ;;  %v3359_v47 = vadd.f32 %v3358_v45, %v3328_v36  ;;  %v3290_v51 = vadd.f32 %v3289_v60, %v3073_v37  ;;  %v3330_v26 = vmul.f32 %v3078_v46, %v3078_v46 }
 0x27e   : > { %v3080_v0 = vpop.f32.mrf.mxu0 }
 0x27f   : > { %v3824_v56 = vpack.c.bf16 %v3089_v28, %v3086_v43  ;;  %v3081_v34 = vadd.f32 %v3080_v0, %v2920_v20  ;;  %v3291_v62 = vadd.f32 %v3290_v51, %v3078_v46  ;;  %v3360_v25 = vadd.f32 %v3359_v47, %v3329_v29 }
 0x280   : > { %v4369_v57 = vpop.f32.mrf.mxu0  ;;  %v3333_v19 = vmul.f32 %v3089_v28, %v3089_v28 }
 0x281   : > { %3848 = vst [vmem:[%s6125_s5 + $0x68] sm:$0xff] %v3824_v56   ;;  %v3819_v41 = vpack.c.bf16 %v3081_v34, %v3078_v46  ;;  %v3331_v33 = vmul.f32 %v3081_v34, %v3081_v34  ;;  %v3361_v37 = vadd.f32 %v3360_v25, %v3330_v26  ;;  %v3292_v48 = vadd.f32 %v3291_v62, %v3081_v34 }
 0x282   : > { %v3093_v10 = vpop.f32.mrf.mxu0  ;;  %v3102_v49 = vadd.f32 %v4369_v57, %v2941_v11 }
 0x283   : > { %3847 = vst [vmem:[%s6125_s5 + $0x60] sm:$0xff] %v3819_v41   ;;  %v3293_v32 = vadd.f32 %v3292_v48, %v3086_v43  ;;  %v3362_v35 = vadd.f32 %v3361_v37, %v3331_v33  ;;  %v3094_v2 = vadd.f32 %v3093_v10, %v2933_v52 }
 0x284   : > { %v4370_v30 = vpop.f32.mrf.mxu0  ;;  %v3336_v6 = vmul.f32 %v3102_v49, %v3102_v49 }
 0x285   : > { %v3105_v24 = vadd.f32 %v4370_v30, %v2944_v31  ;;  %v3363_v58 = vadd.f32 %v3362_v35, %v3332_v4  ;;  %v3294_v63 = vadd.f32 %v3293_v32, %v3089_v28  ;;  %v3334_v42 = vmul.f32 %v3094_v2, %v3094_v2 }
 0x286   : > { %v3096_v8 = vpop.f32.mrf.mxu0 }
 0x287   : > { %v3834_v39 = vpack.c.bf16 %v3105_v24, %v3102_v49  ;;  %v3097_v3 = vadd.f32 %v3096_v8, %v2936_v5  ;;  %v3295_v27 = vadd.f32 %v3294_v63, %v3094_v2  ;;  %v3364_v9 = vadd.f32 %v3363_v58, %v3333_v19 }
 0x288   : > { %v3337_v1 = vmul.f32 %v3105_v24, %v3105_v24 }
 0x289   : > { %3850 = vst [vmem:[%s6125_s5 + $0x78] sm:$0xff] %v3834_v39   ;;  %v3829_v14 = vpack.c.bf16 %v3097_v3, %v3094_v2  ;;  %v3335_v21 = vmul.f32 %v3097_v3, %v3097_v3  ;;  %v3365_v50 = vadd.f32 %v3364_v9, %v3334_v42  ;;  %v3296_v53 = vadd.f32 %v3295_v27, %v3097_v3 }
 0x28b   : > { %3849 = vst [vmem:[%s6125_s5 + $0x70] sm:$0xff] %v3829_v14   ;;  %v3297_v13 = vadd.f32 %v3296_v53, %v3102_v49  ;;  %v3366_v23 = vadd.f32 %v3365_v50, %v3335_v21 }
 0x28c   : > { %4623 = shalt.err (!%p4620_p0)
}
 0x28d   : > { %s4624_s8 = scalar_lea.hbm %s6253_s13, 2048  ;;  %s4628_s21 = scalar_lea.hbm %s6328_s3, 4096 }
 0x28e   : > { %p4625_p5 = scmp.ne.s32.totalorder %s6253_s13, %s4624_s8  ;;  %p4629_p4 = scmp.lt.s32.totalorder %s6253_s13, %s6328_s3 }
 0x28f   : > { %p4630_p6 = scmp.lt.s32.totalorder %s4628_s21, %s4624_s8 }
 0x290   : > { %p4626_p2 = pnand %p4625_p5, %p6433_p11 }
 0x291   : > { %p4631_p8 = por %p4630_p6, %p4629_p4 }
 0x292   : > { %p4627_p1 = pneg %p4626_p2 }
 0x294   : > { %p4632_p3 = pnand %p4631_p8, %p4627_p1 }
 0x296   : > { %4635 = shalt.err (!%p4632_p3)
}
 0x297   : > { %s4716_s6 = smov 64   ;;  %s4717_s26 = smov 4   ;;  %v3298_v59 = vadd.f32 %v3297_v13, %v3105_v24  ;;  %v3367_v18 = vadd.f32 %v3366_v23, %v3336_v6 }
 0x298   : > { %4393 = dma.vmem_to_hbm [thread:$0]  (%p6433_p11), %s6255_s24, 2048, %s6253_s13, %s3380_s14, %s4716_s6, %s4716_s6, %s4717_s26  }
 0x299   : > { %v3299_v15 = vrot.slane %v3298_v59, 4  ;;  %v3368_v20 = vadd.f32 %v3367_v18, %v3337_v1  ;;  %s3537_s29 = sshll.u32 %s4866_s30, 1  ;;  %s3719_s11 = sshll.u32 %s4765_s19, 5 }
 0x29a   : > { %s241_s20 = scalar_lea.vmem [#allocation9], %s3537_s29  ;;  %s6287_s14 = scalar_lea.hbm %s6329_s4, %s3719_s11 }
 0x29b   : > { %v3300_v36 = vadd.f32 %v3299_v15, %v3298_v59  ;;  %v3369_v60 = vrot.slane %v3368_v20, 4  ;;  %s3414_s25 = sshll.u32 %s241_s20, 4  ;;  %s3385_s7 = scalar_lea.sflag [#allocation10], %s4866_s30  ;;  %s3415_s25 = int_to_ptr.vmem [resolvable:$true] %s3414_s25 }
 0x29c   : > { %s4636_s8 = scalar_lea.vmem %s3415_s25, 32  ;;  %s4718_s19 = smov [#allocation9]  }
 0x29d   : > { %v3301_v45 = vrot.slane %v3300_v36, 2  ;;  %v3370_v46 = vadd.f32 %v3369_v60, %v3368_v20  ;;  %p4637_p7 = scmp.ne.s32.totalorder %s3415_s25, %s4636_s8  ;;  %s4640_s12 = sshll.u32 %s4718_s19, 4  ;;  %s4641_s12 = int_to_ptr.vmem [resolvable:$false] %s4640_s12 }
 0x29e   : > { %s4642_s28 = scalar_lea.vmem %s4641_s12, 64  ;;  %p4643_p12 = scmp.lt.s32.totalorder %s3415_s25, %s4641_s12 }
 0x29f   : > { %v3302_v16 = vadd.f32 %v3301_v45, %v3300_v36  ;;  %v3371_v43 = vrot.slane %v3370_v46, 2  ;;  %p4638_p9 = pnand %p4637_p7, %p6433_p11  ;;  %p4644_p13 = scmp.lt.s32.totalorder %s4642_s28, %s4636_s8 }
 0x2a1   : > { %v3303_v28 = vrot.slane %v3302_v16, 1  ;;  %v3372_v54 = vadd.f32 %v3371_v43, %v3370_v46  ;;  %p4639_p10 = pneg %p4638_p9  ;;  %p4645_p0 = por %p4644_p13, %p4643_p12 }
 0x2a3   : > { %v3373_v17 = vrot.slane %v3372_v54, 1  ;;  %v3304_v29 = vadd.f32 %v3303_v28, %v3302_v16  ;;  %p4646_p5 = pnand %p4645_p0, %p4639_p10 }
 0x2a5   : > { %v3374_v47 = vadd.f32 %v3373_v17, %v3372_v54 }
 0x2a7   : > { %v3377_v12 = vsel %vm250_vm1, %v3304_v29, %v3374_v47 }
 0x2a8   : > { %3378 = vst [vmem:[%s241_s20] sm:$0x3] %v3377_v12 }
 0x2a9   : > { %4649 = shalt.err (!%p4646_p5)
}
 0x2aa   : > { %s4650_s21 = scalar_lea.hbm %s6287_s14, 32  ;;  %s4654_s5 = scalar_lea.hbm %s6329_s4, 64 }
 0x2ab   : > { %p4651_p2 = scmp.ne.s32.totalorder %s6287_s14, %s4650_s21  ;;  %p4655_p6 = scmp.lt.s32.totalorder %s6287_s14, %s6329_s4 }
 0x2ac   : > { %p4656_p8 = scmp.lt.s32.totalorder %s4654_s5, %s4650_s21 }
 0x2ad   : > { %p4652_p1 = pnand %p4651_p2, %p6433_p11 }
 0x2ae   : > { %p4657_p3 = por %p4656_p8, %p4655_p6 }
 0x2af   : > { %p4653_p4 = pneg %p4652_p1 }
 0x2b1   : > { %p4658_p7 = pnand %p4657_p3, %p4653_p4 }
 0x2b3   : > { %4661 = shalt.err (!%p4658_p7)
}
 0x2b4   : > { %4394 = dma.vmem_to_hbm [thread:$0]  (%p6433_p11), %s3415_s25, 32, %s6287_s14, %s3385_s7  }
 0x2b5 PF: > { %s3426_s29 = sand.u32 1, %s4696_s15   ;;  %p6434_p9 = scmp.ne.s32.totalorder %s6347_s22, 0 }
 0x2b6   : > { %p6435_p10 = scmp.ge.s32.totalorder %s4708_s18, 2  ;;  %s3427_s11 = scalar_lea.sflag [#allocation5], %s3426_s29 }
 0x2b8   : > { %p4406_p12 = pnand %p6435_p10, %p6434_p9 }
 0x2ba   : > { %p4407_p13 = pneg %p4406_p12 }
 0x2bc   : > { %4687 = dma.done.wait (%p4407_p13), %s3427_s11, 2048  }
 0x2bd   : > { %4689 = vsyncadd (%p4407_p13), %s3427_s11, 4294965248  ;;  %s3436_s20 = scalar_lea.sflag [#allocation10], %s3426_s29 }
 0x2be   : > { %4691 = dma.done.wait (%p4407_p13), %s3436_s20, 32  }
 0x2bf   : > { %4693 = vsyncadd (%p4407_p13), %s3436_s20, 4294967264  ;;  %p22_p11 = scmp.ge.s32.totalorder %s4798_s27, 4   ;;  %s6436_s15 = smov %s4700_s16 }
 0x2c0   : > { %s6437_s16 = smov %s4704_s17  ;;  %s6438_s17 = smov %s4818_s9 }
 0x2c1   : > { %s6439_s18 = smov %s4798_s27  ;;  %24 = sbr.rel (!%p22_p11) target bundleno = 8 (0x8), region = 100 }
 0x2c6   :  { %3441 = vsyncpa [#allocation4], 1 }
 0x2c7   :  { %3443 = vsyncpa [#allocation4 + $0x1], 1 }
 0x2c8   :  { %3444 = vsyncpa [#allocation7], 1 }
 0x2c9   :  { %3445 = vsyncpa [#allocation5], 1 }
 0x2ca   :  { %3447 = vsyncpa [#allocation5 + $0x1], 1 }
 0x2cb   :  { %3448 = vsyncpa [#allocation10], 1 }
 0x2cc   :  { %3450 = vsyncpa [#allocation10 + $0x1], 1 }

</bundles_post_ra>
